<compile_context>
chip_gen: v7x
topology: tpu7x:2x2x1
jax: 0.10.0
libtpu: 0.0.40
codegen_flags: <defaults>
</compile_context>

<pallas_src>
import functools

import jax
import jax.numpy as jnp
from jax.experimental import pallas as pl
from jax.experimental.pallas import tpu as pltpu


# Model spec: (Cin, Cout, kh, kw).  NOTE: the PyTorch module uses
# kernel_sizes[3] for BOTH conv3 and conv4.
LAYERS = ((1, 16, 16, 3), (16, 16, 3, 5), (16, 32, 4, 3), (32, 32, 4, 3))
POOL = (2, 1)


def _same_pad(k):
    # torch Conv2d(padding='same'): low = (k-1)//2, extra pad on the high side.
    total = k - 1
    lo = total // 2
    return lo, total - lo


# ----------------------- one-time parameter preparation ----------------------

def _height_blocked_weight(w, H):
    """(Cout, Cin, kh, kw) -> (kw*H*Cin, H*Cout).

    Wm[dj, hi*Cin+ci, h*Cout+co] = w[co, ci, hi-h+ph0, dj] (0 if the height tap
    falls outside the kernel), so a 'same' conv becomes kw matmuls contracting
    (hi, ci); the height padding is absorbed into the zeros.
    """
    Cout, Cin, kh, kw = w.shape
    ph0, _ = _same_pad(kh)
    hi = jnp.arange(H)[:, None]
    h = jnp.arange(H)[None, :]
    di = hi - h + ph0
    valid = (di >= 0) & (di < kh)
    wg = w[:, :, jnp.clip(di, 0, kh - 1), :]                 # (Cout,Cin,H,H,kw)
    wg = jnp.where(valid[None, None, :, :, None], wg, 0.0)
    wm = jnp.transpose(wg, (4, 2, 1, 3, 0))                  # (kw,hi,Cin,h,Cout)
    return wm.reshape(kw * H * Cin, H * Cout)


def _pool_fc_weight(fc_w, C, H, W, pool_h):
    """Fold AvgPool2d((pool_h,1)) + NCHW flatten + Linear into one weight.

    Returns (out_dim*W, H*C) matching the kernel's conv4 output layout
    (rows = width, lanes = h*C + c), with the 1/pool_h average folded in.
    """
    out_dim = fc_w.shape[0]
    hp = H // pool_h
    wf = fc_w.reshape(out_dim, C, hp, W)            # [o, c, h', w]
    wf = jnp.transpose(wf, (0, 3, 2, 1))            # [o, w, h', c]
    wf = jnp.repeat(wf, pool_h, axis=2) / pool_h    # [o, w, h,  c]
    return wf.reshape(out_dim * W, H * C)


def prepare_params(params, *, lags=10, num_features=11, pool=POOL):
    """Rearrange the PyTorch-layout parameters once for the fused kernel."""
    H = lags
    prepped = {}
    for li in range(len(LAYERS)):
        w = params[f"conv{li + 1}_w"].astype(jnp.float32)
        b = params[f"conv{li + 1}_b"].astype(jnp.float32)
        prepped[f"w{li + 1}"] = _height_blocked_weight(w, H)
        prepped[f"b{li + 1}"] = jnp.tile(b, H).reshape(1, -1)
    c4 = LAYERS[-1][1]
    prepped["wfc"] = _pool_fc_weight(params["fc_w"].astype(jnp.float32),
                                     c4, H, num_features, pool[0])
    prepped["fcb"] = params["fc_b"].astype(jnp.float32).reshape(1, -1)
    return prepped


# ------------------------------ fused kernel ---------------------------------

@functools.lru_cache(maxsize=None)
def _build_fused_forward(B, H, W, layers, out_dim):
    """Build the single-pallas_call fused forward for a static batch size.

    Note: loops over batch / width taps are unrolled at trace time, which is
    the right trade-off for small B; for large B one would tile a grid axis
    over batch chunks and mark it "parallel".
    """
    n = len(layers)
    kw_l = [kw for (_, _, _, kw) in layers]
    wp_l = [W + kw - 1 for kw in kw_l]               # padded width per layer
    pw0_l = [_same_pad(kw)[0] for kw in kw_l]
    k_l = [H * cin for (cin, _, _, _) in layers]     # contraction = H*Cin
    n_l = [H * cout for (_, cout, _, _) in layers]   # output lanes = H*Cout
    nr_l = [(B - 1) * wp + W for wp in wp_l]         # rows actually computed
    for l in range(n - 1):
        assert n_l[l] == k_l[l + 1], "channel chaining mismatch"
    acc_shape = (max(nr_l), max(n_l))

    def kernel(*refs):
        a1 = refs[0]
        w_refs = refs[1:1 + n]
        b_refs = refs[1 + n:1 + 2 * n]
        wfc = refs[1 + 2 * n]
        fcb = refs[2 + 2 * n]
        out_ref = refs[3 + 2 * n]
        act = refs[4 + 2 * n:-1]
        acc = refs[-1]

        # Zero the padded activation buffers: their zero rows implement the
        # width 'same' padding for layers 2..n.
        for s in act:
            s[...] = jnp.zeros_like(s)

        cur = a1
        for l in range(n):
            kk, nn, nr, wp, kw = k_l[l], n_l[l], nr_l[l], wp_l[l], kw_l[l]
            # Init accumulator with the (height-tiled) bias.
            acc[0:nr, 0:nn] = jnp.broadcast_to(b_refs[l][...], (nr, nn))
            # Width taps: accumulated MXU matmuls over (height x channel).
            for dj in range(kw):
                acc[0:nr, 0:nn] += jnp.dot(
                    cur[dj:dj + nr, :],
                    w_refs[l][dj * kk:(dj + 1) * kk, :],
                    preferred_element_type=jnp.float32)
            if l + 1 < n:
                # ReLU + re-pad into the next layer's input buffer.
                nxt, off, wpn = act[l], pw0_l[l + 1], wp_l[l + 1]
                for b in range(B):
                    nxt[b * wpn + off:b * wpn + off + W, :] = jnp.maximum(
                        acc[b * wp:b * wp + W, 0:nn], 0.0)
                cur = nxt
            else:
                # ReLU + (AvgPool + flatten + fc) folded into wfc.
                for b in range(B):
                    blk = jnp.maximum(acc[b * wp:b * wp + W, 0:nn], 0.0)
                    for o in range(out_dim):
                        prod = blk * wfc[o * W:(o + 1) * W, :]
                        s = jnp.sum(prod, axis=1, keepdims=True)   # (W, 1)
                        s = jnp.sum(s, axis=0, keepdims=True)      # (1, 1)
                        out_ref[b:b + 1, o:o + 1] = s + fcb[0:1, o:o + 1]

    in_shapes = ([(B * wp_l[0], k_l[0])]
                 + [(kw_l[l] * k_l[l], n_l[l]) for l in range(n)]
                 + [(1, n_l[l]) for l in range(n)]
                 + [(out_dim * W, n_l[-1]), (1, out_dim)])
    scratch = ([pltpu.VMEM((B * wp_l[l + 1], k_l[l + 1]), jnp.float32)
                for l in range(n - 1)]
               + [pltpu.VMEM(acc_shape, jnp.float32)])

    return pl.pallas_call(
        kernel,
        out_shape=jax.ShapeDtypeStruct((B, out_dim), jnp.float32),
        grid_spec=pltpu.PrefetchScalarGridSpec(
            num_scalar_prefetch=0,
            grid=(1,),
            in_specs=[pl.BlockSpec(s, lambda i: (0, 0)) for s in in_shapes],
            out_specs=pl.BlockSpec((B, out_dim), lambda i: (0, 0)),
            scratch_shapes=scratch),
        compiler_params=pltpu.CompilerParams(
            dimension_semantics=("arbitrary",),
            vmem_limit_bytes=32 * 1024 * 1024),
    )


# --------------------------------- forward -----------------------------------

@functools.partial(jax.jit, static_argnames=("num_lags", "num_features"))
def cnn_forward(prepped, x, num_lags=10, num_features=11):
    """Forward pass; x is (B, lags*num_features) or 4-D (torch .view path)."""
    # TODO(synk): exogenous_data concatenation before fc is not implemented
    # (only the exogenous_dim=0 path of the reference module is supported).
    B = x.shape[0]
    if x.ndim > 2:
        # torch: x.view(B, size(3), size(1), size(2)) -- reinterpret, not permute.
        x = x.reshape(B, x.shape[3], x.shape[1], x.shape[2])
    x = x.reshape(B, num_lags, num_features).astype(jnp.float32)

    # conv1 input layout: rows = (batch, padded width), lanes = height.
    kw1 = LAYERS[0][3]
    pw0, pw1 = _same_pad(kw1)
    a1 = jnp.transpose(x, (0, 2, 1))                         # (B, W, H)
    a1 = jnp.pad(a1, ((0, 0), (pw0, pw1), (0, 0)))           # (B, Wp1, H)
    a1 = a1.reshape(B * (num_features + kw1 - 1), num_lags)

    out_dim = prepped["fcb"].shape[1]
    fused = _build_fused_forward(B, num_lags, num_features, LAYERS, out_dim)
    return fused(a1,
                 prepped["w1"], prepped["w2"], prepped["w3"], prepped["w4"],
                 prepped["b1"], prepped["b2"], prepped["b3"], prepped["b4"],
                 prepped["wfc"], prepped["fcb"])


# ------------------------------ init & reference -----------------------------

def xavier_uniform(key, shape, fan_in, fan_out):
    bound = jnp.sqrt(6.0 / (fan_in + fan_out))
    return jax.random.uniform(key, shape, jnp.float32, -bound, bound)


def init_params(key, num_features=11, lags=10, out_dim=5):
    keys = jax.random.split(key, len(LAYERS) + 1)
    params = {}
    for li, (cin, cout, kh, kw) in enumerate(LAYERS):
        fan_in, fan_out = cin * kh * kw, cout * kh * kw
        params[f"conv{li + 1}_w"] = xavier_uniform(
            keys[li], (cout, cin, kh, kw), fan_in, fan_out)
        params[f"conv{li + 1}_b"] = jnp.zeros((cout,), jnp.float32)
    c4 = LAYERS[-1][1]
    fc_in = c4 * (lags // POOL[0]) * (num_features // POOL[1])
    params["fc_w"] = xavier_uniform(keys[-1], (out_dim, fc_in), fc_in, out_dim)
    params["fc_b"] = jnp.zeros((out_dim,), jnp.float32)
    return params


def cnn_reference(params, x, num_lags=10, num_features=11):
    """Plain-JAX/XLA reference of the PyTorch module (used for the self-check)."""
    B = x.shape[0]
    if x.ndim > 2:
        x = x.reshape(B, x.shape[3], x.shape[1], x.shape[2])
    x = x.reshape(B, 1, num_lags, num_features).astype(jnp.float32)

    def conv_relu(x, w, b):
        kh, kw = w.shape[2], w.shape[3]
        y = jax.lax.conv_general_dilated(
            x, w, window_strides=(1, 1),
            padding=[_same_pad(kh), _same_pad(kw)],
            dimension_numbers=("NCHW", "OIHW", "NCHW"),
            precision=jax.lax.Precision.HIGHEST)
        return jax.nn.relu(y + b.reshape(1, -1, 1, 1))

    for li in range(len(LAYERS)):
        x = conv_relu(x, params[f"conv{li + 1}_w"], params[f"conv{li + 1}_b"])
    Bc, C, Hh, Ww = x.shape
    x = x.reshape(Bc, C, Hh // POOL[0], POOL[0], Ww // POOL[1], POOL[1])
    x = x.mean(axis=(3, 5)).reshape(Bc, -1)
    return jnp.dot(x, params["fc_w"].T,
                   precision=jax.lax.Precision.HIGHEST) + params["fc_b"]


# ----------------------------------- main -------------------------------------

if __name__ == "__main__":
    key = jax.random.PRNGKey(0)
    pkey, xkey = jax.random.split(key)

    num_lags, num_features, out_dim, batch = 10, 11, 5, 2

    params = init_params(pkey, num_features=num_features, lags=num_lags,
                         out_dim=out_dim)
    prepped = prepare_params(params, lags=num_lags, num_features=num_features)

    # 2D input (B, lags*num_features): the .view(B, 1, lags, features) path.
    x = jax.random.normal(xkey, (batch, num_lags * num_features), jnp.float32)

    out = cnn_forward(prepped, x, num_lags=num_lags, num_features=num_features)
    out = jax.block_until_ready(out)

    assert out.shape == (batch, out_dim), out.shape
    assert bool(jnp.all(jnp.isfinite(out)))

    # Self-check against the plain-JAX reference of the same module.
    ref = cnn_reference(params, x, num_lags=num_lags, num_features=num_features)
    max_err = float(jnp.max(jnp.abs(out - ref)))
    assert max_err < 2e-2, f"kernel vs reference mismatch: max abs err={max_err}"

    print("KERNEL_OK")
</pallas_src>

<mosaic_0001>
module attributes {stable_mosaic.version = 11 : i64} {
  func.func @kernel(%arg0: i32, %arg1: memref<26x10xf32, #tpu.memory_space<vmem>>, %arg2: memref<30x160xf32, #tpu.memory_space<vmem>>, %arg3: memref<800x160xf32, #tpu.memory_space<vmem>>, %arg4: memref<480x320xf32, #tpu.memory_space<vmem>>, %arg5: memref<960x320xf32, #tpu.memory_space<vmem>>, %arg6: memref<1x160xf32, #tpu.memory_space<vmem>>, %arg7: memref<1x160xf32, #tpu.memory_space<vmem>>, %arg8: memref<1x320xf32, #tpu.memory_space<vmem>>, %arg9: memref<1x320xf32, #tpu.memory_space<vmem>>, %arg10: memref<55x320xf32, #tpu.memory_space<vmem>>, %arg11: memref<1x5xf32, #tpu.memory_space<vmem>>, %arg12: memref<2x5xf32, #tpu.memory_space<vmem>>, %arg13: memref<30x160xf32, #tpu.memory_space<vmem>>, %arg14: memref<26x160xf32, #tpu.memory_space<vmem>>, %arg15: memref<26x320xf32, #tpu.memory_space<vmem>>, %arg16: memref<26x320xf32, #tpu.memory_space<vmem>>) attributes {dimension_semantics = [#tpu.dimension_semantics<arbitrary>], iteration_bounds = array<i64: 1>, scalar_prefetch = 0 : i64, scratch_operands = 4 : i64, tpu.core_type = #tpu.core_type<tc>, window_params = [{pipeline_mode = #tpu.pipeline_mode<synchronous>, transform_indices = @transform_0, window_bounds = array<i64: 26, 10>}, {pipeline_mode = #tpu.pipeline_mode<synchronous>, transform_indices = @transform_1, window_bounds = array<i64: 30, 160>}, {pipeline_mode = #tpu.pipeline_mode<synchronous>, transform_indices = @transform_2, window_bounds = array<i64: 800, 160>}, {pipeline_mode = #tpu.pipeline_mode<synchronous>, transform_indices = @transform_3, window_bounds = array<i64: 480, 320>}, {pipeline_mode = #tpu.pipeline_mode<synchronous>, transform_indices = @transform_4, window_bounds = array<i64: 960, 320>}, {pipeline_mode = #tpu.pipeline_mode<synchronous>, transform_indices = @transform_5, window_bounds = array<i64: 1, 160>}, {pipeline_mode = #tpu.pipeline_mode<synchronous>, transform_indices = @transform_6, window_bounds = array<i64: 1, 160>}, {pipeline_mode = #tpu.pipeline_mode<synchronous>, transform_indices = @transform_7, window_bounds = array<i64: 1, 320>}, {pipeline_mode = #tpu.pipeline_mode<synchronous>, transform_indices = @transform_8, window_bounds = array<i64: 1, 320>}, {pipeline_mode = #tpu.pipeline_mode<synchronous>, transform_indices = @transform_9, window_bounds = array<i64: 55, 320>}, {pipeline_mode = #tpu.pipeline_mode<synchronous>, transform_indices = @transform_10, window_bounds = array<i64: 1, 5>}, {pipeline_mode = #tpu.pipeline_mode<synchronous>, transform_indices = @transform_11, window_bounds = array<i64: 2, 5>}]} {
    %cst = arith.constant 0.000000e+00 : f32
    %0 = vector.broadcast %cst : f32 to vector<30x160xf32>
    %c0 = arith.constant 0 : index
    %c0_0 = arith.constant 0 : index
    %1 = vector.load %arg13[%c0, %c0_0] : memref<30x160xf32, #tpu.memory_space<vmem>>, vector<30x160xf32>
    tpu.vector_store %arg13[%c0, %c0_0], %0 {strides = array<i32>} : memref<30x160xf32, #tpu.memory_space<vmem>>, vector<30x160xf32>,
    %cst_1 = arith.constant 0.000000e+00 : f32
    %2 = vector.broadcast %cst_1 : f32 to vector<26x160xf32>
    %c0_2 = arith.constant 0 : index
    %c0_3 = arith.constant 0 : index
    %3 = vector.load %arg14[%c0_2, %c0_3] : memref<26x160xf32, #tpu.memory_space<vmem>>, vector<26x160xf32>
    tpu.vector_store %arg14[%c0_2, %c0_3], %2 {strides = array<i32>} : memref<26x160xf32, #tpu.memory_space<vmem>>, vector<26x160xf32>,
    %cst_4 = arith.constant 0.000000e+00 : f32
    %4 = vector.broadcast %cst_4 : f32 to vector<26x320xf32>
    %c0_5 = arith.constant 0 : index
    %c0_6 = arith.constant 0 : index
    %5 = vector.load %arg15[%c0_5, %c0_6] : memref<26x320xf32, #tpu.memory_space<vmem>>, vector<26x320xf32>
    tpu.vector_store %arg15[%c0_5, %c0_6], %4 {strides = array<i32>} : memref<26x320xf32, #tpu.memory_space<vmem>>, vector<26x320xf32>,
    %c0_7 = arith.constant 0 : index
    %c0_8 = arith.constant 0 : index
    %6 = vector.load %arg6[%c0_7, %c0_8] : memref<1x160xf32, #tpu.memory_space<vmem>>, vector<1x160xf32>
    %7 = vector.shape_cast %6 : vector<1x160xf32> to vector<1x160xf32>
    %8 = vector.broadcast %7 : vector<1x160xf32> to vector<24x160xf32>
    %c0_9 = arith.constant 0 : index
    %c0_10 = arith.constant 0 : index
    %9 = vector.load %arg16[%c0_9, %c0_10] : memref<26x320xf32, #tpu.memory_space<vmem>>, vector<24x160xf32>
    tpu.vector_store %arg16[%c0_9, %c0_10], %8 {strides = array<i32>} : memref<26x320xf32, #tpu.memory_space<vmem>>, vector<24x160xf32>,
    %c0_11 = arith.constant 0 : index
    %c0_12 = arith.constant 0 : index
    %10 = vector.load %arg16[%c0_11, %c0_12] : memref<26x320xf32, #tpu.memory_space<vmem>>, vector<24x160xf32>
    %c0_13 = arith.constant 0 : index
    %c0_14 = arith.constant 0 : index
    %11 = vector.load %arg1[%c0_13, %c0_14] : memref<26x10xf32, #tpu.memory_space<vmem>>, vector<24x10xf32>
    %c0_15 = arith.constant 0 : index
    %c0_16 = arith.constant 0 : index
    %12 = vector.load %arg2[%c0_15, %c0_16] : memref<30x160xf32, #tpu.memory_space<vmem>>, vector<10x160xf32>
    %cst_17 = arith.constant dense<0.000000e+00> : vector<24x160xf32>
    %13 = tpu.matmul %11, %12, %cst_17 {dimension_numbers = #tpu.dot_dimension_numbers<[1], [0], [0], [1], [0, 0, 1, 1], [], []>} : vector<24x10xf32>, vector<10x160xf32>, vector<24x160xf32> -> vector<24x160xf32>
    %14 = arith.addf %10, %13 : vector<24x160xf32>
    %c0_18 = arith.constant 0 : index
    %c0_19 = arith.constant 0 : index
    %15 = vector.load %arg16[%c0_18, %c0_19] : memref<26x320xf32, #tpu.memory_space<vmem>>, vector<24x160xf32>
    tpu.vector_store %arg16[%c0_18, %c0_19], %14 {strides = array<i32>} : memref<26x320xf32, #tpu.memory_space<vmem>>, vector<24x160xf32>,
    %c0_20 = arith.constant 0 : index
    %c0_21 = arith.constant 0 : index
    %16 = vector.load %arg16[%c0_20, %c0_21] : memref<26x320xf32, #tpu.memory_space<vmem>>, vector<24x160xf32>
    %c1 = arith.constant 1 : index
    %c0_22 = arith.constant 0 : index
    %17 = vector.load %arg1[%c1, %c0_22] : memref<26x10xf32, #tpu.memory_space<vmem>>, vector<24x10xf32>
    %c10 = arith.constant 10 : index
    %c0_23 = arith.constant 0 : index
    %18 = vector.load %arg2[%c10, %c0_23] : memref<30x160xf32, #tpu.memory_space<vmem>>, vector<10x160xf32>
    %cst_24 = arith.constant dense<0.000000e+00> : vector<24x160xf32>
    %19 = tpu.matmul %17, %18, %cst_24 {dimension_numbers = #tpu.dot_dimension_numbers<[1], [0], [0], [1], [0, 0, 1, 1], [], []>} : vector<24x10xf32>, vector<10x160xf32>, vector<24x160xf32> -> vector<24x160xf32>
    %20 = arith.addf %16, %19 : vector<24x160xf32>
    %c0_25 = arith.constant 0 : index
    %c0_26 = arith.constant 0 : index
    %21 = vector.load %arg16[%c0_25, %c0_26] : memref<26x320xf32, #tpu.memory_space<vmem>>, vector<24x160xf32>
    tpu.vector_store %arg16[%c0_25, %c0_26], %20 {strides = array<i32>} : memref<26x320xf32, #tpu.memory_space<vmem>>, vector<24x160xf32>,
    %c0_27 = arith.constant 0 : index
    %c0_28 = arith.constant 0 : index
    %22 = vector.load %arg16[%c0_27, %c0_28] : memref<26x320xf32, #tpu.memory_space<vmem>>, vector<24x160xf32>
    %c2 = arith.constant 2 : index
    %c0_29 = arith.constant 0 : index
    %23 = vector.load %arg1[%c2, %c0_29] : memref<26x10xf32, #tpu.memory_space<vmem>>, vector<24x10xf32>
    %c20 = arith.constant 20 : index
    %c0_30 = arith.constant 0 : index
    %24 = vector.load %arg2[%c20, %c0_30] : memref<30x160xf32, #tpu.memory_space<vmem>>, vector<10x160xf32>
    %cst_31 = arith.constant dense<0.000000e+00> : vector<24x160xf32>
    %25 = tpu.matmul %23, %24, %cst_31 {dimension_numbers = #tpu.dot_dimension_numbers<[1], [0], [0], [1], [0, 0, 1, 1], [], []>} : vector<24x10xf32>, vector<10x160xf32>, vector<24x160xf32> -> vector<24x160xf32>
    %26 = arith.addf %22, %25 : vector<24x160xf32>
    %c0_32 = arith.constant 0 : index
    %c0_33 = arith.constant 0 : index
    %27 = vector.load %arg16[%c0_32, %c0_33] : memref<26x320xf32, #tpu.memory_space<vmem>>, vector<24x160xf32>
    tpu.vector_store %arg16[%c0_32, %c0_33], %26 {strides = array<i32>} : memref<26x320xf32, #tpu.memory_space<vmem>>, vector<24x160xf32>,
    %c0_34 = arith.constant 0 : index
    %c0_35 = arith.constant 0 : index
    %28 = vector.load %arg16[%c0_34, %c0_35] : memref<26x320xf32, #tpu.memory_space<vmem>>, vector<11x160xf32>
    %cst_36 = arith.constant 0.000000e+00 : f32
    %29 = vector.broadcast %cst_36 : f32 to vector<11x160xf32>
    %30 = arith.maximumf %28, %29 : vector<11x160xf32>
    %c2_37 = arith.constant 2 : index
    %c0_38 = arith.constant 0 : index
    %31 = vector.load %arg13[%c2_37, %c0_38] : memref<30x160xf32, #tpu.memory_space<vmem>>, vector<11x160xf32>
    tpu.vector_store %arg13[%c2_37, %c0_38], %30 {strides = array<i32>} : memref<30x160xf32, #tpu.memory_space<vmem>>, vector<11x160xf32>,
    %c13 = arith.constant 13 : index
    %c0_39 = arith.constant 0 : index
    %32 = vector.load %arg16[%c13, %c0_39] : memref<26x320xf32, #tpu.memory_space<vmem>>, vector<11x160xf32>
    %cst_40 = arith.constant 0.000000e+00 : f32
    %33 = vector.broadcast %cst_40 : f32 to vector<11x160xf32>
    %34 = arith.maximumf %32, %33 : vector<11x160xf32>
    %c17 = arith.constant 17 : index
    %c0_41 = arith.constant 0 : index
    %35 = vector.load %arg13[%c17, %c0_41] : memref<30x160xf32, #tpu.memory_space<vmem>>, vector<11x160xf32>
    tpu.vector_store %arg13[%c17, %c0_41], %34 {strides = array<i32>} : memref<30x160xf32, #tpu.memory_space<vmem>>, vector<11x160xf32>,
    %c0_42 = arith.constant 0 : index
    %c0_43 = arith.constant 0 : index
    %36 = vector.load %arg7[%c0_42, %c0_43] : memref<1x160xf32, #tpu.memory_space<vmem>>, vector<1x160xf32>
    %37 = vector.shape_cast %36 : vector<1x160xf32> to vector<1x160xf32>
    %38 = vector.broadcast %37 : vector<1x160xf32> to vector<26x160xf32>
    %c0_44 = arith.constant 0 : index
    %c0_45 = arith.constant 0 : index
    %39 = vector.load %arg16[%c0_44, %c0_45] : memref<26x320xf32, #tpu.memory_space<vmem>>, vector<26x160xf32>
    tpu.vector_store %arg16[%c0_44, %c0_45], %38 {strides = array<i32>} : memref<26x320xf32, #tpu.memory_space<vmem>>, vector<26x160xf32>,
    %c0_46 = arith.constant 0 : index
    %c0_47 = arith.constant 0 : index
    %40 = vector.load %arg16[%c0_46, %c0_47] : memref<26x320xf32, #tpu.memory_space<vmem>>, vector<26x160xf32>
    %c0_48 = arith.constant 0 : index
    %c0_49 = arith.constant 0 : index
    %41 = vector.load %arg13[%c0_48, %c0_49] : memref<30x160xf32, #tpu.memory_space<vmem>>, vector<26x160xf32>
    %c0_50 = arith.constant 0 : index
    %c0_51 = arith.constant 0 : index
    %42 = vector.load %arg3[%c0_50, %c0_51] : memref<800x160xf32, #tpu.memory_space<vmem>>, vector<160x160xf32>
    %cst_52 = arith.constant dense<0.000000e+00> : vector<26x160xf32>
    %43 = tpu.matmul %41, %42, %cst_52 {dimension_numbers = #tpu.dot_dimension_numbers<[1], [0], [0], [1], [0, 0, 1, 1], [], []>} : vector<26x160xf32>, vector<160x160xf32>, vector<26x160xf32> -> vector<26x160xf32>
    %44 = arith.addf %40, %43 : vector<26x160xf32>
    %c0_53 = arith.constant 0 : index
    %c0_54 = arith.constant 0 : index
    %45 = vector.load %arg16[%c0_53, %c0_54] : memref<26x320xf32, #tpu.memory_space<vmem>>, vector<26x160xf32>
    tpu.vector_store %arg16[%c0_53, %c0_54], %44 {strides = array<i32>} : memref<26x320xf32, #tpu.memory_space<vmem>>, vector<26x160xf32>,
    %c0_55 = arith.constant 0 : index
    %c0_56 = arith.constant 0 : index
    %46 = vector.load %arg16[%c0_55, %c0_56] : memref<26x320xf32, #tpu.memory_space<vmem>>, vector<26x160xf32>
    %c1_57 = arith.constant 1 : index
    %c0_58 = arith.constant 0 : index
    %47 = vector.load %arg13[%c1_57, %c0_58] : memref<30x160xf32, #tpu.memory_space<vmem>>, vector<26x160xf32>
    %c160 = arith.constant 160 : index
    %c0_59 = arith.constant 0 : index
    %48 = vector.load %arg3[%c160, %c0_59] : memref<800x160xf32, #tpu.memory_space<vmem>>, vector<160x160xf32>
    %cst_60 = arith.constant dense<0.000000e+00> : vector<26x160xf32>
    %49 = tpu.matmul %47, %48, %cst_60 {dimension_numbers = #tpu.dot_dimension_numbers<[1], [0], [0], [1], [0, 0, 1, 1], [], []>} : vector<26x160xf32>, vector<160x160xf32>, vector<26x160xf32> -> vector<26x160xf32>
    %50 = arith.addf %46, %49 : vector<26x160xf32>
    %c0_61 = arith.constant 0 : index
    %c0_62 = arith.constant 0 : index
    %51 = vector.load %arg16[%c0_61, %c0_62] : memref<26x320xf32, #tpu.memory_space<vmem>>, vector<26x160xf32>
    tpu.vector_store %arg16[%c0_61, %c0_62], %50 {strides = array<i32>} : memref<26x320xf32, #tpu.memory_space<vmem>>, vector<26x160xf32>,
    %c0_63 = arith.constant 0 : index
    %c0_64 = arith.constant 0 : index
    %52 = vector.load %arg16[%c0_63, %c0_64] : memref<26x320xf32, #tpu.memory_space<vmem>>, vector<26x160xf32>
    %c2_65 = arith.constant 2 : index
    %c0_66 = arith.constant 0 : index
    %53 = vector.load %arg13[%c2_65, %c0_66] : memref<30x160xf32, #tpu.memory_space<vmem>>, vector<26x160xf32>
    %c320 = arith.constant 320 : index
    %c0_67 = arith.constant 0 : index
    %54 = vector.load %arg3[%c320, %c0_67] : memref<800x160xf32, #tpu.memory_space<vmem>>, vector<160x160xf32>
    %cst_68 = arith.constant dense<0.000000e+00> : vector<26x160xf32>
    %55 = tpu.matmul %53, %54, %cst_68 {dimension_numbers = #tpu.dot_dimension_numbers<[1], [0], [0], [1], [0, 0, 1, 1], [], []>} : vector<26x160xf32>, vector<160x160xf32>, vector<26x160xf32> -> vector<26x160xf32>
    %56 = arith.addf %52, %55 : vector<26x160xf32>
    %c0_69 = arith.constant 0 : index
    %c0_70 = arith.constant 0 : index
    %57 = vector.load %arg16[%c0_69, %c0_70] : memref<26x320xf32, #tpu.memory_space<vmem>>, vector<26x160xf32>
    tpu.vector_store %arg16[%c0_69, %c0_70], %56 {strides = array<i32>} : memref<26x320xf32, #tpu.memory_space<vmem>>, vector<26x160xf32>,
    %c0_71 = arith.constant 0 : index
    %c0_72 = arith.constant 0 : index
    %58 = vector.load %arg16[%c0_71, %c0_72] : memref<26x320xf32, #tpu.memory_space<vmem>>, vector<26x160xf32>
    %c3 = arith.constant 3 : index
    %c0_73 = arith.constant 0 : index
    %59 = vector.load %arg13[%c3, %c0_73] : memref<30x160xf32, #tpu.memory_space<vmem>>, vector<26x160xf32>
    %c480 = arith.constant 480 : index
    %c0_74 = arith.constant 0 : index
    %60 = vector.load %arg3[%c480, %c0_74] : memref<800x160xf32, #tpu.memory_space<vmem>>, vector<160x160xf32>
    %cst_75 = arith.constant dense<0.000000e+00> : vector<26x160xf32>
    %61 = tpu.matmul %59, %60, %cst_75 {dimension_numbers = #tpu.dot_dimension_numbers<[1], [0], [0], [1], [0, 0, 1, 1], [], []>} : vector<26x160xf32>, vector<160x160xf32>, vector<26x160xf32> -> vector<26x160xf32>
    %62 = arith.addf %58, %61 : vector<26x160xf32>
    %c0_76 = arith.constant 0 : index
    %c0_77 = arith.constant 0 : index
    %63 = vector.load %arg16[%c0_76, %c0_77] : memref<26x320xf32, #tpu.memory_space<vmem>>, vector<26x160xf32>
    tpu.vector_store %arg16[%c0_76, %c0_77], %62 {strides = array<i32>} : memref<26x320xf32, #tpu.memory_space<vmem>>, vector<26x160xf32>,
    %c0_78 = arith.constant 0 : index
    %c0_79 = arith.constant 0 : index
    %64 = vector.load %arg16[%c0_78, %c0_79] : memref<26x320xf32, #tpu.memory_space<vmem>>, vector<26x160xf32>
    %c4 = arith.constant 4 : index
    %c0_80 = arith.constant 0 : index
    %65 = vector.load %arg13[%c4, %c0_80] : memref<30x160xf32, #tpu.memory_space<vmem>>, vector<26x160xf32>
    %c640 = arith.constant 640 : index
    %c0_81 = arith.constant 0 : index
    %66 = vector.load %arg3[%c640, %c0_81] : memref<800x160xf32, #tpu.memory_space<vmem>>, vector<160x160xf32>
    %cst_82 = arith.constant dense<0.000000e+00> : vector<26x160xf32>
    %67 = tpu.matmul %65, %66, %cst_82 {dimension_numbers = #tpu.dot_dimension_numbers<[1], [0], [0], [1], [0, 0, 1, 1], [], []>} : vector<26x160xf32>, vector<160x160xf32>, vector<26x160xf32> -> vector<26x160xf32>
    %68 = arith.addf %64, %67 : vector<26x160xf32>
    %c0_83 = arith.constant 0 : index
    %c0_84 = arith.constant 0 : index
    %69 = vector.load %arg16[%c0_83, %c0_84] : memref<26x320xf32, #tpu.memory_space<vmem>>, vector<26x160xf32>
    tpu.vector_store %arg16[%c0_83, %c0_84], %68 {strides = array<i32>} : memref<26x320xf32, #tpu.memory_space<vmem>>, vector<26x160xf32>,
    %c0_85 = arith.constant 0 : index
    %c0_86 = arith.constant 0 : index
    %70 = vector.load %arg16[%c0_85, %c0_86] : memref<26x320xf32, #tpu.memory_space<vmem>>, vector<11x160xf32>
    %cst_87 = arith.constant 0.000000e+00 : f32
    %71 = vector.broadcast %cst_87 : f32 to vector<11x160xf32>
    %72 = arith.maximumf %70, %71 : vector<11x160xf32>
    %c1_88 = arith.constant 1 : index
    %c0_89 = arith.constant 0 : index
    %73 = vector.load %arg14[%c1_88, %c0_89] : memref<26x160xf32, #tpu.memory_space<vmem>>, vector<11x160xf32>
    tpu.vector_store %arg14[%c1_88, %c0_89], %72 {strides = array<i32>} : memref<26x160xf32, #tpu.memory_space<vmem>>, vector<11x160xf32>,
    %c15 = arith.constant 15 : index
    %c0_90 = arith.constant 0 : index
    %74 = vector.load %arg16[%c15, %c0_90] : memref<26x320xf32, #tpu.memory_space<vmem>>, vector<11x160xf32>
    %cst_91 = arith.constant 0.000000e+00 : f32
    %75 = vector.broadcast %cst_91 : f32 to vector<11x160xf32>
    %76 = arith.maximumf %74, %75 : vector<11x160xf32>
    %c14 = arith.constant 14 : index
    %c0_92 = arith.constant 0 : index
    %77 = vector.load %arg14[%c14, %c0_92] : memref<26x160xf32, #tpu.memory_space<vmem>>, vector<11x160xf32>
    tpu.vector_store %arg14[%c14, %c0_92], %76 {strides = array<i32>} : memref<26x160xf32, #tpu.memory_space<vmem>>, vector<11x160xf32>,
    %c0_93 = arith.constant 0 : index
    %c0_94 = arith.constant 0 : index
    %78 = vector.load %arg8[%c0_93, %c0_94] : memref<1x320xf32, #tpu.memory_space<vmem>>, vector<1x320xf32>
    %79 = vector.shape_cast %78 : vector<1x320xf32> to vector<1x320xf32>
    %80 = vector.broadcast %79 : vector<1x320xf32> to vector<24x320xf32>
    %c0_95 = arith.constant 0 : index
    %c0_96 = arith.constant 0 : index
    %81 = vector.load %arg16[%c0_95, %c0_96] : memref<26x320xf32, #tpu.memory_space<vmem>>, vector<24x320xf32>
    tpu.vector_store %arg16[%c0_95, %c0_96], %80 {strides = array<i32>} : memref<26x320xf32, #tpu.memory_space<vmem>>, vector<24x320xf32>,
    %c0_97 = arith.constant 0 : index
    %c0_98 = arith.constant 0 : index
    %82 = vector.load %arg16[%c0_97, %c0_98] : memref<26x320xf32, #tpu.memory_space<vmem>>, vector<24x320xf32>
    %c0_99 = arith.constant 0 : index
    %c0_100 = arith.constant 0 : index
    %83 = vector.load %arg14[%c0_99, %c0_100] : memref<26x160xf32, #tpu.memory_space<vmem>>, vector<24x160xf32>
    %c0_101 = arith.constant 0 : index
    %c0_102 = arith.constant 0 : index
    %84 = vector.load %arg4[%c0_101, %c0_102] : memref<480x320xf32, #tpu.memory_space<vmem>>, vector<160x320xf32>
    %cst_103 = arith.constant dense<0.000000e+00> : vector<24x320xf32>
    %85 = tpu.matmul %83, %84, %cst_103 {dimension_numbers = #tpu.dot_dimension_numbers<[1], [0], [0], [1], [0, 0, 1, 1], [], []>} : vector<24x160xf32>, vector<160x320xf32>, vector<24x320xf32> -> vector<24x320xf32>
    %86 = arith.addf %82, %85 : vector<24x320xf32>
    %c0_104 = arith.constant 0 : index
    %c0_105 = arith.constant 0 : index
    %87 = vector.load %arg16[%c0_104, %c0_105] : memref<26x320xf32, #tpu.memory_space<vmem>>, vector<24x320xf32>
    tpu.vector_store %arg16[%c0_104, %c0_105], %86 {strides = array<i32>} : memref<26x320xf32, #tpu.memory_space<vmem>>, vector<24x320xf32>,
    %c0_106 = arith.constant 0 : index
    %c0_107 = arith.constant 0 : index
    %88 = vector.load %arg16[%c0_106, %c0_107] : memref<26x320xf32, #tpu.memory_space<vmem>>, vector<24x320xf32>
    %c1_108 = arith.constant 1 : index
    %c0_109 = arith.constant 0 : index
    %89 = vector.load %arg14[%c1_108, %c0_109] : memref<26x160xf32, #tpu.memory_space<vmem>>, vector<24x160xf32>
    %c160_110 = arith.constant 160 : index
    %c0_111 = arith.constant 0 : index
    %90 = vector.load %arg4[%c160_110, %c0_111] : memref<480x320xf32, #tpu.memory_space<vmem>>, vector<160x320xf32>
    %cst_112 = arith.constant dense<0.000000e+00> : vector<24x320xf32>
    %91 = tpu.matmul %89, %90, %cst_112 {dimension_numbers = #tpu.dot_dimension_numbers<[1], [0], [0], [1], [0, 0, 1, 1], [], []>} : vector<24x160xf32>, vector<160x320xf32>, vector<24x320xf32> -> vector<24x320xf32>
    %92 = arith.addf %88, %91 : vector<24x320xf32>
    %c0_113 = arith.constant 0 : index
    %c0_114 = arith.constant 0 : index
    %93 = vector.load %arg16[%c0_113, %c0_114] : memref<26x320xf32, #tpu.memory_space<vmem>>, vector<24x320xf32>
    tpu.vector_store %arg16[%c0_113, %c0_114], %92 {strides = array<i32>} : memref<26x320xf32, #tpu.memory_space<vmem>>, vector<24x320xf32>,
    %c0_115 = arith.constant 0 : index
    %c0_116 = arith.constant 0 : index
    %94 = vector.load %arg16[%c0_115, %c0_116] : memref<26x320xf32, #tpu.memory_space<vmem>>, vector<24x320xf32>
    %c2_117 = arith.constant 2 : index
    %c0_118 = arith.constant 0 : index
    %95 = vector.load %arg14[%c2_117, %c0_118] : memref<26x160xf32, #tpu.memory_space<vmem>>, vector<24x160xf32>
    %c320_119 = arith.constant 320 : index
    %c0_120 = arith.constant 0 : index
    %96 = vector.load %arg4[%c320_119, %c0_120] : memref<480x320xf32, #tpu.memory_space<vmem>>, vector<160x320xf32>
    %cst_121 = arith.constant dense<0.000000e+00> : vector<24x320xf32>
    %97 = tpu.matmul %95, %96, %cst_121 {dimension_numbers = #tpu.dot_dimension_numbers<[1], [0], [0], [1], [0, 0, 1, 1], [], []>} : vector<24x160xf32>, vector<160x320xf32>, vector<24x320xf32> -> vector<24x320xf32>
    %98 = arith.addf %94, %97 : vector<24x320xf32>
    %c0_122 = arith.constant 0 : index
    %c0_123 = arith.constant 0 : index
    %99 = vector.load %arg16[%c0_122, %c0_123] : memref<26x320xf32, #tpu.memory_space<vmem>>, vector<24x320xf32>
    tpu.vector_store %arg16[%c0_122, %c0_123], %98 {strides = array<i32>} : memref<26x320xf32, #tpu.memory_space<vmem>>, vector<24x320xf32>,
    %c0_124 = arith.constant 0 : index
    %c0_125 = arith.constant 0 : index
    %100 = vector.load %arg16[%c0_124, %c0_125] : memref<26x320xf32, #tpu.memory_space<vmem>>, vector<11x320xf32>
    %cst_126 = arith.constant 0.000000e+00 : f32
    %101 = vector.broadcast %cst_126 : f32 to vector<11x320xf32>
    %102 = arith.maximumf %100, %101 : vector<11x320xf32>
    %c1_127 = arith.constant 1 : index
    %c0_128 = arith.constant 0 : index
    %103 = vector.load %arg15[%c1_127, %c0_128] : memref<26x320xf32, #tpu.memory_space<vmem>>, vector<11x320xf32>
    tpu.vector_store %arg15[%c1_127, %c0_128], %102 {strides = array<i32>} : memref<26x320xf32, #tpu.memory_space<vmem>>, vector<11x320xf32>,
    %c13_129 = arith.constant 13 : index
    %c0_130 = arith.constant 0 : index
    %104 = vector.load %arg16[%c13_129, %c0_130] : memref<26x320xf32, #tpu.memory_space<vmem>>, vector<11x320xf32>
    %cst_131 = arith.constant 0.000000e+00 : f32
    %105 = vector.broadcast %cst_131 : f32 to vector<11x320xf32>
    %106 = arith.maximumf %104, %105 : vector<11x320xf32>
    %c14_132 = arith.constant 14 : index
    %c0_133 = arith.constant 0 : index
    %107 = vector.load %arg15[%c14_132, %c0_133] : memref<26x320xf32, #tpu.memory_space<vmem>>, vector<11x320xf32>
    tpu.vector_store %arg15[%c14_132, %c0_133], %106 {strides = array<i32>} : memref<26x320xf32, #tpu.memory_space<vmem>>, vector<11x320xf32>,
    %c0_134 = arith.constant 0 : index
    %c0_135 = arith.constant 0 : index
    %108 = vector.load %arg9[%c0_134, %c0_135] : memref<1x320xf32, #tpu.memory_space<vmem>>, vector<1x320xf32>
    %109 = vector.shape_cast %108 : vector<1x320xf32> to vector<1x320xf32>
    %110 = vector.broadcast %109 : vector<1x320xf32> to vector<24x320xf32>
    %c0_136 = arith.constant 0 : index
    %c0_137 = arith.constant 0 : index
    %111 = vector.load %arg16[%c0_136, %c0_137] : memref<26x320xf32, #tpu.memory_space<vmem>>, vector<24x320xf32>
    tpu.vector_store %arg16[%c0_136, %c0_137], %110 {strides = array<i32>} : memref<26x320xf32, #tpu.memory_space<vmem>>, vector<24x320xf32>,
    %c0_138 = arith.constant 0 : index
    %c0_139 = arith.constant 0 : index
    %112 = vector.load %arg16[%c0_138, %c0_139] : memref<26x320xf32, #tpu.memory_space<vmem>>, vector<24x320xf32>
    %c0_140 = arith.constant 0 : index
    %c0_141 = arith.constant 0 : index
    %113 = vector.load %arg15[%c0_140, %c0_141] : memref<26x320xf32, #tpu.memory_space<vmem>>, vector<24x320xf32>
    %c0_142 = arith.constant 0 : index
    %c0_143 = arith.constant 0 : index
    %114 = vector.load %arg5[%c0_142, %c0_143] : memref<960x320xf32, #tpu.memory_space<vmem>>, vector<320x320xf32>
    %cst_144 = arith.constant dense<0.000000e+00> : vector<24x320xf32>
    %115 = tpu.matmul %113, %114, %cst_144 {dimension_numbers = #tpu.dot_dimension_numbers<[1], [0], [0], [1], [0, 0, 1, 1], [], []>} : vector<24x320xf32>, vector<320x320xf32>, vector<24x320xf32> -> vector<24x320xf32>
    %116 = arith.addf %112, %115 : vector<24x320xf32>
    %c0_145 = arith.constant 0 : index
    %c0_146 = arith.constant 0 : index
    %117 = vector.load %arg16[%c0_145, %c0_146] : memref<26x320xf32, #tpu.memory_space<vmem>>, vector<24x320xf32>
    tpu.vector_store %arg16[%c0_145, %c0_146], %116 {strides = array<i32>} : memref<26x320xf32, #tpu.memory_space<vmem>>, vector<24x320xf32>,
    %c0_147 = arith.constant 0 : index
    %c0_148 = arith.constant 0 : index
    %118 = vector.load %arg16[%c0_147, %c0_148] : memref<26x320xf32, #tpu.memory_space<vmem>>, vector<24x320xf32>
    %c1_149 = arith.constant 1 : index
    %c0_150 = arith.constant 0 : index
    %119 = vector.load %arg15[%c1_149, %c0_150] : memref<26x320xf32, #tpu.memory_space<vmem>>, vector<24x320xf32>
    %c320_151 = arith.constant 320 : index
    %c0_152 = arith.constant 0 : index
    %120 = vector.load %arg5[%c320_151, %c0_152] : memref<960x320xf32, #tpu.memory_space<vmem>>, vector<320x320xf32>
    %cst_153 = arith.constant dense<0.000000e+00> : vector<24x320xf32>
    %121 = tpu.matmul %119, %120, %cst_153 {dimension_numbers = #tpu.dot_dimension_numbers<[1], [0], [0], [1], [0, 0, 1, 1], [], []>} : vector<24x320xf32>, vector<320x320xf32>, vector<24x320xf32> -> vector<24x320xf32>
    %122 = arith.addf %118, %121 : vector<24x320xf32>
    %c0_154 = arith.constant 0 : index
    %c0_155 = arith.constant 0 : index
    %123 = vector.load %arg16[%c0_154, %c0_155] : memref<26x320xf32, #tpu.memory_space<vmem>>, vector<24x320xf32>
    tpu.vector_store %arg16[%c0_154, %c0_155], %122 {strides = array<i32>} : memref<26x320xf32, #tpu.memory_space<vmem>>, vector<24x320xf32>,
    %c0_156 = arith.constant 0 : index
    %c0_157 = arith.constant 0 : index
    %124 = vector.load %arg16[%c0_156, %c0_157] : memref<26x320xf32, #tpu.memory_space<vmem>>, vector<24x320xf32>
    %c2_158 = arith.constant 2 : index
    %c0_159 = arith.constant 0 : index
    %125 = vector.load %arg15[%c2_158, %c0_159] : memref<26x320xf32, #tpu.memory_space<vmem>>, vector<24x320xf32>
    %c640_160 = arith.constant 640 : index
    %c0_161 = arith.constant 0 : index
    %126 = vector.load %arg5[%c640_160, %c0_161] : memref<960x320xf32, #tpu.memory_space<vmem>>, vector<320x320xf32>
    %cst_162 = arith.constant dense<0.000000e+00> : vector<24x320xf32>
    %127 = tpu.matmul %125, %126, %cst_162 {dimension_numbers = #tpu.dot_dimension_numbers<[1], [0], [0], [1], [0, 0, 1, 1], [], []>} : vector<24x320xf32>, vector<320x320xf32>, vector<24x320xf32> -> vector<24x320xf32>
    %128 = arith.addf %124, %127 : vector<24x320xf32>
    %c0_163 = arith.constant 0 : index
    %c0_164 = arith.constant 0 : index
    %129 = vector.load %arg16[%c0_163, %c0_164] : memref<26x320xf32, #tpu.memory_space<vmem>>, vector<24x320xf32>
    tpu.vector_store %arg16[%c0_163, %c0_164], %128 {strides = array<i32>} : memref<26x320xf32, #tpu.memory_space<vmem>>, vector<24x320xf32>,
    %c0_165 = arith.constant 0 : index
    %c0_166 = arith.constant 0 : index
    %130 = vector.load %arg16[%c0_165, %c0_166] : memref<26x320xf32, #tpu.memory_space<vmem>>, vector<11x320xf32>
    %cst_167 = arith.constant 0.000000e+00 : f32
    %131 = vector.broadcast %cst_167 : f32 to vector<11x320xf32>
    %132 = arith.maximumf %130, %131 : vector<11x320xf32>
    %c0_168 = arith.constant 0 : index
    %c0_169 = arith.constant 0 : index
    %133 = vector.load %arg10[%c0_168, %c0_169] : memref<55x320xf32, #tpu.memory_space<vmem>>, vector<11x320xf32>
    %134 = arith.mulf %132, %133 : vector<11x320xf32>
    %cst_170 = arith.constant dense<0.000000e+00> : vector<11xf32>
    %135 = vector.multi_reduction <add>, %134, %cst_170 [1] : vector<11x320xf32> to vector<11xf32>
    %136 = vector.shape_cast %135 : vector<11xf32> to vector<11x1xf32>
    %cst_171 = arith.constant dense<0.000000e+00> : vector<1xf32>
    %137 = vector.multi_reduction <add>, %136, %cst_171 [0] : vector<11x1xf32> to vector<1xf32>
    %138 = vector.shape_cast %137 : vector<1xf32> to vector<1x1xf32>
    %c0_172 = arith.constant 0 : index
    %c0_173 = arith.constant 0 : index
    %139 = vector.load %arg11[%c0_172, %c0_173] : memref<1x5xf32, #tpu.memory_space<vmem>>, vector<1x1xf32>
    %140 = arith.addf %138, %139 : vector<1x1xf32>
    %c0_174 = arith.constant 0 : index
    %c0_175 = arith.constant 0 : index
    %141 = vector.load %arg12[%c0_174, %c0_175] : memref<2x5xf32, #tpu.memory_space<vmem>>, vector<1x1xf32>
    tpu.vector_store %arg12[%c0_174, %c0_175], %140 {strides = array<i32>} : memref<2x5xf32, #tpu.memory_space<vmem>>, vector<1x1xf32>,
    %c11 = arith.constant 11 : index
    %c0_176 = arith.constant 0 : index
    %142 = vector.load %arg10[%c11, %c0_176] : memref<55x320xf32, #tpu.memory_space<vmem>>, vector<11x320xf32>
    %143 = arith.mulf %132, %142 : vector<11x320xf32>
    %cst_177 = arith.constant dense<0.000000e+00> : vector<11xf32>
    %144 = vector.multi_reduction <add>, %143, %cst_177 [1] : vector<11x320xf32> to vector<11xf32>
    %145 = vector.shape_cast %144 : vector<11xf32> to vector<11x1xf32>
    %cst_178 = arith.constant dense<0.000000e+00> : vector<1xf32>
    %146 = vector.multi_reduction <add>, %145, %cst_178 [0] : vector<11x1xf32> to vector<1xf32>
    %147 = vector.shape_cast %146 : vector<1xf32> to vector<1x1xf32>
    %c0_179 = arith.constant 0 : index
    %c1_180 = arith.constant 1 : index
    %148 = vector.load %arg11[%c0_179, %c1_180] : memref<1x5xf32, #tpu.memory_space<vmem>>, vector<1x1xf32>
    %149 = arith.addf %147, %148 : vector<1x1xf32>
    %c0_181 = arith.constant 0 : index
    %c1_182 = arith.constant 1 : index
    %150 = vector.load %arg12[%c0_181, %c1_182] : memref<2x5xf32, #tpu.memory_space<vmem>>, vector<1x1xf32>
    tpu.vector_store %arg12[%c0_181, %c1_182], %149 {strides = array<i32>} : memref<2x5xf32, #tpu.memory_space<vmem>>, vector<1x1xf32>,
    %c22 = arith.constant 22 : index
    %c0_183 = arith.constant 0 : index
    %151 = vector.load %arg10[%c22, %c0_183] : memref<55x320xf32, #tpu.memory_space<vmem>>, vector<11x320xf32>
    %152 = arith.mulf %132, %151 : vector<11x320xf32>
    %cst_184 = arith.constant dense<0.000000e+00> : vector<11xf32>
    %153 = vector.multi_reduction <add>, %152, %cst_184 [1] : vector<11x320xf32> to vector<11xf32>
    %154 = vector.shape_cast %153 : vector<11xf32> to vector<11x1xf32>
    %cst_185 = arith.constant dense<0.000000e+00> : vector<1xf32>
    %155 = vector.multi_reduction <add>, %154, %cst_185 [0] : vector<11x1xf32> to vector<1xf32>
    %156 = vector.shape_cast %155 : vector<1xf32> to vector<1x1xf32>
    %c0_186 = arith.constant 0 : index
    %c2_187 = arith.constant 2 : index
    %157 = vector.load %arg11[%c0_186, %c2_187] : memref<1x5xf32, #tpu.memory_space<vmem>>, vector<1x1xf32>
    %158 = arith.addf %156, %157 : vector<1x1xf32>
    %c0_188 = arith.constant 0 : index
    %c2_189 = arith.constant 2 : index
    %159 = vector.load %arg12[%c0_188, %c2_189] : memref<2x5xf32, #tpu.memory_space<vmem>>, vector<1x1xf32>
    tpu.vector_store %arg12[%c0_188, %c2_189], %158 {strides = array<i32>} : memref<2x5xf32, #tpu.memory_space<vmem>>, vector<1x1xf32>,
    %c33 = arith.constant 33 : index
    %c0_190 = arith.constant 0 : index
    %160 = vector.load %arg10[%c33, %c0_190] : memref<55x320xf32, #tpu.memory_space<vmem>>, vector<11x320xf32>
    %161 = arith.mulf %132, %160 : vector<11x320xf32>
    %cst_191 = arith.constant dense<0.000000e+00> : vector<11xf32>
    %162 = vector.multi_reduction <add>, %161, %cst_191 [1] : vector<11x320xf32> to vector<11xf32>
    %163 = vector.shape_cast %162 : vector<11xf32> to vector<11x1xf32>
    %cst_192 = arith.constant dense<0.000000e+00> : vector<1xf32>
    %164 = vector.multi_reduction <add>, %163, %cst_192 [0] : vector<11x1xf32> to vector<1xf32>
    %165 = vector.shape_cast %164 : vector<1xf32> to vector<1x1xf32>
    %c0_193 = arith.constant 0 : index
    %c3_194 = arith.constant 3 : index
    %166 = vector.load %arg11[%c0_193, %c3_194] : memref<1x5xf32, #tpu.memory_space<vmem>>, vector<1x1xf32>
    %167 = arith.addf %165, %166 : vector<1x1xf32>
    %c0_195 = arith.constant 0 : index
    %c3_196 = arith.constant 3 : index
    %168 = vector.load %arg12[%c0_195, %c3_196] : memref<2x5xf32, #tpu.memory_space<vmem>>, vector<1x1xf32>
    tpu.vector_store %arg12[%c0_195, %c3_196], %167 {strides = array<i32>} : memref<2x5xf32, #tpu.memory_space<vmem>>, vector<1x1xf32>,
    %c44 = arith.constant 44 : index
    %c0_197 = arith.constant 0 : index
    %169 = vector.load %arg10[%c44, %c0_197] : memref<55x320xf32, #tpu.memory_space<vmem>>, vector<11x320xf32>
    %170 = arith.mulf %132, %169 : vector<11x320xf32>
    %cst_198 = arith.constant dense<0.000000e+00> : vector<11xf32>
    %171 = vector.multi_reduction <add>, %170, %cst_198 [1] : vector<11x320xf32> to vector<11xf32>
    %172 = vector.shape_cast %171 : vector<11xf32> to vector<11x1xf32>
    %cst_199 = arith.constant dense<0.000000e+00> : vector<1xf32>
    %173 = vector.multi_reduction <add>, %172, %cst_199 [0] : vector<11x1xf32> to vector<1xf32>
    %174 = vector.shape_cast %173 : vector<1xf32> to vector<1x1xf32>
    %c0_200 = arith.constant 0 : index
    %c4_201 = arith.constant 4 : index
    %175 = vector.load %arg11[%c0_200, %c4_201] : memref<1x5xf32, #tpu.memory_space<vmem>>, vector<1x1xf32>
    %176 = arith.addf %174, %175 : vector<1x1xf32>
    %c0_202 = arith.constant 0 : index
    %c4_203 = arith.constant 4 : index
    %177 = vector.load %arg12[%c0_202, %c4_203] : memref<2x5xf32, #tpu.memory_space<vmem>>, vector<1x1xf32>
    tpu.vector_store %arg12[%c0_202, %c4_203], %176 {strides = array<i32>} : memref<2x5xf32, #tpu.memory_space<vmem>>, vector<1x1xf32>,
    %c13_204 = arith.constant 13 : index
    %c0_205 = arith.constant 0 : index
    %178 = vector.load %arg16[%c13_204, %c0_205] : memref<26x320xf32, #tpu.memory_space<vmem>>, vector<11x320xf32>
    %cst_206 = arith.constant 0.000000e+00 : f32
    %179 = vector.broadcast %cst_206 : f32 to vector<11x320xf32>
    %180 = arith.maximumf %178, %179 : vector<11x320xf32>
    %c0_207 = arith.constant 0 : index
    %c0_208 = arith.constant 0 : index
    %181 = vector.load %arg10[%c0_207, %c0_208] : memref<55x320xf32, #tpu.memory_space<vmem>>, vector<11x320xf32>
    %182 = arith.mulf %180, %181 : vector<11x320xf32>
    %cst_209 = arith.constant dense<0.000000e+00> : vector<11xf32>
    %183 = vector.multi_reduction <add>, %182, %cst_209 [1] : vector<11x320xf32> to vector<11xf32>
    %184 = vector.shape_cast %183 : vector<11xf32> to vector<11x1xf32>
    %cst_210 = arith.constant dense<0.000000e+00> : vector<1xf32>
    %185 = vector.multi_reduction <add>, %184, %cst_210 [0] : vector<11x1xf32> to vector<1xf32>
    %186 = vector.shape_cast %185 : vector<1xf32> to vector<1x1xf32>
    %c0_211 = arith.constant 0 : index
    %c0_212 = arith.constant 0 : index
    %187 = vector.load %arg11[%c0_211, %c0_212] : memref<1x5xf32, #tpu.memory_space<vmem>>, vector<1x1xf32>
    %188 = arith.addf %186, %187 : vector<1x1xf32>
    %c1_213 = arith.constant 1 : index
    %c0_214 = arith.constant 0 : index
    %189 = vector.load %arg12[%c1_213, %c0_214] : memref<2x5xf32, #tpu.memory_space<vmem>>, vector<1x1xf32>
    tpu.vector_store %arg12[%c1_213, %c0_214], %188 {strides = array<i32>} : memref<2x5xf32, #tpu.memory_space<vmem>>, vector<1x1xf32>,
    %c11_215 = arith.constant 11 : index
    %c0_216 = arith.constant 0 : index
    %190 = vector.load %arg10[%c11_215, %c0_216] : memref<55x320xf32, #tpu.memory_space<vmem>>, vector<11x320xf32>
    %191 = arith.mulf %180, %190 : vector<11x320xf32>
    %cst_217 = arith.constant dense<0.000000e+00> : vector<11xf32>
    %192 = vector.multi_reduction <add>, %191, %cst_217 [1] : vector<11x320xf32> to vector<11xf32>
    %193 = vector.shape_cast %192 : vector<11xf32> to vector<11x1xf32>
    %cst_218 = arith.constant dense<0.000000e+00> : vector<1xf32>
    %194 = vector.multi_reduction <add>, %193, %cst_218 [0] : vector<11x1xf32> to vector<1xf32>
    %195 = vector.shape_cast %194 : vector<1xf32> to vector<1x1xf32>
    %c0_219 = arith.constant 0 : index
    %c1_220 = arith.constant 1 : index
    %196 = vector.load %arg11[%c0_219, %c1_220] : memref<1x5xf32, #tpu.memory_space<vmem>>, vector<1x1xf32>
    %197 = arith.addf %195, %196 : vector<1x1xf32>
    %c1_221 = arith.constant 1 : index
    %c1_222 = arith.constant 1 : index
    %198 = vector.load %arg12[%c1_221, %c1_222] : memref<2x5xf32, #tpu.memory_space<vmem>>, vector<1x1xf32>
    tpu.vector_store %arg12[%c1_221, %c1_222], %197 {strides = array<i32>} : memref<2x5xf32, #tpu.memory_space<vmem>>, vector<1x1xf32>,
    %c22_223 = arith.constant 22 : index
    %c0_224 = arith.constant 0 : index
    %199 = vector.load %arg10[%c22_223, %c0_224] : memref<55x320xf32, #tpu.memory_space<vmem>>, vector<11x320xf32>
    %200 = arith.mulf %180, %199 : vector<11x320xf32>
    %cst_225 = arith.constant dense<0.000000e+00> : vector<11xf32>
    %201 = vector.multi_reduction <add>, %200, %cst_225 [1] : vector<11x320xf32> to vector<11xf32>
    %202 = vector.shape_cast %201 : vector<11xf32> to vector<11x1xf32>
    %cst_226 = arith.constant dense<0.000000e+00> : vector<1xf32>
    %203 = vector.multi_reduction <add>, %202, %cst_226 [0] : vector<11x1xf32> to vector<1xf32>
    %204 = vector.shape_cast %203 : vector<1xf32> to vector<1x1xf32>
    %c0_227 = arith.constant 0 : index
    %c2_228 = arith.constant 2 : index
    %205 = vector.load %arg11[%c0_227, %c2_228] : memref<1x5xf32, #tpu.memory_space<vmem>>, vector<1x1xf32>
    %206 = arith.addf %204, %205 : vector<1x1xf32>
    %c1_229 = arith.constant 1 : index
    %c2_230 = arith.constant 2 : index
    %207 = vector.load %arg12[%c1_229, %c2_230] : memref<2x5xf32, #tpu.memory_space<vmem>>, vector<1x1xf32>
    tpu.vector_store %arg12[%c1_229, %c2_230], %206 {strides = array<i32>} : memref<2x5xf32, #tpu.memory_space<vmem>>, vector<1x1xf32>,
    %c33_231 = arith.constant 33 : index
    %c0_232 = arith.constant 0 : index
    %208 = vector.load %arg10[%c33_231, %c0_232] : memref<55x320xf32, #tpu.memory_space<vmem>>, vector<11x320xf32>
    %209 = arith.mulf %180, %208 : vector<11x320xf32>
    %cst_233 = arith.constant dense<0.000000e+00> : vector<11xf32>
    %210 = vector.multi_reduction <add>, %209, %cst_233 [1] : vector<11x320xf32> to vector<11xf32>
    %211 = vector.shape_cast %210 : vector<11xf32> to vector<11x1xf32>
    %cst_234 = arith.constant dense<0.000000e+00> : vector<1xf32>
    %212 = vector.multi_reduction <add>, %211, %cst_234 [0] : vector<11x1xf32> to vector<1xf32>
    %213 = vector.shape_cast %212 : vector<1xf32> to vector<1x1xf32>
    %c0_235 = arith.constant 0 : index
    %c3_236 = arith.constant 3 : index
    %214 = vector.load %arg11[%c0_235, %c3_236] : memref<1x5xf32, #tpu.memory_space<vmem>>, vector<1x1xf32>
    %215 = arith.addf %213, %214 : vector<1x1xf32>
    %c1_237 = arith.constant 1 : index
    %c3_238 = arith.constant 3 : index
    %216 = vector.load %arg12[%c1_237, %c3_238] : memref<2x5xf32, #tpu.memory_space<vmem>>, vector<1x1xf32>
    tpu.vector_store %arg12[%c1_237, %c3_238], %215 {strides = array<i32>} : memref<2x5xf32, #tpu.memory_space<vmem>>, vector<1x1xf32>,
    %c44_239 = arith.constant 44 : index
    %c0_240 = arith.constant 0 : index
    %217 = vector.load %arg10[%c44_239, %c0_240] : memref<55x320xf32, #tpu.memory_space<vmem>>, vector<11x320xf32>
    %218 = arith.mulf %180, %217 : vector<11x320xf32>
    %cst_241 = arith.constant dense<0.000000e+00> : vector<11xf32>
    %219 = vector.multi_reduction <add>, %218, %cst_241 [1] : vector<11x320xf32> to vector<11xf32>
    %220 = vector.shape_cast %219 : vector<11xf32> to vector<11x1xf32>
    %cst_242 = arith.constant dense<0.000000e+00> : vector<1xf32>
    %221 = vector.multi_reduction <add>, %220, %cst_242 [0] : vector<11x1xf32> to vector<1xf32>
    %222 = vector.shape_cast %221 : vector<1xf32> to vector<1x1xf32>
    %c0_243 = arith.constant 0 : index
    %c4_244 = arith.constant 4 : index
    %223 = vector.load %arg11[%c0_243, %c4_244] : memref<1x5xf32, #tpu.memory_space<vmem>>, vector<1x1xf32>
    %224 = arith.addf %222, %223 : vector<1x1xf32>
    %c1_245 = arith.constant 1 : index
    %c4_246 = arith.constant 4 : index
    %225 = vector.load %arg12[%c1_245, %c4_246] : memref<2x5xf32, #tpu.memory_space<vmem>>, vector<1x1xf32>
    tpu.vector_store %arg12[%c1_245, %c4_246], %224 {strides = array<i32>} : memref<2x5xf32, #tpu.memory_space<vmem>>, vector<1x1xf32>,
    return
  }
  func.func @transform_0(%arg0: i32) -> (i32, i32) {
    %c0_i32 = arith.constant 0 : i32
    %c0_i32_0 = arith.constant 0 : i32
    %c0_i32_1 = arith.constant 0 : i32
    return %c0_i32, %c0_i32_0 : i32, i32
  }
  func.func @transform_1(%arg0: i32) -> (i32, i32) {
    %c0_i32 = arith.constant 0 : i32
    %c0_i32_0 = arith.constant 0 : i32
    %c0_i32_1 = arith.constant 0 : i32
    return %c0_i32, %c0_i32_0 : i32, i32
  }
  func.func @transform_2(%arg0: i32) -> (i32, i32) {
    %c0_i32 = arith.constant 0 : i32
    %c0_i32_0 = arith.constant 0 : i32
    %c0_i32_1 = arith.constant 0 : i32
    return %c0_i32, %c0_i32_0 : i32, i32
  }
  func.func @transform_3(%arg0: i32) -> (i32, i32) {
    %c0_i32 = arith.constant 0 : i32
    %c0_i32_0 = arith.constant 0 : i32
    %c0_i32_1 = arith.constant 0 : i32
    return %c0_i32, %c0_i32_0 : i32, i32
  }
  func.func @transform_4(%arg0: i32) -> (i32, i32) {
    %c0_i32 = arith.constant 0 : i32
    %c0_i32_0 = arith.constant 0 : i32
    %c0_i32_1 = arith.constant 0 : i32
    return %c0_i32, %c0_i32_0 : i32, i32
  }
  func.func @transform_5(%arg0: i32) -> (i32, i32) {
    %c0_i32 = arith.constant 0 : i32
    %c0_i32_0 = arith.constant 0 : i32
    %c0_i32_1 = arith.constant 0 : i32
    return %c0_i32, %c0_i32_0 : i32, i32
  }
  func.func @transform_6(%arg0: i32) -> (i32, i32) {
    %c0_i32 = arith.constant 0 : i32
    %c0_i32_0 = arith.constant 0 : i32
    %c0_i32_1 = arith.constant 0 : i32
    return %c0_i32, %c0_i32_0 : i32, i32
  }
  func.func @transform_7(%arg0: i32) -> (i32, i32) {
    %c0_i32 = arith.constant 0 : i32
    %c0_i32_0 = arith.constant 0 : i32
    %c0_i32_1 = arith.constant 0 : i32
    return %c0_i32, %c0_i32_0 : i32, i32
  }
  func.func @transform_8(%arg0: i32) -> (i32, i32) {
    %c0_i32 = arith.constant 0 : i32
    %c0_i32_0 = arith.constant 0 : i32
    %c0_i32_1 = arith.constant 0 : i32
    return %c0_i32, %c0_i32_0 : i32, i32
  }
  func.func @transform_9(%arg0: i32) -> (i32, i32) {
    %c0_i32 = arith.constant 0 : i32
    %c0_i32_0 = arith.constant 0 : i32
    %c0_i32_1 = arith.constant 0 : i32
    return %c0_i32, %c0_i32_0 : i32, i32
  }
  func.func @transform_10(%arg0: i32) -> (i32, i32) {
    %c0_i32 = arith.constant 0 : i32
    %c0_i32_0 = arith.constant 0 : i32
    %c0_i32_1 = arith.constant 0 : i32
    return %c0_i32, %c0_i32_0 : i32, i32
  }
  func.func @transform_11(%arg0: i32) -> (i32, i32) {
    %c0_i32 = arith.constant 0 : i32
    %c0_i32_0 = arith.constant 0 : i32
    %c0_i32_1 = arith.constant 0 : i32
    return %c0_i32, %c0_i32_0 : i32, i32
  }
}

</mosaic_0001>

<bundles_post_ra>
// kernel: cnn_forward.1
= control target key start
LH: loop header
LB: loop body
LE: loop exit
PB: predicated region body
PF: predicated region fallthrough
CT: control target
= control target key end

     0   :  { %vm113_vm0 = vcmask 1041408   ;;  %vm5915_vm1 = vmmov 1   ;;  %vm103_vm3 = vcmask 80896   ;;  %v5916_v7 = vmov 0.0   ;;  %s9600_s0 = inlined_call_operand.vmem [shape: f32[26,10], index: 0, kind: input, shape index: {}]   ;;  %s9601_s1 = inlined_call_operand.vmem [shape: f32[30,160], index: 1, kind: input, shape index: {}]   ;;  %s9602_s2 = inlined_call_operand.vmem [shape: f32[800,160], index: 2, kind: input, shape index: {}]   ;;  %s9603_s3 = inlined_call_operand.vmem [shape: f32[480,320], index: 3, kind: input, shape index: {}]   ;;  %s9604_s4 = inlined_call_operand.vmem [shape: f32[960,320], index: 4, kind: input, shape index: {}]   ;;  %s9605_s5 = inlined_call_operand.vmem [shape: f32[1,160], index: 5, kind: input, shape index: {}]   ;;  %s9606_s6 = inlined_call_operand.vmem [shape: f32[1,160], index: 6, kind: input, shape index: {}]   ;;  %s9607_s7 = inlined_call_operand.vmem [shape: f32[1,320], index: 7, kind: input, shape index: {}]   ;;  %s9608_s8 = inlined_call_operand.vmem [shape: f32[1,320], index: 8, kind: input, shape index: {}]   ;;  %s9609_s9 = inlined_call_operand.vmem [shape: f32[55,320], index: 9, kind: input, shape index: {}]   ;;  %s9610_s10 = inlined_call_operand.vmem [shape: f32[1,5], index: 10, kind: input, shape index: {}]   ;;  %s9611_s11 = inlined_call_operand.hbm [shape: f32[2,5], index: 11, kind: output, shape index: {}]  }
   0x1   :  { %v100_v0 = vld [vmem:[%s9601_s1 + $0x8] sm:$0xff]  ;;  %v102_v1 = vld [vmem:[%s9601_s1 + $0x18] sm:$0x3]  ;;  %v99_v2 = vld [vmem:[%s9601_s1] sm:$0xff]  ;;  %184 = vmatprep.mubr.f32.mxu0 %v5916_v7  ;;  %39 = vst [vmem:[#allocation2] sm:$0xff] %v5916_v7  ;;  %vm232_vm4 = vcmask 1045504   ;;  %318 = vmatprep.mubr.f32.mxu1 %v5916_v7 }
   0x2   :  { %v5064_v3 = vpack.c.bf16 %v102_v1, %v100_v0  ;;  %vm5990_vm2 = vmpackc.low %vm113_vm0, %vm5915_vm1  ;;  %v101_v5 = vld [vmem:[%s9601_s1 + $0x10] sm:$0x3]  ;;  %42 = vst [vmem:[#allocation2 + $0x10] sm:$0xff] %v5916_v7  ;;  %v96_v8 = vld [vmem:[%s9600_s0] sm:$0xff]  ;;  %vm366_vm5 = vcmask 1043456  }
   0x3   :  { %v5067_v6 = vpack.c.bf16 %v101_v5, %v99_v2  ;;  %44 = vst [vmem:[#allocation2 + $0x20] sm:$0xff] %v5916_v7  ;;  %46 = vst [vmem:[#allocation2 + $0x30] sm:$0x3f] %v5916_v7  ;;  %v225_v9 = vld [vmem:[%s9601_s1 + $0x18] sm:$0xfc]  ;;  %v97_v30 = vld [vmem:[%s9600_s0 + $0x8] sm:$0xff] }
   0x4   :  { %49 = vst [vmem:[#allocation3] sm:$0xff] %v5916_v7  ;;  %51 = vst [vmem:[#allocation3 + $0x10] sm:$0xff] %v5916_v7  ;;  %v227_v10 = vld [vmem:[%s9601_s1 + $0x28] sm:$0xf]  ;;  %5066 = vmatprep.subr.msk.bf16.mxu0 %vm5990_vm2, %v5064_v3  ;;  %v236_v11 = vrot.slane %v225_v9, 2 }
   0x5   :  { %55 = vst [vmem:[#allocation3 + $0x30] sm:$0x3] %v5916_v7  ;;  %58 = vst [vmem:[#allocation4] sm:$0xff] %v5916_v7  ;;  %v237_v12 = vrot.slane %v227_v10, 2  ;;  %v224_v13 = vld [vmem:[%s9601_s1 + $0x10] sm:$0xfc]  ;;  %5069 = vmatpush1.bf16.msk.msra.mxu0 %vm5990_vm2, %v5067_v6 }
   0x6   :  { %59 = vst [vmem:[#allocation4 + $0x8] sm:$0xff] %v5916_v7  ;;  %62 = vst [vmem:[#allocation4 + $0x18] sm:$0xff] %v5916_v7  ;;  %v226_v14 = vld [vmem:[%s9601_s1 + $0x20] sm:$0xf]  ;;  %v233_v15 = vrot.slane %v224_v13, 2 }
   0x7   :  { %63 = vst [vmem:[#allocation4 + $0x20] sm:$0xff] %v5916_v7  ;;  %68 = vst [vmem:[#allocation4 + $0x48] sm:$0x3] %v5916_v7  ;;  %v234_v16 = vrot.slane %v226_v14, 2  ;;  %v359_v17 = vld [vmem:[%s9601_s1 + $0x28] sm:$0xf0]  ;;  %v238_v19 = vsel %vm232_vm4, %v236_v11, %v237_v12 }
   0x8   :  { %69 = vst [vmem:[#allocation4 + $0x50] sm:$0x3] %v5916_v7  ;;  %v361_v18 = vld [vmem:[%s9601_s1 + $0x38] sm:$0x3f]  ;;  %v370_v20 = vrot.slane %v359_v17, 4  ;;  %v5070_v23 = vpack.c.bf16 %v237_v12, %v238_v19  ;;  %4764 = vmatmul.mubr.msk.f32.vlgmr.msra.gmra.mrb[0].mxu0 %vm103_vm3, %v96_v8 }
   0x9   :  { %v371_v21 = vrot.slane %v361_v18, 4  ;;  %v358_v22 = vld [vmem:[%s9601_s1 + $0x20] sm:$0xf0]  ;;  %v235_v24 = vsel %vm232_vm4, %v233_v15, %v234_v16  ;;  %v360_v25 = vld [vmem:[%s9601_s1 + $0x30] sm:$0x3f]  ;;  %190 = vmatprep.mubr.f32.mxu0 %v5916_v7 }
   0xa   :  { %v367_v26 = vrot.slane %v358_v22, 4  ;;  %v5073_v27 = vpack.c.bf16 %v234_v16, %v235_v24  ;;  %v368_v29 = vrot.slane %v360_v25, 4  ;;  %5072 = vmatprep.subr.msk.bf16.mxu1 %vm5990_vm2, %v5070_v23 }
   0xb   :  { %v372_v28 = vsel %vm366_vm5, %v370_v20, %v371_v21 }
   0xc   :  { %v5076_v31 = vpack.c.bf16 %v371_v21, %v372_v28 }
   0xd   :  { %16 = vsyncpa [#allocation7], 0  ;;  %5075 = vmatpush1.bf16.msk.msra.mxu1 %vm5990_vm2, %v5073_v27  ;;  %v369_v32 = vsel %vm366_vm5, %v367_v26, %v368_v29  ;;  %v221_v34 = vld [vmem:[%s9600_s0 + $0x1] sm:$0xff]  ;;  %4765 = vmatmul.mubr.msk.f32.gmra.mrb[2].mxu0 %vm103_vm3, %v97_v30  ;;  %v98_v35 = vld [vmem:[%s9600_s0 + $0x10] sm:$0xff]  ;;  %v74_v41 = vlaneseq  ;;  %vm40_vm6 = vcmask 261120   ;;  %vm47_vm7 = vcmask 259072  }
   0xe   :  { %5078 = vmatprep.subr.msk.bf16.mxu0 %vm5990_vm2, %v5076_v31  ;;  %v5079_v33 = vpack.c.bf16 %v368_v29, %v369_v32  ;;  %196 = vmatprep.mubr.f32.mxu0 %v5916_v7  ;;  %v222_v36 = vld [vmem:[%s9600_s0 + $0x9] sm:$0xff]  ;;  %v223_v38 = vld [vmem:[%s9600_s0 + $0x11] sm:$0xff]  ;;  %v6103_v44 = vld [vmem:[%s9605_s5] sm:$0x3]  ;;  %41 = vst.msk [vmem:[#allocation2 + $0x8] sm:$0xff] %vm40_vm6, %v5916_v7  ;;  %vm506_vm8 = vcmask 261122  }
   0xf   :  { %v355_v37 = vld [vmem:[%s9600_s0 + $0x2] sm:$0xff]  ;;  %v356_v39 = vld [vmem:[%s9600_s0 + $0xa] sm:$0xff]  ;;  %v357_v40 = vld [vmem:[%s9600_s0 + $0x12] sm:$0xff]  ;;  %v6095_v42 = vshrl.u32 %v74_v41, 7  ;;  %43 = vst.msk [vmem:[#allocation2 + $0x18] sm:$0xff] %vm40_vm6, %v5916_v7  ;;  %vm509_vm9 = vcmask 258048  }
  0x10   :  { %5081 = vmatpush1.bf16.msk.msra.mxu0 %vm5990_vm2, %v5079_v33  ;;  %4769 = vmatmul.mubr.msk.f32.vlgmr.msra.gmra.mrb[0].mxu1 %vm103_vm3, %v221_v34  ;;  %45 = vst.msk [vmem:[#allocation2 + $0x28] sm:$0xff] %vm40_vm6, %v5916_v7  ;;  %50 = vst.msk [vmem:[#allocation3 + $0x8] sm:$0xff] %vm40_vm6, %v5916_v7  ;;  %v576_v46 = vld [vmem:[%s9602_s2 + $0x8] sm:$0xff]  ;;  %v578_v47 = vld [vmem:[%s9602_s2 + $0x18] sm:$0xff]  ;;  %vm537_vm10 = vcmask 257024   ;;  %vm534_vm11 = vcmask 261121  }
  0x11   :  { %324 = vmatprep.mubr.f32.mxu1 %v5916_v7  ;;  %4766 = vmatmul.mubr.msk.f32.gmra.mrb[4].mxu0 %vm103_vm3, %v98_v35  ;;  %v6098_v43 = vsub.s32 1, %v6095_v42  ;;  %52 = vst.msk [vmem:[#allocation3 + $0x18] sm:$0xff] %vm40_vm6, %v5916_v7  ;;  %54 = vst.msk [vmem:[#allocation3 + $0x28] sm:$0xff] %vm40_vm6, %v5916_v7  ;;  %v5082_v48 = vpack.c.bf16 %v578_v47, %v576_v46  ;;  %v575_v49 = vld [vmem:[%s9602_s2] sm:$0xff]  ;;  %v577_v50 = vld [vmem:[%s9602_s2 + $0x10] sm:$0xff]  ;;  %vm796_vm12 = vcmask 1046528  }
  0x12   :  { %452 = vmatprep.mubr.f32.mxu0 %v5916_v7  ;;  %v5084_v51 = vpack.c.bf16 %v577_v50, %v575_v49  ;;  %v580_v52 = vld [vmem:[%s9602_s2 + $0x28] sm:$0xff]  ;;  %v582_v53 = vld [vmem:[%s9602_s2 + $0x38] sm:$0xff]  ;;  %v579_v55 = vld [vmem:[%s9602_s2 + $0x20] sm:$0xff]  ;;  %48 = vst.msk [vmem:[#allocation2 + $0x38] sm:$0x3f] %vm47_vm7, %v5916_v7  ;;  %vm1187_vm13 = vcmask 1044480  }
  0x13   :  { %v81_v45 = vrot.slane %v6103_v44, %v6098_v43  ;;  %5083 = vmatprep.subr.bf16.mxu1 %v5082_v48  ;;  %v5086_v54 = vpack.c.bf16 %v582_v53, %v580_v52  ;;  %v581_v56 = vld [vmem:[%s9602_s2 + $0x30] sm:$0xff]  ;;  %v584_v58 = vld [vmem:[%s9602_s2 + $0x48] sm:$0xff]  ;;  %v586_v59 = vld [vmem:[%s9602_s2 + $0x58] sm:$0xff]  ;;  %vm56_vm14 = vcmask 254976   ;;  %vm1526_vm15 = vcmask 1040384   ;;  %s5919_s30 = smov [#allocation6]  }
  0x14   :  { %4770 = vmatmul.mubr.msk.f32.gmra.mrb[2].mxu1 %vm103_vm3, %v222_v36  ;;  %v5088_v57 = vpack.c.bf16 %v581_v56, %v579_v55  ;;  %v749_v60 = vld [vmem:[%s9602_s2 + $0x148] sm:$0xff]  ;;  %v5090_v61 = vpack.c.bf16 %v586_v59, %v584_v58  ;;  %v751_v62 = vld [vmem:[%s9602_s2 + $0x158] sm:$0xff]  ;;  %v583_v63 = vld [vmem:[%s9602_s2 + $0x40] sm:$0xff]  ;;  %vm1576_vm1 = vcmask 261126   ;;  %vm1581_vm2 = vcmask 253952  }
  0x15   :  { %330 = vmatprep.mubr.f32.mxu1 %v5916_v7  ;;  %4774 = vmatmul.mubr.msk.f32.vlgmr.msra.gmra.mrb[6].mxu0 %vm103_vm3, %v355_v37  ;;  %85 = vst.msk [vmem:[#allocation5 + $0x8] sm:$0xff] %vm40_vm6, %v81_v45  ;;  %87 = vst.msk [vmem:[#allocation5 + $0x20] sm:$0xff] %vm40_vm6, %v81_v45  ;;  %v585_v0 = vld [vmem:[%s9602_s2 + $0x50] sm:$0xff]  ;;  %v5122_v1 = vpack.c.bf16 %v751_v62, %v749_v60  ;;  %v748_v3 = vld [vmem:[%s9602_s2 + $0x140] sm:$0xff]  ;;  %vm2487_vm7 = vcmask 523265  }
  0x16   :  { %458 = vmatprep.mubr.f32.mxu0 %v5916_v7  ;;  %89 = vst.msk [vmem:[#allocation5 + $0x38] sm:$0xff] %vm40_vm6, %v81_v45  ;;  %5085 = vmatpush1.bf16.msra.mxu1 %v5084_v51  ;;  %v5092_v2 = vpack.c.bf16 %v585_v0, %v583_v63  ;;  %v750_v4 = vld [vmem:[%s9602_s2 + $0x150] sm:$0xff]  ;;  %v588_v6 = vld [vmem:[%s9602_s2 + $0x68] sm:$0xff]  ;;  %v590_v8 = vld [vmem:[%s9602_s2 + $0x78] sm:$0xff] }
  0x17   :  { %5087 = vmatprep.subr.bf16.mxu1 %v5086_v54  ;;  %v5124_v5 = vpack.c.bf16 %v750_v4, %v748_v3  ;;  %5123 = vmatprep.subr.bf16.mxu0 %v5122_v1  ;;  %v753_v9 = vld [vmem:[%s9602_s2 + $0x168] sm:$0xff]  ;;  %v5094_v10 = vpack.c.bf16 %v590_v8, %v588_v6  ;;  %v755_v11 = vld [vmem:[%s9602_s2 + $0x178] sm:$0xff]  ;;  %v587_v12 = vld [vmem:[%s9602_s2 + $0x60] sm:$0xff] }
  0x18   :  { %4771 = vmatmul.mubr.msk.f32.gmra.mrb[4].mxu1 %vm103_vm3, %v223_v38  ;;  %v589_v13 = vld [vmem:[%s9602_s2 + $0x70] sm:$0xff]  ;;  %v5126_v14 = vpack.c.bf16 %v755_v11, %v753_v9  ;;  %v752_v16 = vld [vmem:[%s9602_s2 + $0x160] sm:$0xff]  ;;  %v592_v19 = vld [vmem:[%s9602_s2 + $0x88] sm:$0xff] }
  0x19   :  { %4775 = vmatmul.mubr.msk.f32.gmra.mrb[8].mxu0 %vm103_vm3, %v356_v39  ;;  %v5096_v15 = vpack.c.bf16 %v589_v13, %v587_v12  ;;  %v754_v17 = vld [vmem:[%s9602_s2 + $0x170] sm:$0xff]  ;;  %v594_v20 = vld [vmem:[%s9602_s2 + $0x98] sm:$0xff]  ;;  %v757_v21 = vld [vmem:[%s9602_s2 + $0x188] sm:$0xff] }
  0x1a   :  { %464 = vmatprep.mubr.f32.mxu0 %v5916_v7  ;;  %5089 = vmatpush1.bf16.msra.mxu1 %v5088_v57  ;;  %v5128_v18 = vpack.c.bf16 %v754_v17, %v752_v16  ;;  %v5098_v22 = vpack.c.bf16 %v594_v20, %v592_v19  ;;  %v759_v23 = vld [vmem:[%s9602_s2 + $0x198] sm:$0xff]  ;;  %v591_v24 = vld [vmem:[%s9602_s2 + $0x80] sm:$0xff]  ;;  %v593_v25 = vld [vmem:[%s9602_s2 + $0x90] sm:$0xff]  ;;  %v6267_v57 = vsub.s32 0, %v6095_v42 }
  0x1b   :  { %5091 = vmatprep.subr.bf16.mxu1 %v5090_v61  ;;  %5125 = vmatpush1.bf16.msra.mxu0 %v5124_v5  ;;  %v5130_v26 = vpack.c.bf16 %v759_v23, %v757_v21  ;;  %v5100_v27 = vpack.c.bf16 %v593_v25, %v591_v24  ;;  %v756_v28 = vld [vmem:[%s9602_s2 + $0x180] sm:$0xff]  ;;  %v758_v29 = vld [vmem:[%s9602_s2 + $0x190] sm:$0xff]  ;;  %v596_v31 = vld [vmem:[%s9602_s2 + $0xa8] sm:$0xff] }
  0x1c   :  { %5127 = vmatprep.subr.bf16.mxu0 %v5126_v14  ;;  %v5132_v30 = vpack.c.bf16 %v758_v29, %v756_v28  ;;  %v598_v32 = vld [vmem:[%s9602_s2 + $0xb8] sm:$0xff]  ;;  %v761_v33 = vld [vmem:[%s9602_s2 + $0x1a8] sm:$0xff]  ;;  %v595_v36 = vld [vmem:[%s9602_s2 + $0xa0] sm:$0xff] }
  0x1d   :  { %4776 = vmatmul.mubr.msk.f32.gmra.mrb[10].mxu0 %vm103_vm3, %v357_v40  ;;  %v5102_v34 = vpack.c.bf16 %v598_v32, %v596_v31  ;;  %v763_v35 = vld [vmem:[%s9602_s2 + $0x1b8] sm:$0xff]  ;;  %v597_v37 = vld [vmem:[%s9602_s2 + $0xb0] sm:$0xff]  ;;  %v760_v40 = vld [vmem:[%s9602_s2 + $0x1a0] sm:$0xff]  ;;  %vm60_vm3 = vcmask 523264  }
  0x1e   :  { %5093 = vmatpush1.bf16.msra.mxu1 %v5092_v2  ;;  %v5134_v38 = vpack.c.bf16 %v763_v35, %v761_v33  ;;  %v5104_v39 = vpack.c.bf16 %v597_v37, %v595_v36  ;;  %v762_v41 = vld [vmem:[%s9602_s2 + $0x1b0] sm:$0xff]  ;;  %v600_v46 = vld [vmem:[%s9602_s2 + $0xc8] sm:$0xff]  ;;  %v602_v47 = vld [vmem:[%s9602_s2 + $0xd8] sm:$0xff] }
  0x1f   :  { %5095 = vmatprep.subr.bf16.mxu1 %v5094_v10  ;;  %5129 = vmatpush1.bf16.msra.mxu0 %v5128_v18  ;;  %v5136_v45 = vpack.c.bf16 %v762_v41, %v760_v40  ;;  %v765_v48 = vld [vmem:[%s9602_s2 + $0x1c8] sm:$0xff]  ;;  %v5106_v49 = vpack.c.bf16 %v602_v47, %v600_v46  ;;  %v767_v50 = vld [vmem:[%s9602_s2 + $0x1d8] sm:$0xff]  ;;  %v599_v51 = vld [vmem:[%s9602_s2 + $0xc0] sm:$0xff] }
  0x20   :  { %5131 = vmatprep.subr.bf16.mxu0 %v5130_v26  ;;  %v601_v52 = vld [vmem:[%s9602_s2 + $0xd0] sm:$0xff]  ;;  %v5138_v53 = vpack.c.bf16 %v767_v50, %v765_v48  ;;  %v764_v55 = vld [vmem:[%s9602_s2 + $0x1c0] sm:$0xff]  ;;  %v604_v60 = vld [vmem:[%s9602_s2 + $0xe8] sm:$0xff] }
  0x21   :  { %v5108_v54 = vpack.c.bf16 %v601_v52, %v599_v51  ;;  %v766_v56 = vld [vmem:[%s9602_s2 + $0x1d0] sm:$0xff]  ;;  %v6272_v59 = vld [vmem:[%s9606_s6] sm:$0x3]  ;;  %v606_v61 = vld [vmem:[%s9602_s2 + $0xf8] sm:$0xff] }
  0x22   :  { %5097 = vmatpush1.bf16.msra.mxu1 %v5096_v15  ;;  %v5140_v58 = vpack.c.bf16 %v766_v56, %v764_v55  ;;  %v6282_v62 = vrot.slane %v6272_v59, %v6267_v57  ;;  %v5110_v63 = vpack.c.bf16 %v606_v61, %v604_v60  ;;  %v769_v0 = vld [vmem:[%s9602_s2 + $0x1e8] sm:$0xff]  ;;  %v771_v1 = vld [vmem:[%s9602_s2 + $0x1f8] sm:$0xff]  ;;  %v603_v2 = vld [vmem:[%s9602_s2 + $0xe0] sm:$0xff]  ;;  %v77_v55 = vrot.slane %v6103_v44, %v6267_v57 }
  0x23   :  { %5099 = vmatprep.subr.bf16.mxu1 %v5098_v22  ;;  %5133 = vmatpush1.bf16.msra.mxu0 %v5132_v30  ;;  %v5142_v3 = vpack.c.bf16 %v771_v1, %v769_v0  ;;  %v605_v4 = vld [vmem:[%s9602_s2 + $0xf0] sm:$0xff]  ;;  %v768_v5 = vld [vmem:[%s9602_s2 + $0x1e0] sm:$0xff]  ;;  %v608_v10 = vld [vmem:[%s9602_s2 + $0x108] sm:$0xff] }
  0x24   :  { %5135 = vmatprep.subr.bf16.mxu0 %v5134_v38  ;;  %v770_v6 = vld [vmem:[%s9602_s2 + $0x1f0] sm:$0xff]  ;;  %551 = vst [vmem:[#allocation5] sm:$0xff] %v6282_v62  ;;  %557 = vst [vmem:[#allocation5 + $0x48] sm:$0x3] %v6282_v62  ;;  %v5112_v8 = vpack.c.bf16 %v605_v4, %v603_v2  ;;  %v610_v11 = vld [vmem:[%s9602_s2 + $0x118] sm:$0xff] }
  0x25   :  { %v5144_v9 = vpack.c.bf16 %v770_v6, %v768_v5  ;;  %v773_v12 = vld [vmem:[%s9602_s2 + $0x208] sm:$0xff]  ;;  %v5114_v13 = vpack.c.bf16 %v610_v11, %v608_v10  ;;  %v775_v14 = vld [vmem:[%s9602_s2 + $0x218] sm:$0xff]  ;;  %v607_v15 = vld [vmem:[%s9602_s2 + $0x100] sm:$0xff] }
  0x26   :  { %5101 = vmatpush1.bf16.msra.mxu1 %v5100_v27  ;;  %v609_v16 = vld [vmem:[%s9602_s2 + $0x110] sm:$0xff]  ;;  %v5146_v17 = vpack.c.bf16 %v775_v14, %v773_v12  ;;  %v772_v19 = vld [vmem:[%s9602_s2 + $0x200] sm:$0xff]  ;;  %v612_v22 = vld [vmem:[%s9602_s2 + $0x128] sm:$0xff] }
  0x27   :  { %5103 = vmatprep.subr.bf16.mxu1 %v5102_v34  ;;  %5137 = vmatpush1.bf16.msra.mxu0 %v5136_v45  ;;  %v5116_v18 = vpack.c.bf16 %v609_v16, %v607_v15  ;;  %v774_v20 = vld [vmem:[%s9602_s2 + $0x210] sm:$0xff]  ;;  %v614_v23 = vld [vmem:[%s9602_s2 + $0x138] sm:$0xff]  ;;  %v777_v24 = vld [vmem:[%s9602_s2 + $0x228] sm:$0xff] }
  0x28   :  { %5139 = vmatprep.subr.bf16.mxu0 %v5138_v53  ;;  %v5148_v21 = vpack.c.bf16 %v774_v20, %v772_v19  ;;  %v5118_v25 = vpack.c.bf16 %v614_v23, %v612_v22  ;;  %v779_v26 = vld [vmem:[%s9602_s2 + $0x238] sm:$0xff]  ;;  %v611_v27 = vld [vmem:[%s9602_s2 + $0x120] sm:$0xff]  ;;  %v613_v28 = vld [vmem:[%s9602_s2 + $0x130] sm:$0xff] }
  0x29   :  { %v5150_v29 = vpack.c.bf16 %v779_v26, %v777_v24  ;;  %v5120_v30 = vpack.c.bf16 %v613_v28, %v611_v27  ;;  %v776_v31 = vld [vmem:[%s9602_s2 + $0x220] sm:$0xff]  ;;  %v778_v32 = vld [vmem:[%s9602_s2 + $0x230] sm:$0xff]  ;;  %v781_v34 = vld [vmem:[%s9602_s2 + $0x248] sm:$0xff] }
  0x2a   :  { %5105 = vmatpush1.bf16.msra.mxu1 %v5104_v39  ;;  %v5152_v33 = vpack.c.bf16 %v778_v32, %v776_v31  ;;  %v783_v35 = vld [vmem:[%s9602_s2 + $0x258] sm:$0xff]  ;;  %v945_v36 = vld [vmem:[%s9602_s2 + $0x288] sm:$0xff]  ;;  %v780_v39 = vld [vmem:[%s9602_s2 + $0x240] sm:$0xff] }
  0x2b   :  { %5107 = vmatprep.subr.bf16.mxu1 %v5106_v49  ;;  %5141 = vmatpush1.bf16.msra.mxu0 %v5140_v58  ;;  %v5154_v37 = vpack.c.bf16 %v783_v35, %v781_v34  ;;  %v947_v38 = vld [vmem:[%s9602_s2 + $0x298] sm:$0xff]  ;;  %v782_v40 = vld [vmem:[%s9602_s2 + $0x250] sm:$0xff]  ;;  %v785_v46 = vld [vmem:[%s9602_s2 + $0x268] sm:$0xff] }
  0x2c   :  { %5143 = vmatprep.subr.bf16.mxu0 %v5142_v3  ;;  %v5162_v41 = vpack.c.bf16 %v947_v38, %v945_v36  ;;  %v5156_v45 = vpack.c.bf16 %v782_v40, %v780_v39  ;;  %v787_v47 = vld [vmem:[%s9602_s2 + $0x278] sm:$0xff]  ;;  %v784_v49 = vld [vmem:[%s9602_s2 + $0x260] sm:$0xff]  ;;  %v786_v50 = vld [vmem:[%s9602_s2 + $0x270] sm:$0xff] }
  0x2d   :  { %v5158_v48 = vpack.c.bf16 %v787_v47, %v785_v46  ;;  %v5160_v51 = vpack.c.bf16 %v786_v50, %v784_v49  ;;  %v1140_v52 = vld [vmem:[%s9602_s2 + $0x3c8] sm:$0xff]  ;;  %v1142_v53 = vld [vmem:[%s9602_s2 + $0x3d8] sm:$0xff]  ;;  %v93_v7 = vld [vmem:[#allocation5 + $0x20] sm:$0xff] }
  0x2e   :  { %5109 = vmatpush1.bf16.msra.mxu1 %v5108_v54  ;;  %v5202_v54 = vpack.c.bf16 %v1142_v53, %v1140_v52  ;;  %v91_v56 = vld [vmem:[#allocation5 + $0x8] sm:$0xff]  ;;  %v95_v5 = vld [vmem:[#allocation5 + $0x38] sm:$0xff] }
  0x2f   :  { %5111 = vmatprep.subr.bf16.mxu1 %v5110_v63  ;;  %5145 = vmatpush1.bf16.msra.mxu0 %v5144_v9 }
  0x30   :  { %5147 = vmatprep.subr.bf16.mxu0 %v5146_v17 }
  0x32   :  { %5113 = vmatpush1.bf16.msra.mxu1 %v5112_v8 }
  0x33   :  { %5115 = vmatprep.subr.bf16.mxu1 %v5114_v13  ;;  %5149 = vmatpush1.bf16.msra.mxu0 %v5148_v21 }
  0x34   :  { %5151 = vmatprep.subr.bf16.mxu0 %v5150_v29 }
  0x36   :  { %5117 = vmatpush1.bf16.msra.mxu1 %v5116_v18 }
  0x37   :  { %5119 = vmatprep.subr.bf16.mxu1 %v5118_v25  ;;  %5153 = vmatpush1.bf16.msra.mxu0 %v5152_v33 }
  0x38   :  { %5155 = vmatprep.subr.bf16.mxu0 %v5154_v37 }
  0x3a   :  { %5121 = vmatpush1.bf16.msra.mxu1 %v5120_v30 }
  0x3b   :  { %5163 = vmatprep.subr.bf16.mxu1 %v5162_v41  ;;  %5157 = vmatpush1.bf16.msra.mxu0 %v5156_v45 }
  0x3c   :  { %5159 = vmatprep.subr.bf16.mxu0 %v5158_v48  ;;  %v6402_v48 = vrot.slane %v6272_v59, %v6098_v43 }
  0x3e   :  { %558 = vst.msk [vmem:[#allocation5 + $0x50] sm:$0x3] %vm56_vm14, %v6402_v48 }
  0x3f   :  { %5161 = vmatpush1.bf16.msra.mxu0 %v5160_v51 }
  0x40   :  { %5203 = vmatprep.subr.bf16.mxu0 %v5202_v54 }
  0xdb   :  { %v186_v58 = vpop.f32.mrb[0].mxu0 }
  0xdc   :  { %v203_v60 = vadd.f32 %v186_v58, %v77_v55  ;;  %v188_v61 = vpop.f32.mrb[1].mxu0 }
  0xdd   :  { %v204_v63 = vadd.f32 %v188_v61, %v91_v56 }
  0xdf   :  { %210 = vst.msk [vmem:[#allocation5 + $0x8] sm:$0xff] %vm40_vm6, %v204_v63 }
  0xe0   :  { %v192_v0 = vpop.f32.mrb[2].mxu0 }
  0xe1   :  { %v205_v1 = vadd.f32 %v192_v0, %v77_v55  ;;  %v194_v2 = vpop.f32.mrb[3].mxu0  ;;  %v944_v0 = vld [vmem:[%s9602_s2 + $0x280] sm:$0xff] }
  0xe2   :  { %v206_v3 = vadd.f32 %v194_v2, %v93_v7 }
  0xe3   :  { %v320_v4 = vpop.f32.mrb[0].mxu1 }
  0xe4   :  { %v337_v6 = vadd.f32 %v320_v4, %v203_v60  ;;  %v322_v8 = vpop.f32.mrb[1].mxu1  ;;  %212 = vst.msk [vmem:[#allocation5 + $0x20] sm:$0xff] %vm40_vm6, %v206_v3  ;;  %v198_v9 = vpop.f32.mrb[4].mxu0  ;;  %v949_v4 = vld [vmem:[%s9602_s2 + $0x2a8] sm:$0xff] }
  0xe5   :  { %v207_v44 = vadd.f32 %v198_v9, %v77_v55  ;;  %v200_v10 = vpop.f32.mrb[5].mxu0 }
  0xe6   :  { %v208_v11 = vadd.f32 %v200_v10, %v95_v5  ;;  %v216_v13 = vld [vmem:[#allocation5 + $0x8] sm:$0xff]  ;;  %v951_v5 = vld [vmem:[%s9602_s2 + $0x2b8] sm:$0xff] }
  0xe7   :  { %v326_v12 = vpop.f32.mrb[2].mxu1  ;;  %v338_v16 = vadd.f32 %v322_v8, %v216_v13  ;;  %v950_v13 = vld [vmem:[%s9602_s2 + $0x2b0] sm:$0xff] }
  0xe8   :  { %v339_v14 = vadd.f32 %v326_v12, %v205_v1  ;;  %v328_v15 = vpop.f32.mrb[3].mxu1  ;;  %214 = vst.msk [vmem:[#allocation5 + $0x38] sm:$0xff] %vm40_vm6, %v208_v11  ;;  %v454_v17 = vpop.f32.mrb[6].mxu0  ;;  %v946_v1 = vld [vmem:[%s9602_s2 + $0x290] sm:$0xff]  ;;  %v5166_v12 = vpack.c.bf16 %v951_v5, %v949_v4 }
  0xe9   :  { %v471_v18 = vadd.f32 %v454_v17, %v337_v6  ;;  %v456_v19 = vpop.f32.mrb[7].mxu0  ;;  %344 = vst.msk [vmem:[#allocation5 + $0x8] sm:$0xff] %vm40_vm6, %v338_v16  ;;  %v5164_v9 = vpack.c.bf16 %v946_v1, %v944_v0  ;;  %v953_v16 = vld [vmem:[%s9602_s2 + $0x2c8] sm:$0xff]  ;;  %v955_v17 = vld [vmem:[%s9602_s2 + $0x2d8] sm:$0xff] }
  0xeb   :  { %v332_v20 = vpop.f32.mrb[4].mxu1  ;;  %v218_v21 = vld [vmem:[#allocation5 + $0x20] sm:$0xff]  ;;  %v487_v24 = vmax.f32 %v471_v18, 0.0 }
  0xec   :  { %v341_v22 = vadd.f32 %v332_v20, %v207_v44  ;;  %v334_v23 = vpop.f32.mrb[5].mxu1  ;;  %v340_v25 = vadd.f32 %v328_v15, %v218_v21  ;;  %v460_v26 = vpop.f32.mrb[8].mxu0  ;;  %v948_v44 = vld [vmem:[%s9602_s2 + $0x2a0] sm:$0xff] }
  0xed   :  { %v473_v27 = vadd.f32 %v460_v26, %v339_v14  ;;  %v495_v28 = vrot.slane %v487_v24, 6  ;;  %v462_v29 = vpop.f32.mrb[9].mxu0  ;;  %v5168_v20 = vpack.c.bf16 %v950_v13, %v948_v44  ;;  %v965_v13 = vld [vmem:[%s9602_s2 + $0x328] sm:$0xff] }
  0xee   :  { %346 = vst.msk [vmem:[#allocation5 + $0x20] sm:$0xff] %vm40_vm6, %v340_v25  ;;  %v5170_v25 = vpack.c.bf16 %v955_v17, %v953_v16 }
  0xef   :  { %v220_v30 = vld [vmem:[#allocation5 + $0x38] sm:$0xff]  ;;  %479 = vst [vmem:[#allocation5 + $0x18] sm:$0xff] %v473_v27  ;;  %505 = vst [vmem:[#allocation2] sm:$0xfc] %v495_v28  ;;  %v1139_v27 = vld [vmem:[%s9602_s2 + $0x3c0] sm:$0xff] }
  0xf0   :  { %v342_v31 = vadd.f32 %v334_v23, %v220_v30  ;;  %v466_v32 = vpop.f32.mrb[10].mxu0  ;;  %v350_v33 = vld [vmem:[#allocation5 + $0x8] sm:$0xff]  ;;  %v954_v23 = vld [vmem:[%s9602_s2 + $0x2d0] sm:$0xff] }
  0xf1   :  { %v475_v34 = vadd.f32 %v466_v32, %v341_v22  ;;  %v468_v35 = vpop.f32.mrb[11].mxu0  ;;  %v472_v36 = vadd.f32 %v456_v19, %v350_v33  ;;  %v952_v22 = vld [vmem:[%s9602_s2 + $0x2c0] sm:$0xff]  ;;  %v959_v32 = vld [vmem:[%s9602_s2 + $0x2f8] sm:$0xff] }
  0xf2   :  { %348 = vst.msk [vmem:[#allocation5 + $0x38] sm:$0xff] %vm40_vm6, %v342_v31  ;;  %v957_v31 = vld [vmem:[%s9602_s2 + $0x2e8] sm:$0xff] }
  0xf3   :  { %v517_v37 = vmax.f32 %v475_v34, 0.0  ;;  %478 = vst.msk [vmem:[#allocation5 + $0x8] sm:$0xff] %vm40_vm6, %v472_v36  ;;  %v1144_v36 = vld [vmem:[%s9602_s2 + $0x3e8] sm:$0xff] }
  0xf5   :  { %v352_v38 = vld [vmem:[#allocation5 + $0x20] sm:$0xff]  ;;  %v524_v39 = vrot.slane %v517_v37, 4  ;;  %v1146_v37 = vld [vmem:[%s9602_s2 + $0x3f8] sm:$0xff] }
  0xf6   :  { %v485_v40 = vld [vmem:[#allocation5 + $0x18] sm:$0x7]  ;;  %v511_v41 = vld [vmem:[#allocation5 + $0x18] sm:$0xe0]  ;;  %v474_v45 = vadd.f32 %v462_v29, %v352_v38  ;;  %v567_v15 = vld [vmem:[#allocation2] sm:$0xff] }
  0xf7   :  { %v489_v46 = vmax.f32 %v485_v40, 0.0  ;;  %553 = vst [vmem:[#allocation5 + $0x18] sm:$0xff] %v6282_v62  ;;  %536 = vst [vmem:[#allocation2 + $0x30] sm:$0xf] %v524_v39  ;;  %v515_v47 = vmax.f32 %v511_v41, 0.0  ;;  %v956_v41 = vld [vmem:[%s9602_s2 + $0x2e0] sm:$0xff] }
  0xf8   :  { %480 = vst.msk [vmem:[#allocation5 + $0x20] sm:$0xff] %vm40_vm6, %v474_v45  ;;  %v740_v26 = vld [vmem:[#allocation2] sm:$0xfe]  ;;  %v958_v45 = vld [vmem:[%s9602_s2 + $0x2f0] sm:$0xff] }
  0xf9   :  { %v497_v49 = vrot.slane %v489_v46, 6  ;;  %v354_v50 = vld [vmem:[#allocation5 + $0x38] sm:$0xff]  ;;  %v523_v51 = vrot.slane %v515_v47, 4  ;;  %v797_v38 = vrot.slane %v740_v26, 1  ;;  %v5174_v47 = vpack.c.bf16 %v959_v32, %v957_v31  ;;  %v964_v26 = vld [vmem:[%s9602_s2 + $0x320] sm:$0xff]  ;;  %v1153_v32 = vld [vmem:[%s9602_s2 + $0x430] sm:$0xff] }
  0xfa   :  { %v476_v52 = vadd.f32 %v468_v35, %v354_v50  ;;  %v484_v54 = vld [vmem:[#allocation5 + $0x8] sm:$0xff]  ;;  %v1145_v50 = vld [vmem:[%s9602_s2 + $0x3f0] sm:$0xff]  ;;  %v5176_v0 = vpack.c.bf16 %v958_v45, %v956_v41  ;;  %v1151_v31 = vld [vmem:[%s9602_s2 + $0x420] sm:$0xff] }
  0xfb   :  { %v498_v53 = vsel %vm113_vm0, %v495_v28, %v497_v49  ;;  %v525_v55 = vsel %vm366_vm5, %v523_v51, %v524_v39  ;;  %v488_v56 = vmax.f32 %v484_v54, 0.0  ;;  %552 = vst.msk [vmem:[#allocation5 + $0x8] sm:$0xff] %vm40_vm6, %v6402_v48  ;;  %v1141_v28 = vld [vmem:[%s9602_s2 + $0x3d0] sm:$0xff]  ;;  %v5172_v39 = vpack.c.bf16 %v954_v23, %v952_v22  ;;  %v1143_v49 = vld [vmem:[%s9602_s2 + $0x3e0] sm:$0xff] }
  0xfc   :  { %508 = vst [vmem:[#allocation2 + $0x10] sm:$0x1f] %v498_v53  ;;  %482 = vst.msk [vmem:[#allocation5 + $0x38] sm:$0xff] %vm40_vm6, %v476_v52  ;;  %v5204_v40 = vpack.c.bf16 %v1141_v28, %v1139_v27  ;;  %v5206_v54 = vpack.c.bf16 %v1146_v37, %v1144_v36  ;;  %v5208_v1 = vpack.c.bf16 %v1145_v50, %v1143_v49  ;;  %v969_v36 = vld [vmem:[%s9602_s2 + $0x348] sm:$0xff]  ;;  %v971_v37 = vld [vmem:[%s9602_s2 + $0x358] sm:$0xff] }
  0xfd   :  { %533 = vst [vmem:[#allocation2 + $0x20] sm:$0xfe] %v525_v55  ;;  %v496_v59 = vrot.slane %v488_v56, 6  ;;  %v5216_v45 = vpack.c.bf16 %v1153_v32, %v1151_v31  ;;  %v970_v49 = vld [vmem:[%s9602_s2 + $0x350] sm:$0xff]  ;;  %v5186_v50 = vpack.c.bf16 %v971_v37, %v969_v36  ;;  %v1172_v36 = vld [vmem:[%s9602_s2 + $0x4c8] sm:$0xff]  ;;  %v1174_v37 = vld [vmem:[%s9602_s2 + $0x4d8] sm:$0xff] }
  0xff   :  { %v486_v62 = vld [vmem:[#allocation5 + $0x20] sm:$0x7]  ;;  %v512_v58 = vld [vmem:[#allocation5 + $0x20] sm:$0xe0]  ;;  %507 = vst.msk [vmem:[#allocation2 + $0x8] sm:$0xfc] %vm506_vm8, %v496_v59 }
 0x100   :  { %v490_v60 = vmax.f32 %v486_v62, 0.0  ;;  %554 = vst.msk [vmem:[#allocation5 + $0x20] sm:$0xff] %vm40_vm6, %v6402_v48  ;;  %v516_v61 = vmax.f32 %v512_v58, 0.0  ;;  %v963_v62 = vld [vmem:[%s9602_s2 + $0x318] sm:$0xff]  ;;  %vm2491_vm8 = vcmask 519168  }
 0x102   :  { %v499_v63 = vrot.slane %v490_v60, 6  ;;  %v526_v6 = vrot.slane %v516_v61, 4  ;;  %v1148_v60 = vld [vmem:[%s9602_s2 + $0x408] sm:$0xff]  ;;  %v1150_v61 = vld [vmem:[%s9602_s2 + $0x418] sm:$0xff] }
 0x103   :  { %v514_v7 = vld [vmem:[#allocation5 + $0x38] sm:$0xff]  ;;  %v6429_v10 = vld [vmem:[#allocation2 + $0x10] sm:$0xff]  ;;  %v5210_v17 = vpack.c.bf16 %v1150_v61, %v1148_v60 }
 0x104   :  { %v500_v2 = vsel %vm113_vm0, %v496_v59, %v499_v63  ;;  %v518_v3 = vmax.f32 %v514_v7, 0.0  ;;  %556 = vst.msk [vmem:[#allocation5 + $0x38] sm:$0xff] %vm40_vm6, %v6402_v48  ;;  %v6434_v14 = vld [vmem:[#allocation2 + $0x20] sm:$0xff]  ;;  %v1384_v19 = vrot.slane %v6429_v10, 4  ;;  %v798_v30 = vrot.slane %v6429_v10, 1  ;;  %v961_v59 = vld [vmem:[%s9602_s2 + $0x308] sm:$0xff] }
 0x105   :  { %510 = vst.msk [vmem:[#allocation2 + $0x18] sm:$0x1f] %vm509_vm9, %v500_v2  ;;  %v1389_v24 = vrot.slane %v6434_v14, 4  ;;  %v803_v55 = vrot.slane %v6434_v14, 1  ;;  %v960_v63 = vld [vmem:[%s9602_s2 + $0x300] sm:$0xff]  ;;  %v1627_v48 = vld [vmem:[%s9603_s3 + $0x18] sm:$0xff] }
 0x106   :  { %v527_v8 = vrot.slane %v518_v3, 4  ;;  %v568_v11 = vld [vmem:[#allocation2 + $0x8] sm:$0xff]  ;;  %v799_v53 = vsel %vm796_vm12, %v797_v38, %v798_v30  ;;  %v962_v3 = vld [vmem:[%s9602_s2 + $0x310] sm:$0xff]  ;;  %vm2531_vm9 = vcmask 523270  }
 0x107   :  { %4777 = vmatprep.mubr.msk.f32.mxu1 %vm40_vm6, %v568_v11  ;;  %v741_v21 = vld [vmem:[#allocation2 + $0x8] sm:$0xfe]  ;;  %v6474_v33 = vsel %vm366_vm5, %v1384_v19, %v1389_v24  ;;  %v804_v44 = vsel %vm796_vm12, %v798_v30, %v803_v55  ;;  %v5180_v23 = vpack.c.bf16 %v962_v3, %v960_v63  ;;  %v966_v30 = vld [vmem:[%s9602_s2 + $0x330] sm:$0xff]  ;;  %v1159_v3 = vld [vmem:[%s9602_s2 + $0x460] sm:$0xff] }
 0x108   :  { %v528_v18 = vsel %vm366_vm5, %v526_v6, %v527_v8  ;;  %538 = vst.msk [vmem:[#allocation2 + $0x38] sm:$0xf] %vm537_vm10, %v527_v8  ;;  %692 = vmatmul.mubr.f32.vlgmr.msra.gmra.mrb[6].mxu1 %v567_v15  ;;  %v800_v34 = vrot.slane %v741_v21, 1  ;;  %v937_v2 = vld [vmem:[#allocation2 + $0x8] sm:$0xfc]  ;;  %v1147_v8 = vld [vmem:[%s9602_s2 + $0x400] sm:$0xff]  ;;  %v5184_v41 = vpack.c.bf16 %v966_v30, %v964_v26 }
 0x109   :  { %535 = vst.msk [vmem:[#allocation2 + $0x28] sm:$0xfe] %vm534_vm11, %v528_v18  ;;  %5165 = vmatpush1.bf16.msra.mxu1 %v5164_v9  ;;  %v746_v6 = vld [vmem:[#allocation2 + $0x30] sm:$0x7]  ;;  %v967_v15 = vld [vmem:[%s9602_s2 + $0x338] sm:$0xff]  ;;  %v995_v16 = vrot.slane %v937_v2, 2 }
 0x10a   :  { %5167 = vmatprep.subr.bf16.mxu1 %v5166_v12  ;;  %v1149_v9 = vld [vmem:[%s9602_s2 + $0x410] sm:$0xff]  ;;  %v5178_v12 = vpack.c.bf16 %v963_v62, %v961_v59  ;;  %v1152_v18 = vld [vmem:[%s9602_s2 + $0x428] sm:$0xff]  ;;  %v807_v22 = vrot.slane %v746_v6, 1  ;;  %v5182_v28 = vpack.c.bf16 %v967_v15, %v965_v13  ;;  %v976_v13 = vld [vmem:[%s9602_s2 + $0x380] sm:$0xff] }
 0x10b   :  { %v573_v21 = vld [vmem:[#allocation2 + $0x30] sm:$0x3]  ;;  %v1132_v38 = vld [vmem:[#allocation2 + $0x8] sm:$0xf8] }
 0x10c   :  { %v6460_v29 = vld [vmem:[#allocation2 + $0x18] sm:$0xff]  ;;  %v1191_v59 = vrot.slane %v1132_v38, 3  ;;  %v977_v6 = vld [vmem:[%s9602_s2 + $0x388] sm:$0xff]  ;;  %v978_v15 = vld [vmem:[%s9602_s2 + $0x390] sm:$0xff] }
 0x10d   :  { %4778 = vmatprep.mubr.msk.f32.mxu1 %vm40_vm6, %v6460_v29  ;;  %v801_v35 = vrot.slane %v6460_v29, 1  ;;  %5169 = vmatpush1.bf16.msra.mxu1 %v5168_v20  ;;  %v996_v5 = vrot.slane %v6460_v29, 2  ;;  %v1154_v20 = vld [vmem:[%s9602_s2 + $0x438] sm:$0xff]  ;;  %v5196_v26 = vpack.c.bf16 %v978_v15, %v976_v13  ;;  %v982_v30 = vld [vmem:[%s9602_s2 + $0x3b0] sm:$0xff]  ;;  %v1336_v38 = vld [vmem:[%s9602_s2 + $0x508] sm:$0xff] }
 0x10e   :  { %698 = vmatmul.mubr.f32.gmra.mrb[8].mxu1 %v6429_v10  ;;  %5171 = vmatprep.subr.bf16.mxu1 %v5170_v25  ;;  %v5212_v25 = vpack.c.bf16 %v1149_v9, %v1147_v8  ;;  %v979_v8 = vld [vmem:[%s9602_s2 + $0x398] sm:$0xff]  ;;  %v1164_v9 = vld [vmem:[%s9602_s2 + $0x488] sm:$0xff] }
 0x10f   :  { %v802_v46 = vsel %vm796_vm12, %v800_v34, %v801_v35  ;;  %v6499_v51 = vld [vmem:[#allocation2 + $0x38] sm:$0x7]  ;;  %v997_v27 = vsel %vm232_vm4, %v995_v16, %v996_v5  ;;  %v808_v34 = vsel %vm796_vm12, %v803_v55, %v807_v22  ;;  %v973_v55 = vld [vmem:[%s9602_s2 + $0x368] sm:$0xff]  ;;  %v5194_v16 = vpack.c.bf16 %v979_v8, %v977_v6 }
 0x110   :  { %4781 = vmatprep.mubr.msk.f32.mxu0 %vm40_vm6, %v802_v46  ;;  %v6502_v52 = vld [vmem:[#allocation2 + $0x28] sm:$0xff]  ;;  %v809_v56 = vrot.slane %v6499_v51, 1  ;;  %v574_v7 = vld [vmem:[#allocation2 + $0x38] sm:$0x3]  ;;  %v1192_v46 = vrot.slane %v6460_v29, 3  ;;  %v998_v6 = vrot.slane %v6434_v14, 2 }
 0x111   :  { %4779 = vmatprep.mubr.msk.f32.mxu1 %vm40_vm6, %v6502_v52  ;;  %888 = vmatmul.mubr.f32.vlgmr.msra.gmra.mrb[12].mxu0 %v799_v53  ;;  %v805_v58 = vrot.slane %v6502_v52, 1  ;;  %v1155_v53 = vld [vmem:[%s9602_s2 + $0x440] sm:$0xff]  ;;  %v975_v51 = vld [vmem:[%s9602_s2 + $0x378] sm:$0xff]  ;;  %v1344_v13 = vld [vmem:[%s9602_s2 + $0x548] sm:$0xff] }
 0x112   :  { %5173 = vmatpush1.bf16.msra.mxu1 %v5172_v39  ;;  %5205 = vmatpush1.bf16.msra.mxu0 %v5204_v40  ;;  %v1156_v39 = vld [vmem:[%s9602_s2 + $0x448] sm:$0xff]  ;;  %v1158_v40 = vld [vmem:[%s9602_s2 + $0x458] sm:$0xff]  ;;  %v1193_v60 = vsel %vm1187_vm13, %v1191_v59, %v1192_v46  ;;  %v1337_v59 = vld [vmem:[%s9602_s2 + $0x510] sm:$0xff] }
 0x113   :  { %704 = vmatmul.mubr.f32.gmra.mrb[10].mxu1 %v6434_v14  ;;  %v806_v4 = vsel %vm796_vm12, %v801_v35, %v805_v58  ;;  %5175 = vmatprep.subr.bf16.mxu1 %v5174_v47  ;;  %v810_v11 = vsel %vm796_vm12, %v805_v58, %v809_v56  ;;  %v5214_v35 = vpack.c.bf16 %v1154_v20, %v1152_v18  ;;  %v968_v47 = vld [vmem:[%s9602_s2 + $0x340] sm:$0xff]  ;;  %v1162_v58 = vld [vmem:[%s9602_s2 + $0x478] sm:$0xff]  ;;  %v1165_v20 = vld [vmem:[%s9602_s2 + $0x490] sm:$0xff] }
 0x114   :  { %4782 = vmatprep.mubr.msk.f32.mxu0 %vm40_vm6, %v806_v4  ;;  %5207 = vmatprep.subr.bf16.mxu0 %v5206_v54  ;;  %v1157_v54 = vld [vmem:[%s9602_s2 + $0x450] sm:$0xff]  ;;  %v5218_v62 = vpack.c.bf16 %v1158_v40, %v1156_v39  ;;  %v5188_v61 = vpack.c.bf16 %v970_v49, %v968_v47  ;;  %v1163_v18 = vld [vmem:[%s9602_s2 + $0x480] sm:$0xff]  ;;  %v1338_v39 = vld [vmem:[%s9602_s2 + $0x518] sm:$0xff]  ;;  %v5234_v49 = vpack.c.bf16 %v1174_v37, %v1172_v36 }
 0x115   :  { %4780 = vmatprep.mubr.msk.f32.mxu1 %vm40_vm6, %v574_v7  ;;  %894 = vmatmul.mubr.f32.gmra.mrb[14].mxu0 %v804_v44  ;;  %v5220_v63 = vpack.c.bf16 %v1157_v54, %v1155_v53  ;;  %v972_v7 = vld [vmem:[%s9602_s2 + $0x360] sm:$0xff]  ;;  %v1161_v4 = vld [vmem:[%s9602_s2 + $0x470] sm:$0xff]  ;;  %v1166_v44 = vld [vmem:[%s9602_s2 + $0x498] sm:$0xff] }
 0x116   :  { %5177 = vmatpush1.bf16.msra.mxu1 %v5176_v0  ;;  %5209 = vmatpush1.bf16.msra.mxu0 %v5208_v1  ;;  %v974_v0 = vld [vmem:[%s9602_s2 + $0x370] sm:$0xff]  ;;  %v5190_v1 = vpack.c.bf16 %v975_v51, %v973_v55  ;;  %v936_v47 = vld [vmem:[#allocation2] sm:$0xfc]  ;;  %v993_v55 = vrot.slane %v6429_v10, 2  ;;  %v1178_v51 = vld [vmem:[%s9602_s2 + $0x4f8] sm:$0xff] }
 0x117   :  { %710 = vmatmul.mubr.f32.gmra.mrb[12].mxu1 %v573_v21  ;;  %4783 = vmatprep.mubr.msk.f32.mxu0 %vm40_vm6, %v810_v11  ;;  %v5192_v11 = vpack.c.bf16 %v974_v0, %v972_v7  ;;  %v981_v21 = vld [vmem:[%s9602_s2 + $0x3a8] sm:$0xff]  ;;  %v1173_v53 = vld [vmem:[%s9602_s2 + $0x4d0] sm:$0xff]  ;;  %v1335_v54 = vld [vmem:[%s9602_s2 + $0x500] sm:$0xff] }
 0x118   :  { %4785 = vmatprep.mubr.msk.f32.mxu1 %vm40_vm6, %v997_v27  ;;  %5179 = vmatprep.subr.bf16.mxu1 %v5178_v12  ;;  %v5224_v12 = vpack.c.bf16 %v1161_v4, %v1159_v3  ;;  %v5228_v27 = vpack.c.bf16 %v1165_v20, %v1163_v18  ;;  %v943_v7 = vld [vmem:[#allocation2 + $0x38] sm:$0xf]  ;;  %v5244_v0 = vpack.c.bf16 %v1337_v59, %v1335_v54  ;;  %v1177_v3 = vld [vmem:[%s9602_s2 + $0x4f0] sm:$0xff]  ;;  %v1131_v20 = vld [vmem:[#allocation2] sm:$0xf8] }
 0x119   :  { %5211 = vmatprep.subr.bf16.mxu0 %v5210_v17  ;;  %900 = vmatmul.mubr.f32.gmra.mrb[16].mxu0 %v808_v34  ;;  %v5226_v17 = vpack.c.bf16 %v1166_v44, %v1164_v9  ;;  %v1167_v34 = vld [vmem:[%s9602_s2 + $0x4a0] sm:$0xff]  ;;  %v1341_v44 = vld [vmem:[%s9602_s2 + $0x530] sm:$0xff]  ;;  %v1346_v15 = vld [vmem:[%s9602_s2 + $0x558] sm:$0xff] }
 0x11a   :  { %5181 = vmatpush1.bf16.msra.mxu1 %v5180_v23  ;;  %5213 = vmatpush1.bf16.msra.mxu0 %v5212_v25  ;;  %v1168_v23 = vld [vmem:[%s9602_s2 + $0x4a8] sm:$0xff]  ;;  %v1170_v25 = vld [vmem:[%s9602_s2 + $0x4b8] sm:$0xff]  ;;  %v1339_v9 = vld [vmem:[%s9602_s2 + $0x520] sm:$0xff] }
 0x11b   :  { %4784 = vmatprep.mubr.msk.f32.mxu0 %vm40_vm6, %v809_v56  ;;  %5183 = vmatprep.subr.bf16.mxu1 %v5182_v28  ;;  %v1160_v56 = vld [vmem:[%s9602_s2 + $0x468] sm:$0xff]  ;;  %v980_v28 = vld [vmem:[%s9602_s2 + $0x3a0] sm:$0xff]  ;;  %v5230_v32 = vpack.c.bf16 %v1170_v25, %v1168_v23  ;;  %v942_v18 = vld [vmem:[#allocation2 + $0x30] sm:$0xf] }
 0x11c   :  { %5215 = vmatprep.subr.bf16.mxu0 %v5214_v35  ;;  %v5222_v2 = vpack.c.bf16 %v1162_v58, %v1160_v56  ;;  %v1169_v35 = vld [vmem:[%s9602_s2 + $0x4b0] sm:$0xff]  ;;  %v5200_v40 = vpack.c.bf16 %v982_v30, %v980_v28  ;;  %v1000_v56 = vrot.slane %v6502_v52, 2  ;;  %v1340_v58 = vld [vmem:[%s9602_s2 + $0x528] sm:$0xff]  ;;  %v1343_v23 = vld [vmem:[%s9602_s2 + $0x540] sm:$0xff] }
 0x11d   :  { %906 = vmatmul.mubr.f32.gmra.mrb[18].mxu0 %v807_v22  ;;  %v983_v22 = vld [vmem:[%s9602_s2 + $0x3b8] sm:$0xff]  ;;  %v1345_v25 = vld [vmem:[%s9602_s2 + $0x550] sm:$0xff]  ;;  %v1348_v28 = vld [vmem:[%s9602_s2 + $0x568] sm:$0xff] }
 0x11e   :  { %5185 = vmatpush1.bf16.msra.mxu1 %v5184_v41  ;;  %5217 = vmatpush1.bf16.msra.mxu0 %v5216_v45  ;;  %v5198_v31 = vpack.c.bf16 %v983_v22, %v981_v21  ;;  %v5232_v41 = vpack.c.bf16 %v1169_v35, %v1167_v34  ;;  %v1171_v45 = vld [vmem:[%s9602_s2 + $0x4c0] sm:$0xff]  ;;  %v1189_v21 = vrot.slane %v6429_v10, 3  ;;  %v5250_v22 = vpack.c.bf16 %v1346_v15, %v1344_v13  ;;  %v1350_v30 = vld [vmem:[%s9602_s2 + $0x578] sm:$0xff]  ;;  %v1361_v13 = vld [vmem:[%s9602_s2 + $0x5d0] sm:$0xff] }
 0x11f   :  { %4789 = vmatprep.mubr.msk.f32.mxu0 %vm40_vm6, %v1193_v60  ;;  %5187 = vmatprep.subr.bf16.mxu1 %v5186_v50  ;;  %v5242_v50 = vpack.c.bf16 %v1338_v39, %v1336_v38  ;;  %v1342_v60 = vld [vmem:[%s9602_s2 + $0x538] sm:$0xff]  ;;  %v5252_v35 = vpack.c.bf16 %v1345_v25, %v1343_v23  ;;  %v1194_v38 = vrot.slane %v6434_v14, 3  ;;  %v5254_v39 = vpack.c.bf16 %v1350_v30, %v1348_v28  ;;  %v1364_v15 = vld [vmem:[%s9602_s2 + $0x5e8] sm:$0xff]  ;;  %v1628_v14 = vld [vmem:[%s9603_s3 + $0x20] sm:$0xff] }
 0x120   :  { %5219 = vmatprep.subr.bf16.mxu0 %v5218_v62  ;;  %v1176_v62 = vld [vmem:[%s9602_s2 + $0x4e8] sm:$0xff]  ;;  %v5246_v8 = vpack.c.bf16 %v1342_v60, %v1340_v58  ;;  %v1138_v34 = vld [vmem:[#allocation2 + $0x38] sm:$0x1f]  ;;  %v1353_v58 = vld [vmem:[%s9602_s2 + $0x590] sm:$0xff] }
 0x121   :  { %v1354_v54 = vld [vmem:[%s9602_s2 + $0x598] sm:$0xff]  ;;  %v1372_v28 = vld [vmem:[%s9602_s2 + $0x628] sm:$0xff] }
 0x122   :  { %5189 = vmatpush1.bf16.msra.mxu1 %v5188_v61  ;;  %5221 = vmatpush1.bf16.msra.mxu0 %v5220_v63  ;;  %v992_v61 = vrot.slane %v936_v47, 2  ;;  %v5236_v63 = vpack.c.bf16 %v1173_v53, %v1171_v45  ;;  %v1328_v45 = vld [vmem:[#allocation2 + $0x8] sm:$0xf0]  ;;  %v1374_v30 = vld [vmem:[%s9602_s2 + $0x638] sm:$0xff] }
 0x123   :  { %5191 = vmatprep.subr.bf16.mxu1 %v5190_v1  ;;  %5223 = vmatprep.subr.bf16.mxu0 %v5222_v2  ;;  %v5238_v1 = vpack.c.bf16 %v1178_v51, %v1176_v62  ;;  %v1175_v2 = vld [vmem:[%s9602_s2 + $0x4e0] sm:$0xff]  ;;  %v1352_v53 = vld [vmem:[%s9602_s2 + $0x588] sm:$0xff]  ;;  %v1386_v59 = vrot.slane %v1328_v45, 4  ;;  %v1137_v62 = vld [vmem:[#allocation2 + $0x30] sm:$0x1f] }
 0x124   :  { %v994_v4 = vsel %vm232_vm4, %v992_v61, %v993_v55  ;;  %v5258_v51 = vpack.c.bf16 %v1354_v54, %v1352_v53  ;;  %v1626_v54 = vld [vmem:[%s9603_s3 + $0x10] sm:$0xff] }
 0x126   :  { %5193 = vmatpush1.bf16.msra.mxu1 %v5192_v11  ;;  %5225 = vmatpush1.bf16.msra.mxu0 %v5224_v12  ;;  %v1001_v11 = vsel %vm232_vm4, %v996_v5, %v1000_v56  ;;  %v1004_v12 = vrot.slane %v943_v7, 2  ;;  %v999_v5 = vsel %vm232_vm4, %v993_v55, %v998_v6  ;;  %v1358_v7 = vld [vmem:[%s9602_s2 + $0x5b8] sm:$0xff] }
 0x127   :  { %5195 = vmatprep.subr.bf16.mxu1 %v5194_v16  ;;  %5227 = vmatprep.subr.bf16.mxu0 %v5226_v17  ;;  %v5240_v16 = vpack.c.bf16 %v1177_v3, %v1175_v2  ;;  %v5248_v17 = vpack.c.bf16 %v1341_v44, %v1339_v9  ;;  %v1362_v9 = vld [vmem:[%s9602_s2 + $0x5d8] sm:$0xff] }
 0x12a   :  { %5197 = vmatpush1.bf16.msra.mxu1 %v5196_v26  ;;  %5229 = vmatpush1.bf16.msra.mxu0 %v5228_v27  ;;  %v1005_v26 = vsel %vm232_vm4, %v1000_v56, %v1004_v12  ;;  %v1196_v27 = vrot.slane %v6502_v52, 3  ;;  %v1351_v56 = vld [vmem:[%s9602_s2 + $0x580] sm:$0xff] }
 0x12b   :  { %5199 = vmatprep.subr.bf16.mxu1 %v5198_v31  ;;  %5231 = vmatprep.subr.bf16.mxu0 %v5230_v32  ;;  %v1002_v31 = vrot.slane %v942_v18, 2  ;;  %v1188_v32 = vrot.slane %v1131_v20, 3  ;;  %v1363_v20 = vld [vmem:[%s9602_s2 + $0x5e0] sm:$0xff] }
 0x12c   :  { %v1197_v47 = vsel %vm1187_vm13, %v1192_v46, %v1196_v27  ;;  %v1195_v46 = vsel %vm1187_vm13, %v1189_v21, %v1194_v38 }
 0x12d   :  { %v1003_v36 = vsel %vm232_vm4, %v998_v6, %v1002_v31  ;;  %v1190_v37 = vsel %vm1187_vm13, %v1188_v32, %v1189_v21  ;;  %v1357_v6 = vld [vmem:[%s9602_s2 + $0x5b0] sm:$0xff]  ;;  %v1368_v21 = vld [vmem:[%s9602_s2 + $0x608] sm:$0xff]  ;;  %v5278_v32 = vpack.c.bf16 %v1374_v30, %v1372_v28 }
 0x12e   :  { %5201 = vmatpush1.bf16.msra.mxu1 %v5200_v40  ;;  %5233 = vmatpush1.bf16.msra.mxu0 %v5232_v41  ;;  %v1347_v40 = vld [vmem:[%s9602_s2 + $0x560] sm:$0xff]  ;;  %v1349_v41 = vld [vmem:[%s9602_s2 + $0x570] sm:$0xff] }
 0x12f   :  { %5235 = vmatprep.subr.bf16.mxu0 %v5234_v49  ;;  %5243 = vmatprep.subr.bf16.mxu1 %v5242_v50  ;;  %v1200_v49 = vrot.slane %v1138_v34, 3  ;;  %v1387_v50 = vrot.slane %v6460_v29, 4  ;;  %v5256_v55 = vpack.c.bf16 %v1349_v41, %v1347_v40  ;;  %v1371_v34 = vld [vmem:[%s9602_s2 + $0x620] sm:$0xff]  ;;  %v1334_v40 = vld [vmem:[#allocation2 + $0x38] sm:$0x3f]  ;;  %v1625_v29 = vld [vmem:[%s9603_s3 + $0x8] sm:$0xff] }
 0x130   :  { %v1650_v28 = vld [vmem:[%s9603_s3 + $0xd0] sm:$0xff] }
 0x131   :  { %1083 = vmatmul.mubr.f32.vlgmr.msra.gmra.mrb[14].mxu1 %v994_v4  ;;  %v1201_v60 = vsel %vm1187_vm13, %v1196_v27, %v1200_v49  ;;  %v1388_v61 = vsel %vm366_vm5, %v1386_v59, %v1387_v50  ;;  %v1355_v4 = vld [vmem:[%s9602_s2 + $0x5a0] sm:$0xff]  ;;  %v1369_v27 = vld [vmem:[%s9602_s2 + $0x610] sm:$0xff] }
 0x132   :  { %4786 = vmatprep.mubr.msk.f32.mxu1 %vm40_vm6, %v1001_v11  ;;  %5237 = vmatpush1.bf16.msra.mxu0 %v5236_v63  ;;  %v1356_v63 = vld [vmem:[%s9602_s2 + $0x5a8] sm:$0xff]  ;;  %v5264_v44 = vpack.c.bf16 %v1357_v6, %v1355_v4  ;;  %v1639_v6 = vld [vmem:[%s9603_s3 + $0x78] sm:$0xff] }
 0x133   :  { %5245 = vmatpush1.bf16.msra.mxu1 %v5244_v0  ;;  %5239 = vmatprep.subr.bf16.mxu0 %v5238_v1  ;;  %v1198_v0 = vrot.slane %v1137_v62, 3  ;;  %v5260_v1 = vpack.c.bf16 %v1353_v58, %v1351_v56  ;;  %v5262_v3 = vpack.c.bf16 %v1358_v7, %v1356_v63  ;;  %v1630_v56 = vld [vmem:[%s9603_s3 + $0x30] sm:$0xff]  ;;  %v1635_v63 = vld [vmem:[%s9603_s3 + $0x58] sm:$0xff] }
 0x134   :  { %5247 = vmatprep.subr.bf16.mxu1 %v5246_v8  ;;  %v1360_v8 = vld [vmem:[%s9602_s2 + $0x5c8] sm:$0xff] }
 0x135   :  { %1089 = vmatmul.mubr.f32.gmra.mrb[16].mxu1 %v999_v5  ;;  %v1199_v2 = vsel %vm1187_vm13, %v1194_v38, %v1198_v0  ;;  %v5266_v11 = vpack.c.bf16 %v1362_v9, %v1360_v8  ;;  %v1365_v5 = vld [vmem:[%s9602_s2 + $0x5f0] sm:$0xff]  ;;  %v1391_v38 = vrot.slane %v6502_v52, 4  ;;  %v1641_v9 = vld [vmem:[%s9603_s3 + $0x88] sm:$0xff] }
 0x136   :  { %4787 = vmatprep.mubr.msk.f32.mxu1 %vm40_vm6, %v1005_v26  ;;  %5241 = vmatpush1.bf16.msra.mxu0 %v5240_v16  ;;  %v1366_v16 = vld [vmem:[%s9602_s2 + $0x5f8] sm:$0xff]  ;;  %v5272_v23 = vpack.c.bf16 %v1365_v5, %v1363_v20  ;;  %v1367_v26 = vld [vmem:[%s9602_s2 + $0x600] sm:$0xff]  ;;  %v1638_v8 = vld [vmem:[%s9603_s3 + $0x70] sm:$0xff] }
 0x137   :  { %5249 = vmatpush1.bf16.msra.mxu1 %v5248_v17  ;;  %v5270_v18 = vpack.c.bf16 %v1366_v16, %v1364_v15  ;;  %v1392_v45 = vsel %vm366_vm5, %v1387_v50, %v1391_v38  ;;  %v5917_v50 = vmov 0.0|0.0   ;;  %v1642_v15 = vld [vmem:[%s9603_s3 + $0x90] sm:$0xff]  ;;  %v1647_v20 = vld [vmem:[%s9603_s3 + $0xb8] sm:$0xff] }
 0x138   :  { %5251 = vmatprep.subr.bf16.mxu1 %v5250_v22  ;;  %v1370_v22 = vld [vmem:[%s9602_s2 + $0x618] sm:$0xff] }
 0x139   :  { %1095 = vmatmul.mubr.f32.gmra.mrb[18].mxu1 %v1003_v36  ;;  %1279 = vmatmul.mubr.f32.vlgmr.msra.gmra.mrb[20].mxu0 %v1190_v37  ;;  %v5274_v25 = vpack.c.bf16 %v1370_v22, %v1368_v21  ;;  %v1327_v37 = vld [vmem:[#allocation2] sm:$0xf0]  ;;  %v1649_v22 = vld [vmem:[%s9603_s3 + $0xc8] sm:$0xff] }
 0x13a   :  { %4788 = vmatprep.mubr.msk.f32.mxu1 %vm40_vm6, %v1004_v12  ;;  %4790 = vmatprep.mubr.msk.f32.mxu0 %vm40_vm6, %v1197_v47  ;;  %v1359_v12 = vld [vmem:[%s9602_s2 + $0x5c0] sm:$0xff]  ;;  %v1395_v47 = vrot.slane %v1334_v40, 4 }
 0x13b   :  { %5253 = vmatpush1.bf16.msra.mxu1 %v5252_v35  ;;  %v5268_v17 = vpack.c.bf16 %v1361_v13, %v1359_v12  ;;  %v1373_v35 = vld [vmem:[%s9602_s2 + $0x630] sm:$0xff]  ;;  %v5329_v13 = vpack.c.bf16 %v1641_v9, %v1638_v8 }
 0x13c   :  { %5255 = vmatprep.subr.bf16.mxu1 %v5254_v39  ;;  %v5280_v36 = vpack.c.bf16 %v1373_v35, %v1371_v34  ;;  %v1383_v39 = vrot.slane %v1327_v37, 4  ;;  %v1396_v52 = vsel %vm366_vm5, %v1391_v38, %v1395_v47  ;;  %v1655_v34 = vld [vmem:[%s9603_s3 + $0xf8] sm:$0xff]  ;;  %v1658_v35 = vld [vmem:[%s9603_s3 + $0x110] sm:$0xff]  ;;  %v1657_v38 = vld [vmem:[%s9603_s3 + $0x108] sm:$0xff] }
 0x13d   :  { %1101 = vmatmul.mubr.f32.gmra.mrb[20].mxu1 %v1002_v31  ;;  %1285 = vmatmul.mubr.f32.gmra.mrb[22].mxu0 %v1195_v46  ;;  %v5276_v31 = vpack.c.bf16 %v1369_v27, %v1367_v26  ;;  %v1631_v46 = vld [vmem:[%s9603_s3 + $0x38] sm:$0xff]  ;;  %v1648_v26 = vld [vmem:[%s9603_s3 + $0xc0] sm:$0xff]  ;;  %v1654_v37 = vld [vmem:[%s9603_s3 + $0xf0] sm:$0xff] }
 0x13e   :  { %4791 = vmatprep.mubr.msk.f32.mxu0 %vm40_vm6, %v1201_v60  ;;  %4793 = vmatprep.mubr.msk.f32.mxu1 %vm40_vm6, %v1388_v61  ;;  %v1385_v41 = vsel %vm366_vm5, %v1383_v39, %v1384_v19  ;;  %v5887_v19 = vld [vmem:[#allocation3] sm:$0xff]  ;;  %v1633_v60 = vld [vmem:[%s9603_s3 + $0x48] sm:$0xff]  ;;  %v1651_v27 = vld [vmem:[%s9603_s3 + $0xd8] sm:$0xff]  ;;  %v5304_v40 = vpack.c.bf16 %v1657_v38, %v1654_v37 }
 0x13f   :  { %5257 = vmatpush1.bf16.msra.mxu1 %v5256_v55  ;;  %57 = vst.msk [vmem:[#allocation3 + $0x38] sm:$0x3] %vm56_vm14, %v5887_v19  ;;  %v1629_v55 = vld [vmem:[%s9603_s3 + $0x28] sm:$0xff]  ;;  %v1632_v61 = vld [vmem:[%s9603_s3 + $0x40] sm:$0xff]  ;;  %v5288_v7 = vpack.c.bf16 %v1633_v60, %v1630_v56  ;;  %v5300_v30 = vpack.c.bf16 %v1651_v27, %v1648_v26  ;;  %v1662_v19 = vld [vmem:[%s9603_s3 + $0x130] sm:$0xff] }
 0x140   :  { %5259 = vmatprep.subr.bf16.mxu1 %v5258_v51  ;;  %v5323_v62 = vpack.c.bf16 %v1629_v55, %v1626_v54  ;;  %v1634_v51 = vld [vmem:[%s9603_s3 + $0x50] sm:$0xff]  ;;  %v1656_v39 = vld [vmem:[%s9603_s3 + $0x100] sm:$0xff] }
 0x141   :  { %1291 = vmatmul.mubr.f32.gmra.mrb[24].mxu0 %v1199_v2  ;;  %v5286_v58 = vpack.c.bf16 %v1634_v51, %v1631_v46  ;;  %v1640_v2 = vld [vmem:[%s9603_s3 + $0x80] sm:$0xff]  ;;  %v1666_v55 = vld [vmem:[%s9603_s3 + $0x150] sm:$0xff]  ;;  %v1671_v51 = vld [vmem:[%s9603_s3 + $0x178] sm:$0xff] }
 0x142   :  { %4792 = vmatprep.mubr.msk.f32.mxu0 %vm40_vm6, %v1200_v49  ;;  %v1333_v49 = vld [vmem:[#allocation2 + $0x30] sm:$0x3f]  ;;  %v1676_v60 = vld [vmem:[%s9603_s3 + $0x1a0] sm:$0xff] }
 0x143   :  { %5261 = vmatpush1.bf16.msra.mxu1 %v5260_v1  ;;  %v1393_v53 = vrot.slane %v1333_v49, 4  ;;  %v1637_v1 = vld [vmem:[%s9603_s3 + $0x68] sm:$0xff]  ;;  %v1664_v49 = vld [vmem:[%s9603_s3 + $0x140] sm:$0xff]  ;;  %v1678_v9 = vld [vmem:[%s9603_s3 + $0x1b0] sm:$0xff] }
 0x144   :  { %5263 = vmatprep.subr.bf16.mxu1 %v5262_v3  ;;  %v1636_v3 = vld [vmem:[%s9603_s3 + $0x60] sm:$0xff]  ;;  %v5290_v4 = vpack.c.bf16 %v1640_v2, %v1637_v1  ;;  %v1677_v2 = vld [vmem:[%s9603_s3 + $0x1a8] sm:$0xff] }
 0x145   :  { %1297 = vmatmul.mubr.f32.gmra.mrb[26].mxu0 %v1198_v0  ;;  %v1394_v10 = vsel %vm366_vm5, %v1389_v24, %v1393_v53  ;;  %v1624_v24 = vld [vmem:[%s9603_s3] sm:$0xff]  ;;  %v5326_v0 = vpack.c.bf16 %v1635_v63, %v1632_v61  ;;  %v5292_v12 = vpack.c.bf16 %v1639_v6, %v1636_v3  ;;  %v1682_v6 = vld [vmem:[%s9603_s3 + $0x1d0] sm:$0xff] }
 0x146   :  { %v5284_v59 = vpack.c.bf16 %v1627_v48, %v1624_v24  ;;  %v1670_v48 = vld [vmem:[%s9603_s3 + $0x170] sm:$0xff]  ;;  %v1672_v63 = vld [vmem:[%s9603_s3 + $0x180] sm:$0xff] }
 0x147   :  { %5265 = vmatpush1.bf16.msra.mxu1 %v5264_v44  ;;  %v1643_v44 = vld [vmem:[%s9603_s3 + $0x98] sm:$0xff] }
 0x148   :  { %5267 = vmatprep.subr.bf16.mxu1 %v5266_v11  ;;  %v1646_v11 = vld [vmem:[%s9603_s3 + $0xb0] sm:$0xff] }
 0x149   :  { %v5294_v16 = vpack.c.bf16 %v1646_v11, %v1643_v44  ;;  %v1681_v44 = vld [vmem:[%s9603_s3 + $0x1c8] sm:$0xff]  ;;  %v1680_v11 = vld [vmem:[%s9603_s3 + $0x1c0] sm:$0xff] }
 0x14b   :  { %5269 = vmatpush1.bf16.msra.mxu1 %v5268_v17  ;;  %v1645_v17 = vld [vmem:[%s9603_s3 + $0xa8] sm:$0xff] }
 0x14c   :  { %5271 = vmatprep.subr.bf16.mxu1 %v5270_v18  ;;  %v1644_v18 = vld [vmem:[%s9603_s3 + $0xa0] sm:$0xff]  ;;  %v5296_v5 = vpack.c.bf16 %v1645_v17, %v1642_v15 }
 0x14d   :  { %v5332_v21 = vpack.c.bf16 %v1647_v20, %v1644_v18  ;;  %v1895_v17 = vld [vmem:[%s9603_s3 + $0x200] sm:$0xff]  ;;  %v560_v20 = vld [vmem:[#allocation5 + $0x8] sm:$0xff] }
 0x14f   :  { %5273 = vmatpush1.bf16.msra.mxu1 %v5272_v23  ;;  %v1652_v23 = vld [vmem:[%s9603_s3 + $0xe0] sm:$0xff] }
 0x150   :  { %5275 = vmatprep.subr.bf16.mxu1 %v5274_v25  ;;  %v5298_v25 = vpack.c.bf16 %v1652_v23, %v1649_v22  ;;  %v559_v23 = vld [vmem:[#allocation5] sm:$0xff] }
 0x153   :  { %5277 = vmatpush1.bf16.msra.mxu1 %v5276_v31  ;;  %v1653_v31 = vld [vmem:[%s9603_s3 + $0xe8] sm:$0xff] }
 0x154   :  { %5279 = vmatprep.subr.bf16.mxu1 %v5278_v32  ;;  %v5335_v32 = vpack.c.bf16 %v1653_v31, %v1650_v28 }
 0x157   :  { %5281 = vmatpush1.bf16.msra.mxu1 %v5280_v36  ;;  %v5302_v36 = vpack.c.bf16 %v1658_v35, %v1655_v34 }
 0x158   :  { %5322 = vmatprep.subr.bf16.mxu1 %v5917_v50 }
 0x15a   :  { %1474 = vmatmul.mubr.f32.vlgmr.msra.gmra.mrb[22].mxu1 %v1385_v41  ;;  %v1659_v41 = vld [vmem:[%s9603_s3 + $0x118] sm:$0xff] }
 0x15b   :  { %4794 = vmatprep.mubr.msk.f32.mxu1 %vm40_vm6, %v1392_v45  ;;  %5324 = vmatpush1.bf16.msra.mxu1 %v5323_v62  ;;  %v5338_v45 = vpack.c.bf16 %v1659_v41, %v1656_v39  ;;  %v1668_v62 = vld [vmem:[%s9603_s3 + $0x160] sm:$0xff] }
 0x15c   :  { %5325 = vmatprep.subr.bf16.mxu1 %v5917_v50  ;;  %v5344_v56 = vpack.c.bf16 %v1671_v51, %v1668_v62 }
 0x15e   :  { %1480 = vmatmul.mubr.f32.gmra.mrb[24].mxu1 %v6474_v33  ;;  %v5282_v33 = vpack.c.bf16 %v1628_v14, %v1625_v29  ;;  %v1665_v14 = vld [vmem:[%s9603_s3 + $0x148] sm:$0xff] }
 0x15f   :  { %4795 = vmatprep.mubr.msk.f32.mxu1 %vm40_vm6, %v1396_v52  ;;  %5327 = vmatpush1.bf16.msra.mxu1 %v5326_v0  ;;  %v5341_v24 = vpack.c.bf16 %v1665_v14, %v1662_v19  ;;  %v1674_v0 = vld [vmem:[%s9603_s3 + $0x190] sm:$0xff] }
 0x160   :  { %5283 = vmatprep.subr.bf16.mxu0 %v5282_v33  ;;  %5328 = vmatprep.subr.bf16.mxu1 %v5917_v50  ;;  %v1667_v33 = vld [vmem:[%s9603_s3 + $0x158] sm:$0xff]  ;;  %v5347_v3 = vpack.c.bf16 %v1677_v2, %v1674_v0 }
 0x161   :  { %5285 = vmatpush1.bf16.msra.mxu0 %v5284_v59  ;;  %v5310_v54 = vpack.c.bf16 %v1670_v48, %v1667_v33  ;;  %v1669_v59 = vld [vmem:[%s9603_s3 + $0x168] sm:$0xff] }
 0x162   :  { %1486 = vmatmul.mubr.f32.gmra.mrb[26].mxu1 %v1394_v10  ;;  %5287 = vmatprep.subr.bf16.mxu0 %v5286_v58  ;;  %v1663_v10 = vld [vmem:[%s9603_s3 + $0x138] sm:$0xff]  ;;  %v5312_v46 = vpack.c.bf16 %v1669_v59, %v1666_v55  ;;  %v1673_v58 = vld [vmem:[%s9603_s3 + $0x188] sm:$0xff] }
 0x163   :  { %4796 = vmatprep.mubr.msk.f32.mxu1 %vm40_vm6, %v1395_v47  ;;  %5330 = vmatpush1.bf16.msra.mxu1 %v5329_v13  ;;  %v1661_v47 = vld [vmem:[%s9603_s3 + $0x128] sm:$0xff]  ;;  %v5314_v61 = vpack.c.bf16 %v1676_v60, %v1673_v58  ;;  %v1683_v13 = vld [vmem:[%s9603_s3 + $0x1d8] sm:$0xff] }
 0x164   :  { %5331 = vmatprep.subr.bf16.mxu1 %v5917_v50  ;;  %v5306_v52 = vpack.c.bf16 %v1664_v49, %v1661_v47  ;;  %v5350_v15 = vpack.c.bf16 %v1683_v13, %v1680_v11  ;;  %v565_v49 = vld [vmem:[#allocation5 + $0x48] sm:$0x3] }
 0x165   :  { %5289 = vmatpush1.bf16.msra.mxu0 %v5288_v7  ;;  %v1675_v7 = vld [vmem:[%s9603_s3 + $0x198] sm:$0xff] }
 0x166   :  { %1492 = vmatmul.mubr.f32.gmra.mrb[28].mxu1 %v1393_v53  ;;  %5291 = vmatprep.subr.bf16.mxu0 %v5290_v4  ;;  %v1660_v53 = vld [vmem:[%s9603_s3 + $0x120] sm:$0xff]  ;;  %v5316_v1 = vpack.c.bf16 %v1675_v7, %v1672_v63  ;;  %v1679_v4 = vld [vmem:[%s9603_s3 + $0x1b8] sm:$0xff] }
 0x167   :  { %5333 = vmatpush1.bf16.msra.mxu1 %v5332_v21  ;;  %v5308_v29 = vpack.c.bf16 %v1663_v10, %v1660_v53  ;;  %v5318_v8 = vpack.c.bf16 %v1682_v6, %v1679_v4  ;;  %v566_v10 = vld [vmem:[#allocation5 + $0x50] sm:$0x3] }
 0x168   :  { %5334 = vmatprep.subr.bf16.mxu1 %v5917_v50 }
 0x169   :  { %5293 = vmatpush1.bf16.msra.mxu0 %v5292_v12  ;;  %v5320_v12 = vpack.c.bf16 %v1681_v44, %v1678_v9 }
 0x16a   :  { %5295 = vmatprep.subr.bf16.mxu0 %v5294_v16  ;;  %v1892_v16 = vld [vmem:[%s9603_s3 + $0x1e8] sm:$0xff] }
 0x16b   :  { %5336 = vmatpush1.bf16.msra.mxu1 %v5335_v32  ;;  %v5352_v18 = vpack.c.bf16 %v1895_v17, %v1892_v16 }
 0x16c   :  { %5337 = vmatprep.subr.bf16.mxu1 %v5917_v50 }
 0x16d   :  { %5297 = vmatpush1.bf16.msra.mxu0 %v5296_v5 }
 0x16e   :  { %5299 = vmatprep.subr.bf16.mxu0 %v5298_v25  ;;  %v562_v25 = vld [vmem:[#allocation5 + $0x20] sm:$0xff] }
 0x16f   :  { %5339 = vmatpush1.bf16.msra.mxu1 %v5338_v45 }
 0x170   :  { %5340 = vmatprep.subr.bf16.mxu1 %v5917_v50 }
 0x171   :  { %5301 = vmatpush1.bf16.msra.mxu0 %v5300_v30  ;;  %v561_v30 = vld [vmem:[#allocation5 + $0x18] sm:$0xff] }
 0x172   :  { %5303 = vmatprep.subr.bf16.mxu0 %v5302_v36  ;;  %v564_v36 = vld [vmem:[#allocation5 + $0x38] sm:$0xff] }
 0x173   :  { %5342 = vmatpush1.bf16.msra.mxu1 %v5341_v24 }
 0x174   :  { %5343 = vmatprep.subr.bf16.mxu1 %v5917_v50 }
 0x175   :  { %5305 = vmatpush1.bf16.msra.mxu0 %v5304_v40 }
 0x176   :  { %5307 = vmatprep.subr.bf16.mxu0 %v5306_v52 }
 0x177   :  { %5345 = vmatpush1.bf16.msra.mxu1 %v5344_v56 }
 0x178   :  { %5346 = vmatprep.subr.bf16.mxu1 %v5917_v50 }
 0x179   :  { %5309 = vmatpush1.bf16.msra.mxu0 %v5308_v29  ;;  %v5888_v29 = vld [vmem:[#allocation5] sm:$0xff] }
 0x17a   :  { %5311 = vmatprep.subr.bf16.mxu0 %v5310_v54 }
 0x17b   :  { %5348 = vmatpush1.bf16.msra.mxu1 %v5347_v3 }
 0x17c   :  { %5349 = vmatprep.subr.bf16.mxu1 %v5917_v50 }
 0x17d   :  { %5313 = vmatpush1.bf16.msra.mxu0 %v5312_v46 }
 0x17e   :  { %5315 = vmatprep.subr.bf16.mxu0 %v5314_v61 }
 0x17f   :  { %5351 = vmatpush1.bf16.msra.mxu1 %v5350_v15 }
 0x180   :  { %5392 = vmatprep.subr.bf16.mxu1 %v5917_v50 }
 0x181   :  { %5317 = vmatpush1.bf16.msra.mxu0 %v5316_v1 }
 0x182   :  { %5319 = vmatprep.subr.bf16.mxu0 %v5318_v8 }
 0x185   :  { %5321 = vmatpush1.bf16.msra.mxu0 %v5320_v12 }
 0x186   :  { %5353 = vmatprep.subr.bf16.mxu0 %v5352_v18 }
 0x1db   :  { %v693_v5 = vpop.f32.mrb[6].mxu1 }
 0x1dc   :  { %v695_v21 = vpop.f32.mrb[7].mxu1  ;;  %v716_v27 = vadd.f32 %v693_v5, %v559_v23 }
 0x1dd   :  { %v717_v22 = vadd.f32 %v695_v21, %v560_v20 }
 0x1df   :  { %725 = vst.msk [vmem:[#allocation5 + $0x8] sm:$0xff] %vm40_vm6, %v717_v22 }
 0x1e1   :  { %v699_v26 = vpop.f32.mrb[8].mxu1 }
 0x1e2   :  { %v701_v28 = vpop.f32.mrb[9].mxu1  ;;  %v718_v38 = vadd.f32 %v699_v26, %v561_v30 }
 0x1e3   :  { %v719_v31 = vadd.f32 %v701_v28, %v562_v25 }
 0x1e4   :  { %v889_v32 = vpop.f32.mrb[12].mxu0 }
 0x1e5   :  { %v912_v34 = vadd.f32 %v889_v32, %v716_v27  ;;  %v891_v35 = vpop.f32.mrb[13].mxu0  ;;  %727 = vst.msk [vmem:[#allocation5 + $0x20] sm:$0xff] %vm40_vm6, %v719_v31 }
 0x1e6   :  { %v705_v37 = vpop.f32.mrb[10].mxu1  ;;  %v733_v39 = vld [vmem:[#allocation5 + $0x8] sm:$0xff] }
 0x1e7   :  { %v707_v40 = vpop.f32.mrb[11].mxu1  ;;  %v913_v41 = vadd.f32 %v891_v35, %v733_v39  ;;  %v720_v14 = vadd.f32 %v5888_v29, %v705_v37 }
 0x1e8   :  { %v721_v45 = vadd.f32 %v707_v40, %v564_v36  ;;  %v895_v47 = vpop.f32.mrb[14].mxu0 }
 0x1e9   :  { %v914_v52 = vadd.f32 %v895_v47, %v718_v38  ;;  %v897_v53 = vpop.f32.mrb[15].mxu0  ;;  %921 = vst.msk [vmem:[#allocation5 + $0x8] sm:$0xff] %vm40_vm6, %v913_v41 }
 0x1ea   :  { %729 = vst.msk [vmem:[#allocation5 + $0x38] sm:$0xff] %vm40_vm6, %v721_v45  ;;  %v711_v19 = vpop.f32.mrb[12].mxu1 }
 0x1eb   :  { %v722_v24 = vadd.f32 %v711_v19, %v565_v49  ;;  %v713_v33 = vpop.f32.mrb[13].mxu1 }
 0x1ec   :  { %v723_v48 = vadd.f32 %v713_v33, %v566_v10  ;;  %v901_v54 = vpop.f32.mrb[16].mxu0  ;;  %v735_v55 = vld [vmem:[#allocation5 + $0x20] sm:$0xff] }
 0x1ed   :  { %730 = vst [vmem:[#allocation5 + $0x48] sm:$0x3] %v722_v24  ;;  %v916_v59 = vadd.f32 %v901_v54, %v720_v14  ;;  %v903_v62 = vpop.f32.mrb[17].mxu0  ;;  %v915_v46 = vadd.f32 %v897_v53, %v735_v55 }
 0x1ee   :  { %731 = vst.msk [vmem:[#allocation5 + $0x50] sm:$0x3] %vm56_vm14, %v723_v48 }
 0x1ef   :  { %923 = vst.msk [vmem:[#allocation5 + $0x20] sm:$0xff] %vm40_vm6, %v915_v46 }
 0x1f0   :  { %v907_v51 = vpop.f32.mrb[18].mxu0  ;;  %v929_v3 = vld [vmem:[#allocation5 + $0x8] sm:$0xff] }
 0x1f1   :  { %v737_v56 = vld [vmem:[#allocation5 + $0x38] sm:$0xff]  ;;  %v909_v58 = vpop.f32.mrb[19].mxu0 }
 0x1f2   :  { %v917_v60 = vadd.f32 %v903_v62, %v737_v56 }
 0x1f4   :  { %925 = vst.msk [vmem:[#allocation5 + $0x38] sm:$0xff] %vm40_vm6, %v917_v60  ;;  %v738_v61 = vld [vmem:[#allocation5 + $0x48] sm:$0x3] }
 0x1f5   :  { %v918_v63 = vadd.f32 %v907_v51, %v738_v61  ;;  %v739_v7 = vld [vmem:[#allocation5 + $0x50] sm:$0x3] }
 0x1f6   :  { %v919_v0 = vadd.f32 %v909_v58, %v739_v7  ;;  %v931_v44 = vld [vmem:[#allocation5 + $0x20] sm:$0xff] }
 0x1f7   :  { %926 = vst [vmem:[#allocation5 + $0x48] sm:$0x3] %v918_v63 }
 0x1f8   :  { %927 = vst.msk [vmem:[#allocation5 + $0x50] sm:$0x3] %vm56_vm14, %v919_v0 }
 0x1fb   :  { %v933_v18 = vld [vmem:[#allocation5 + $0x38] sm:$0xff] }
 0x1fe   :  { %v934_v25 = vld [vmem:[#allocation5 + $0x48] sm:$0x3] }
 0x1ff   :  { %v935_v31 = vld [vmem:[#allocation5 + $0x50] sm:$0x3] }
 0x204   :  { %v1084_v1 = vpop.f32.mrb[14].mxu1 }
 0x205   :  { %v1107_v2 = vadd.f32 %v1084_v1, %v912_v34  ;;  %v1086_v4 = vpop.f32.mrb[15].mxu1 }
 0x206   :  { %v1108_v6 = vadd.f32 %v1086_v4, %v929_v3 }
 0x208   :  { %1116 = vst.msk [vmem:[#allocation5 + $0x8] sm:$0xff] %vm40_vm6, %v1108_v6  ;;  %v1090_v8 = vpop.f32.mrb[16].mxu1 }
 0x209   :  { %v1109_v9 = vadd.f32 %v1090_v8, %v914_v52  ;;  %v1092_v11 = vpop.f32.mrb[17].mxu1 }
 0x20a   :  { %v1110_v12 = vadd.f32 %v1092_v11, %v931_v44 }
 0x20c   :  { %1118 = vst.msk [vmem:[#allocation5 + $0x20] sm:$0xff] %vm40_vm6, %v1110_v12  ;;  %v1096_v13 = vpop.f32.mrb[18].mxu1  ;;  %v1280_v15 = vpop.f32.mrb[20].mxu0 }
 0x20d   :  { %v1111_v16 = vadd.f32 %v1096_v13, %v916_v59  ;;  %v1303_v17 = vadd.f32 %v1280_v15, %v1107_v2  ;;  %v1098_v20 = vpop.f32.mrb[19].mxu1  ;;  %v1282_v5 = vpop.f32.mrb[21].mxu0 }
 0x20e   :  { %v1112_v21 = vadd.f32 %v1098_v20, %v933_v18 }
 0x20f   :  { %v1124_v22 = vld [vmem:[#allocation5 + $0x8] sm:$0xff] }
 0x210   :  { %1120 = vst.msk [vmem:[#allocation5 + $0x38] sm:$0xff] %vm40_vm6, %v1112_v21  ;;  %v1304_v23 = vadd.f32 %v1282_v5, %v1124_v22  ;;  %v1102_v26 = vpop.f32.mrb[20].mxu1  ;;  %v1286_v27 = vpop.f32.mrb[22].mxu0 }
 0x211   :  { %v1113_v28 = vadd.f32 %v1102_v26, %v934_v25  ;;  %v1305_v30 = vadd.f32 %v1286_v27, %v1109_v9  ;;  %v1104_v32 = vpop.f32.mrb[21].mxu1  ;;  %v1288_v34 = vpop.f32.mrb[23].mxu0  ;;  %v1891_v25 = vld [vmem:[%s9603_s3 + $0x1e0] sm:$0xff]  ;;  %v1894_v26 = vld [vmem:[%s9603_s3 + $0x1f8] sm:$0xff] }
 0x212   :  { %1312 = vst.msk [vmem:[#allocation5 + $0x8] sm:$0xff] %vm40_vm6, %v1304_v23  ;;  %v1114_v35 = vadd.f32 %v1104_v32, %v935_v31  ;;  %v1896_v31 = vld [vmem:[%s9603_s3 + $0x208] sm:$0xff] }
 0x213   :  { %1121 = vst [vmem:[#allocation5 + $0x48] sm:$0x3] %v1113_v28  ;;  %v1126_v36 = vld [vmem:[#allocation5 + $0x20] sm:$0xff] }
 0x214   :  { %1122 = vst.msk [vmem:[#allocation5 + $0x50] sm:$0x3] %vm56_vm14, %v1114_v35  ;;  %v1306_v37 = vadd.f32 %v1288_v34, %v1126_v36  ;;  %v1292_v38 = vpop.f32.mrb[24].mxu0  ;;  %v1898_v36 = vld [vmem:[%s9603_s3 + $0x218] sm:$0xff] }
 0x215   :  { %v1307_v39 = vadd.f32 %v1292_v38, %v1111_v16  ;;  %v1294_v40 = vpop.f32.mrb[25].mxu0 }
 0x216   :  { %1314 = vst.msk [vmem:[#allocation5 + $0x20] sm:$0xff] %vm40_vm6, %v1306_v37  ;;  %v1901_v37 = vld [vmem:[%s9603_s3 + $0x230] sm:$0xff] }
 0x217   :  { %v1128_v41 = vld [vmem:[#allocation5 + $0x38] sm:$0xff] }
 0x218   :  { %v1308_v45 = vadd.f32 %v1294_v40, %v1128_v41  ;;  %v1298_v47 = vpop.f32.mrb[26].mxu0  ;;  %v1897_v40 = vld [vmem:[%s9603_s3 + $0x210] sm:$0xff]  ;;  %v1900_v41 = vld [vmem:[%s9603_s3 + $0x228] sm:$0xff] }
 0x219   :  { %v1300_v49 = vpop.f32.mrb[27].mxu0  ;;  %v1320_v24 = vld [vmem:[#allocation5 + $0x8] sm:$0xff] }
 0x21a   :  { %1316 = vst.msk [vmem:[#allocation5 + $0x38] sm:$0xff] %vm40_vm6, %v1308_v45  ;;  %v1129_v52 = vld [vmem:[#allocation5 + $0x48] sm:$0x3] }
 0x21b   :  { %v1309_v53 = vadd.f32 %v1298_v47, %v1129_v52  ;;  %v1130_v10 = vld [vmem:[#allocation5 + $0x50] sm:$0x3] }
 0x21c   :  { %v1310_v19 = vadd.f32 %v1300_v49, %v1130_v10  ;;  %v1899_v49 = vld [vmem:[%s9603_s3 + $0x220] sm:$0xff] }
 0x21d   :  { %1317 = vst [vmem:[#allocation5 + $0x48] sm:$0x3] %v1309_v53  ;;  %v1322_v46 = vld [vmem:[#allocation5 + $0x20] sm:$0xff] }
 0x21e   :  { %1318 = vst.msk [vmem:[#allocation5 + $0x50] sm:$0x3] %vm56_vm14, %v1310_v19  ;;  %v5356_v19 = vpack.c.bf16 %v1901_v37, %v1898_v36 }
 0x221   :  { %v1324_v61 = vld [vmem:[#allocation5 + $0x38] sm:$0xff] }
 0x224   :  { %v1325_v2 = vld [vmem:[#allocation5 + $0x48] sm:$0x3] }
 0x225   :  { %v1326_v8 = vld [vmem:[#allocation5 + $0x50] sm:$0x3] }
 0x22d   :  { %v1475_v29 = vpop.f32.mrb[22].mxu1 }
 0x22e   :  { %v1498_v14 = vadd.f32 %v1475_v29, %v1303_v17  ;;  %v1477_v33 = vpop.f32.mrb[23].mxu1  ;;  %v1902_v29 = vld [vmem:[%s9603_s3 + $0x238] sm:$0xff] }
 0x22f   :  { %v1499_v48 = vadd.f32 %v1477_v33, %v1320_v24 }
 0x230   :  { %v1518_v54 = vmax.f32 %v1498_v14, 0.0 }
 0x231   :  { %1507 = vst.msk [vmem:[#allocation5 + $0x8] sm:$0xff] %vm40_vm6, %v1499_v48  ;;  %v1481_v55 = vpop.f32.mrb[24].mxu1  ;;  %v1904_v48 = vld [vmem:[%s9603_s3 + $0x248] sm:$0xff] }
 0x232   :  { %v1527_v59 = vrot.slane %v1518_v54, 7  ;;  %v1500_v62 = vadd.f32 %v1481_v55, %v1305_v30  ;;  %v1483_v51 = vpop.f32.mrb[25].mxu1  ;;  %v1893_v30 = vld [vmem:[%s9603_s3 + $0x1f0] sm:$0xff]  ;;  %v1907_v54 = vld [vmem:[%s9603_s3 + $0x260] sm:$0xff] }
 0x233   :  { %v1501_v56 = vadd.f32 %v1483_v51, %v1322_v46  ;;  %v5393_v47 = vpack.c.bf16 %v1896_v31, %v1893_v30  ;;  %v5358_v46 = vpack.c.bf16 %v1900_v41, %v1897_v40  ;;  %v5396_v51 = vpack.c.bf16 %v1902_v29, %v1899_v49  ;;  %v1920_v30 = vld [vmem:[%s9603_s3 + $0x2c8] sm:$0xff]  ;;  %v1926_v49 = vld [vmem:[%s9603_s3 + $0x2f8] sm:$0xff]  ;;  %v1927_v29 = vld [vmem:[%s9603_s3 + $0x300] sm:$0xff] }
 0x234   :  { %1537 = vst [vmem:[#allocation3] sm:$0xfe] %v1527_v59  ;;  %1508 = vst [vmem:[#allocation5 + $0x18] sm:$0xff] %v1500_v62 }
 0x235   :  { %1509 = vst.msk [vmem:[#allocation5 + $0x20] sm:$0xff] %vm40_vm6, %v1501_v56  ;;  %v1487_v58 = vpop.f32.mrb[26].mxu1  ;;  %v1903_v56 = vld [vmem:[%s9603_s3 + $0x240] sm:$0xff] }
 0x236   :  { %v1502_v60 = vadd.f32 %v1487_v58, %v1307_v39  ;;  %v1489_v63 = vpop.f32.mrb[27].mxu1  ;;  %v5354_v39 = vpack.c.bf16 %v1894_v26, %v1891_v25  ;;  %v1906_v58 = vld [vmem:[%s9603_s3 + $0x258] sm:$0xff]  ;;  %v1915_v25 = vld [vmem:[%s9603_s3 + $0x2a0] sm:$0xff] }
 0x237   :  { %v1503_v7 = vadd.f32 %v1489_v63, %v1324_v61  ;;  %v5360_v61 = vpack.c.bf16 %v1907_v54, %v1904_v48  ;;  %v1905_v63 = vld [vmem:[%s9603_s3 + $0x250] sm:$0xff]  ;;  %v1932_v48 = vld [vmem:[%s9603_s3 + $0x328] sm:$0xff]  ;;  %v1934_v54 = vld [vmem:[%s9603_s3 + $0x338] sm:$0xff] }
 0x238   :  { %v1515_v0 = vld [vmem:[#allocation5 + $0x8] sm:$0xff]  ;;  %v1549_v4 = vmax.f32 %v1502_v60, 0.0 }
 0x239   :  { %v1519_v1 = vmax.f32 %v1515_v0, 0.0  ;;  %1511 = vst.msk [vmem:[#allocation5 + $0x38] sm:$0xff] %vm40_vm6, %v1503_v7  ;;  %v1493_v3 = vpop.f32.mrb[28].mxu1  ;;  %v1908_v7 = vld [vmem:[%s9603_s3 + $0x268] sm:$0xff] }
 0x23a   :  { %v1504_v6 = vadd.f32 %v1493_v3, %v1325_v2  ;;  %v1495_v9 = vpop.f32.mrb[29].mxu1  ;;  %v1560_v21 = vrot.slane %v1549_v4, 1  ;;  %v1910_v4 = vld [vmem:[%s9603_s3 + $0x278] sm:$0xff] }
 0x23b   :  { %v1528_v44 = vrot.slane %v1519_v1, 7  ;;  %v1516_v11 = vld [vmem:[#allocation5 + $0x18] sm:$0x7]  ;;  %v1541_v12 = vld [vmem:[#allocation5 + $0x18] sm:$0x80]  ;;  %v1505_v13 = vadd.f32 %v1495_v9, %v1326_v8  ;;  %v1618_v33 = vld [vmem:[#allocation3] sm:$0xff]  ;;  %v5362_v9 = vpack.c.bf16 %v1906_v58, %v1903_v56 }
 0x23c   :  { %v1520_v15 = vmax.f32 %v1516_v11, 0.0  ;;  %v1517_v16 = vld [vmem:[#allocation5 + $0x20] sm:$0x7]  ;;  %v1542_v17 = vld [vmem:[#allocation5 + $0x20] sm:$0x80]  ;;  %v1547_v18 = vmax.f32 %v1541_v12, 0.0 }
 0x23d   :  { %1512 = vst [vmem:[#allocation5 + $0x48] sm:$0x3] %v1504_v6  ;;  %1538 = vst.msk [vmem:[#allocation3 + $0x8] sm:$0xfe] %vm534_vm11, %v1528_v44  ;;  %v1521_v20 = vmax.f32 %v1517_v16, 0.0  ;;  %v1548_v27 = vmax.f32 %v1542_v17, 0.0 }
 0x23e   :  { %1513 = vst.msk [vmem:[#allocation5 + $0x50] sm:$0x3] %vm56_vm14, %v1505_v13  ;;  %v1529_v5 = vrot.slane %v1520_v15, 7  ;;  %v1559_v22 = vrot.slane %v1547_v18, 1  ;;  %v1913_v6 = vld [vmem:[%s9603_s3 + $0x290] sm:$0xff]  ;;  %v1912_v12 = vld [vmem:[%s9603_s3 + $0x288] sm:$0xff] }
 0x23f   :  { %v1531_v23 = vrot.slane %v1521_v20, 7  ;;  %v1562_v52 = vrot.slane %v1548_v27, 1  ;;  %v1909_v11 = vld [vmem:[%s9603_s3 + $0x270] sm:$0xff]  ;;  %v1911_v13 = vld [vmem:[%s9603_s3 + $0x280] sm:$0xff]  ;;  %v1914_v15 = vld [vmem:[%s9603_s3 + $0x298] sm:$0xff]  ;;  %v5364_v18 = vpack.c.bf16 %v1913_v6, %v1910_v4  ;;  %vm5918_vm11 = vmmov 0  }
 0x240   :  { %v1544_v28 = vld [vmem:[#allocation5 + $0x38] sm:$0xff]  ;;  %v1530_v32 = vsel %vm1526_vm15, %v1527_v59, %v1529_v5  ;;  %v1561_v34 = vsel %vm796_vm12, %v1559_v22, %v1560_v21  ;;  %v1916_v20 = vld [vmem:[%s9603_s3 + $0x2a8] sm:$0xff]  ;;  %v5366_v5 = vpack.c.bf16 %v1912_v12, %v1909_v11  ;;  %v1935_v58 = vld [vmem:[%s9603_s3 + $0x340] sm:$0xff]  ;;  %vm4456_vm14 = vcmask 523269  }
 0x241   :  { %v1550_v35 = vmax.f32 %v1544_v28, 0.0  ;;  %v1532_v38 = vsel %vm1526_vm15, %v1528_v44, %v1531_v23  ;;  %1539 = vst [vmem:[#allocation3 + $0x10] sm:$0xf] %v1530_v32  ;;  %1575 = vst [vmem:[#allocation3 + $0x10] sm:$0xc0] %v1561_v34  ;;  %v5399_v44 = vpack.c.bf16 %v1908_v7, %v1905_v63  ;;  %v1919_v23 = vld [vmem:[%s9603_s3 + $0x2c0] sm:$0xff] }
 0x242   :  { %1540 = vst.msk [vmem:[#allocation3 + $0x18] sm:$0xf] %vm537_vm10, %v1532_v38  ;;  %v1918_v27 = vld [vmem:[%s9603_s3 + $0x2b8] sm:$0xff]  ;;  %v1917_v28 = vld [vmem:[%s9603_s3 + $0x2b0] sm:$0xff]  ;;  %v5368_v36 = vpack.c.bf16 %v1919_v23, %v1916_v20  ;;  %v1936_v56 = vld [vmem:[%s9603_s3 + $0x348] sm:$0xff]  ;;  %vm2538_vm10 = vcmask 516096  }
 0x243   :  { %v1563_v45 = vrot.slane %v1550_v35, 1  ;;  %v1922_v32 = vld [vmem:[%s9603_s3 + $0x2d8] sm:$0xff]  ;;  %v1925_v34 = vld [vmem:[%s9603_s3 + $0x2f0] sm:$0xff]  ;;  %v5370_v37 = vpack.c.bf16 %v1918_v27, %v1915_v25  ;;  %v5405_v38 = vpack.c.bf16 %v1920_v30, %v1917_v28  ;;  %v1943_v63 = vld [vmem:[%s9603_s3 + $0x380] sm:$0xff] }
 0x244   :  { %v1545_v53 = vld [vmem:[#allocation5 + $0x48] sm:$0x3]  ;;  %v5372_v41 = vpack.c.bf16 %v1925_v34, %v1922_v32  ;;  %v1939_v4 = vld [vmem:[%s9603_s3 + $0x360] sm:$0xff]  ;;  %v1946_v12 = vld [vmem:[%s9603_s3 + $0x398] sm:$0xff] }
 0x245   :  { %v1619_v10 = vld [vmem:[#allocation3 + $0x8] sm:$0xff]  ;;  %v1546_v14 = vld [vmem:[#allocation5 + $0x50] sm:$0x3]  ;;  %v1551_v24 = vmax.f32 %v1545_v53, 0.0  ;;  %v1564_v55 = vsel %vm796_vm12, %v1562_v52, %v1563_v45  ;;  %v1931_v53 = vld [vmem:[%s9603_s3 + $0x320] sm:$0xff] }
 0x246   :  { %4797 = vmatprep.mubr.msk.f32.mxu0 %vm40_vm6, %v1619_v10  ;;  %4800 = vmatprep.mubr.msk.f32.mxu1 %vm40_vm6, %v1619_v10  ;;  %v1552_v59 = vmax.f32 %v1546_v14, 0.0  ;;  %1577 = vst.msk [vmem:[#allocation3 + $0x18] sm:$0xc0] %vm1576_vm1, %v1564_v55  ;;  %v1884_v22 = vld [vmem:[#allocation3 + $0x8] sm:$0xfe]  ;;  %v1937_v55 = vld [vmem:[%s9603_s3 + $0x350] sm:$0xff] }
 0x247   :  { %1758 = vmatmul.mubr.f32.vlgmr.msra.gmra.mrb[28].mxu0 %v1618_v33  ;;  %1841 = vmatmul.mubr.f32.vlgmr.msra.gmra.mrb[30].mxu1 %v1618_v33  ;;  %v1565_v62 = vrot.slane %v1551_v24, 1  ;;  %v1962_v35 = vrot.slane %v1884_v22, 1  ;;  %v1928_v52 = vld [vmem:[%s9603_s3 + $0x308] sm:$0xff]  ;;  %v1930_v24 = vld [vmem:[%s9603_s3 + $0x318] sm:$0xff]  ;;  %v1929_v33 = vld [vmem:[%s9603_s3 + $0x310] sm:$0xff]  ;;  %vm4348_vm1 = vcmask 24600  }
 0x248   :  { %5355 = vmatpush1.bf16.msra.mxu0 %v5354_v39  ;;  %5394 = vmatpush1.bf16.msra.mxu1 %v5393_v47  ;;  %v1567_v60 = vrot.slane %v1552_v59, 1  ;;  %v7145_v0 = vld [vmem:[#allocation3 + $0x10] sm:$0xff]  ;;  %v1923_v47 = vld [vmem:[%s9603_s3 + $0x2e0] sm:$0xff]  ;;  %v5376_v14 = vpack.c.bf16 %v1931_v53, %v1928_v52  ;;  %v5378_v59 = vpack.c.bf16 %v1930_v24, %v1927_v29  ;;  %v1944_v11 = vld [vmem:[%s9603_s3 + $0x388] sm:$0xff] }
 0x249   :  { %5357 = vmatprep.subr.bf16.mxu0 %v5356_v19  ;;  %5395 = vmatprep.subr.bf16.mxu1 %v5917_v50  ;;  %v7148_v1 = vsel %vm796_vm12, %v1560_v21, %v1565_v62  ;;  %1580 = vst [vmem:[#allocation3 + $0x30] sm:$0x1] %v1565_v62  ;;  %v2249_v3 = vrot.slane %v7145_v0, 2  ;;  %v5402_v21 = vpack.c.bf16 %v1914_v15, %v1911_v13  ;;  %v1921_v39 = vld [vmem:[%s9603_s3 + $0x2d0] sm:$0xff]  ;;  %v1947_v22 = vld [vmem:[%s9603_s3 + $0x3a0] sm:$0xff]  ;;  %v1950_v23 = vld [vmem:[%s9603_s3 + $0x3b8] sm:$0xff] }
 0x24a   :  { %v1568_v2 = vsel %vm796_vm12, %v1563_v45, %v1567_v60  ;;  %1582 = vst.msk [vmem:[#allocation3 + $0x38] sm:$0x1] %vm1581_vm2, %v1567_v60  ;;  %v2254_v8 = vrot.slane %v7148_v1, 2  ;;  %v1924_v45 = vld [vmem:[%s9603_s3 + $0x2e8] sm:$0xff]  ;;  %v5408_v19 = vpack.c.bf16 %v1926_v49, %v1923_v47  ;;  %v5411_v62 = vpack.c.bf16 %v1932_v48, %v1929_v33  ;;  %v1938_v60 = vld [vmem:[%s9603_s3 + $0x358] sm:$0xff]  ;;  %v1949_v13 = vld [vmem:[%s9603_s3 + $0x3b0] sm:$0xff] }
 0x24b   :  { %1579 = vst.msk [vmem:[#allocation3 + $0x28] sm:$0xff] %vm40_vm6, %v1568_v2  ;;  %v5374_v10 = vpack.c.bf16 %v1924_v45, %v1921_v39  ;;  %v5414_v2 = vpack.c.bf16 %v1938_v60, %v1935_v58  ;;  %v1945_v20 = vld [vmem:[%s9603_s3 + $0x390] sm:$0xff]  ;;  %v2181_v25 = vld [vmem:[%s9603_s3 + $0x3c8] sm:$0xff]  ;;  %v2184_v27 = vld [vmem:[%s9603_s3 + $0x3e0] sm:$0xff]  ;;  %v5420_v30 = vpack.c.bf16 %v1950_v23, %v1947_v22  ;;  %v1965_v29 = vrot.slane %v7148_v1, 1 }
 0x24c   :  { %5359 = vmatpush1.bf16.msra.mxu0 %v5358_v46  ;;  %5397 = vmatpush1.bf16.msra.mxu1 %v5396_v51  ;;  %v7179_v16 = vsel %vm232_vm4, %v2249_v3, %v2254_v8  ;;  %v1933_v46 = vld [vmem:[%s9603_s3 + $0x330] sm:$0xff]  ;;  %v5380_v51 = vpack.c.bf16 %v1937_v55, %v1934_v54  ;;  %v1883_v32 = vld [vmem:[#allocation3] sm:$0xfe]  ;;  %v5422_v34 = vpack.c.bf16 %v2184_v27, %v2181_v25  ;;  %v2185_v39 = vld [vmem:[%s9603_s3 + $0x3e8] sm:$0xff]  ;;  %vm4405_vm2 = vcmask 32800  }
 0x24d   :  { %5361 = vmatprep.subr.bf16.mxu0 %v5360_v61  ;;  %5398 = vmatprep.subr.bf16.mxu1 %v5917_v50  ;;  %v7181_v17 = vld [vmem:[#allocation3 + $0x18] sm:$0xff]  ;;  %v1940_v61 = vld [vmem:[%s9603_s3 + $0x368] sm:$0xff]  ;;  %v5382_v7 = vpack.c.bf16 %v1936_v56, %v1933_v46  ;;  %v2190_v45 = vld [vmem:[%s9603_s3 + $0x410] sm:$0xff]  ;;  %v1959_v47 = vrot.slane %v1883_v32, 1 }
 0x24e   :  { %4798 = vmatprep.mubr.msk.f32.mxu0 %vm40_vm6, %v7181_v17  ;;  %4801 = vmatprep.mubr.msk.f32.mxu1 %vm40_vm6, %v7181_v17  ;;  %v1963_v26 = vrot.slane %v7181_v17, 1  ;;  %v5384_v6 = vpack.c.bf16 %v1943_v63, %v1940_v61  ;;  %v2189_v24 = vld [vmem:[%s9603_s3 + $0x408] sm:$0xff]  ;;  %v2188_v33 = vld [vmem:[%s9603_s3 + $0x400] sm:$0xff]  ;;  %v2191_v48 = vld [vmem:[%s9603_s3 + $0x418] sm:$0xff] }
 0x24f   :  { %1764 = vmatmul.mubr.f32.gmra.mrb[30].mxu0 %v7145_v0  ;;  %1846 = vmatmul.mubr.f32.gmra.mrb[32].mxu1 %v7145_v0  ;;  %v2196_v46 = vld [vmem:[%s9603_s3 + $0x440] sm:$0xff]  ;;  %v5466_v56 = vpack.c.bf16 %v2191_v48, %v2188_v33  ;;  %v2195_v58 = vld [vmem:[%s9603_s3 + $0x438] sm:$0xff]  ;;  %v2205_v27 = vld [vmem:[%s9603_s3 + $0x488] sm:$0xff] }
 0x250   :  { %5363 = vmatpush1.bf16.msra.mxu0 %v5362_v9  ;;  %5400 = vmatpush1.bf16.msra.mxu1 %v5399_v44  ;;  %v1964_v40 = vsel %vm796_vm12, %v1962_v35, %v1963_v26  ;;  %v1942_v9 = vld [vmem:[%s9603_s3 + $0x378] sm:$0xff]  ;;  %v1941_v44 = vld [vmem:[%s9603_s3 + $0x370] sm:$0xff]  ;;  %v2180_v35 = vld [vmem:[%s9603_s3 + $0x3c0] sm:$0xff] }
 0x251   :  { %5365 = vmatprep.subr.bf16.mxu0 %v5364_v18  ;;  %5401 = vmatprep.subr.bf16.mxu1 %v5917_v50  ;;  %v5386_v15 = vpack.c.bf16 %v1942_v9, %v1939_v4  ;;  %v5417_v18 = vpack.c.bf16 %v1944_v11, %v1941_v44  ;;  %v1890_v49 = vld [vmem:[#allocation3 + $0x38] sm:$0x1]  ;;  %v2197_v4 = vld [vmem:[%s9603_s3 + $0x448] sm:$0xff]  ;;  %v2252_v9 = vrot.slane %v7181_v17, 2  ;;  %v2202_v11 = vld [vmem:[%s9603_s3 + $0x470] sm:$0xff] }
 0x252   :  { %v7209_v31 = vld [vmem:[#allocation3 + $0x28] sm:$0xff]  ;;  %v1971_v55 = vrot.slane %v1890_v49, 1  ;;  %v2199_v44 = vld [vmem:[%s9603_s3 + $0x458] sm:$0xff]  ;;  %v2200_v22 = vld [vmem:[%s9603_s3 + $0x460] sm:$0xff] }
 0x253   :  { %4799 = vmatprep.mubr.msk.f32.mxu0 %vm40_vm6, %v7209_v31  ;;  %4802 = vmatprep.mubr.msk.f32.mxu1 %vm40_vm6, %v7209_v31  ;;  %v2203_v23 = vld [vmem:[%s9603_s3 + $0x478] sm:$0xff]  ;;  %v2216_v33 = vld [vmem:[%s9603_s3 + $0x4e0] sm:$0xff] }
 0x254   :  { %5367 = vmatpush1.bf16.msra.mxu0 %v5366_v5  ;;  %5403 = vmatpush1.bf16.msra.mxu1 %v5402_v21  ;;  %v5388_v5 = vpack.c.bf16 %v1949_v13, %v1946_v12  ;;  %v1948_v21 = vld [vmem:[%s9603_s3 + $0x3a8] sm:$0xff]  ;;  %v5472_v32 = vpack.c.bf16 %v2203_v23, %v2200_v22  ;;  %v2234_v22 = vld [vmem:[%s9603_s3 + $0x570] sm:$0xff] }
 0x255   :  { %1770 = vmatmul.mubr.f32.gmra.mrb[32].mxu0 %v7148_v1  ;;  %1851 = vmatmul.mubr.f32.gmra.mrb[34].mxu1 %v7148_v1  ;;  %v5390_v28 = vpack.c.bf16 %v1948_v21, %v1945_v20  ;;  %v2201_v21 = vld [vmem:[%s9603_s3 + $0x468] sm:$0xff]  ;;  %v2587_v1 = vld [vmem:[%s9604_s4 + $0x18] sm:$0xff] }
 0x256   :  { %4803 = vmatprep.mubr.msk.f32.mxu0 %vm40_vm6, %v1964_v40  ;;  %4806 = vmatprep.mubr.msk.f32.mxu1 %vm40_vm6, %v1964_v40  ;;  %v1967_v40 = vrot.slane %v7209_v31, 1 }
 0x257   :  { %5369 = vmatprep.subr.bf16.mxu0 %v5368_v36  ;;  %5404 = vmatprep.subr.bf16.mxu1 %v5917_v50  ;;  %v1960_v36 = vrot.slane %v7145_v0, 1 }
 0x258   :  { %5371 = vmatpush1.bf16.msra.mxu0 %v5370_v37  ;;  %5406 = vmatpush1.bf16.msra.mxu1 %v5405_v38  ;;  %v2183_v37 = vld [vmem:[%s9603_s3 + $0x3d8] sm:$0xff]  ;;  %v2182_v38 = vld [vmem:[%s9603_s3 + $0x3d0] sm:$0xff]  ;;  %v1968_v54 = vsel %vm796_vm12, %v1963_v26, %v1967_v40  ;;  %v2192_v26 = vld [vmem:[%s9603_s3 + $0x420] sm:$0xff] }
 0x259   :  { %5373 = vmatprep.subr.bf16.mxu0 %v5372_v41  ;;  %5407 = vmatprep.subr.bf16.mxu1 %v5917_v50  ;;  %v2187_v41 = vld [vmem:[%s9603_s3 + $0x3f8] sm:$0xff]  ;;  %v5424_v52 = vpack.c.bf16 %v2183_v37, %v2180_v35  ;;  %v5463_v53 = vpack.c.bf16 %v2185_v39, %v2182_v38  ;;  %v1966_v60 = vsel %vm796_vm12, %v1960_v36, %v1965_v29  ;;  %v2206_v37 = vld [vmem:[%s9603_s3 + $0x490] sm:$0xff]  ;;  %v2209_v38 = vld [vmem:[%s9603_s3 + $0x4a8] sm:$0xff] }
 0x25a   :  { %v5432_v12 = vpack.c.bf16 %v2195_v58, %v2192_v26  ;;  %v2211_v39 = vld [vmem:[%s9603_s3 + $0x4b8] sm:$0xff]  ;;  %v2222_v26 = vld [vmem:[%s9603_s3 + $0x510] sm:$0xff] }
 0x25c   :  { %5375 = vmatpush1.bf16.msra.mxu0 %v5374_v10  ;;  %5409 = vmatpush1.bf16.msra.mxu1 %v5408_v19  ;;  %v2186_v10 = vld [vmem:[%s9603_s3 + $0x3f0] sm:$0xff]  ;;  %v1961_v19 = vsel %vm796_vm12, %v1959_v47, %v1960_v36  ;;  %v2207_v36 = vld [vmem:[%s9603_s3 + $0x498] sm:$0xff] }
 0x25d   :  { %5377 = vmatprep.subr.bf16.mxu0 %v5376_v14  ;;  %5410 = vmatprep.subr.bf16.mxu1 %v5917_v50  ;;  %v5426_v14 = vpack.c.bf16 %v2190_v45, %v2187_v41  ;;  %v5475_v45 = vpack.c.bf16 %v2209_v38, %v2206_v37  ;;  %v2210_v47 = vld [vmem:[%s9603_s3 + $0x4b0] sm:$0xff]  ;;  %v2256_v37 = vrot.slane %v7209_v31, 2 }
 0x25e   :  { %v2178_v31 = vld [vmem:[#allocation3 + $0x30] sm:$0x3] }
 0x25f   :  { %v2257_v0 = vsel %vm232_vm4, %v2252_v9, %v2256_v37 }
 0x260   :  { %5379 = vmatpush1.bf16.msra.mxu0 %v5378_v59  ;;  %5412 = vmatpush1.bf16.msra.mxu1 %v5411_v62  ;;  %v1889_v59 = vld [vmem:[#allocation3 + $0x30] sm:$0x1]  ;;  %v2193_v62 = vld [vmem:[%s9603_s3 + $0x428] sm:$0xff] }
 0x261   :  { %5381 = vmatprep.subr.bf16.mxu0 %v5380_v51  ;;  %5413 = vmatprep.subr.bf16.mxu1 %v5917_v50  ;;  %v5428_v51 = vpack.c.bf16 %v2189_v24, %v2186_v10  ;;  %v1969_v61 = vrot.slane %v1889_v59, 1  ;;  %v5430_v63 = vpack.c.bf16 %v2196_v46, %v2193_v62  ;;  %v2215_v10 = vld [vmem:[%s9603_s3 + $0x4d8] sm:$0xff]  ;;  %v2221_v59 = vld [vmem:[%s9603_s3 + $0x508] sm:$0xff]  ;;  %v2226_v46 = vld [vmem:[%s9603_s3 + $0x530] sm:$0xff] }
 0x262   :  { %v2223_v62 = vld [vmem:[%s9603_s3 + $0x518] sm:$0xff] }
 0x263   :  { %v1970_v20 = vsel %vm796_vm12, %v1965_v29, %v1969_v61  ;;  %v2220_v29 = vld [vmem:[%s9603_s3 + $0x500] sm:$0xff]  ;;  %v5450_v58 = vpack.c.bf16 %v2226_v46, %v2223_v62  ;;  %v2599_v62 = vld [vmem:[%s9604_s4 + $0x78] sm:$0xff] }
 0x264   :  { %5383 = vmatpush1.bf16.msra.mxu0 %v5382_v7  ;;  %5415 = vmatpush1.bf16.msra.mxu1 %v5414_v2  ;;  %v2173_v7 = vld [vmem:[#allocation3 + $0x8] sm:$0xfc]  ;;  %v2194_v2 = vld [vmem:[%s9603_s3 + $0x430] sm:$0xff]  ;;  %v2224_v61 = vld [vmem:[%s9603_s3 + $0x520] sm:$0xff] }
 0x265   :  { %5385 = vmatprep.subr.bf16.mxu0 %v5384_v6  ;;  %5416 = vmatprep.subr.bf16.mxu1 %v5917_v50  ;;  %v1972_v6 = vsel %vm796_vm12, %v1967_v40, %v1971_v55  ;;  %v2251_v13 = vrot.slane %v2173_v7, 2  ;;  %v2214_v40 = vld [vmem:[%s9603_s3 + $0x4d0] sm:$0xff]  ;;  %v2229_v7 = vld [vmem:[%s9603_s3 + $0x548] sm:$0xff] }
 0x266   :  { %v5442_v49 = vpack.c.bf16 %v2214_v40, %v2211_v39  ;;  %v2218_v55 = vld [vmem:[%s9603_s3 + $0x4f0] sm:$0xff]  ;;  %v2179_v39 = vld [vmem:[#allocation3 + $0x38] sm:$0x3] }
 0x267   :  { %v2253_v25 = vsel %vm232_vm4, %v2251_v13, %v2252_v9  ;;  %v2230_v13 = vld [vmem:[%s9603_s3 + $0x550] sm:$0xff]  ;;  %v2585_v9 = vld [vmem:[%s9604_s4 + $0x8] sm:$0xff] }
 0x268   :  { %5387 = vmatpush1.bf16.msra.mxu0 %v5386_v15  ;;  %5418 = vmatpush1.bf16.msra.mxu1 %v5417_v18  ;;  %v5469_v15 = vpack.c.bf16 %v2197_v4, %v2194_v2  ;;  %v2198_v18 = vld [vmem:[%s9603_s3 + $0x450] sm:$0xff]  ;;  %v2232_v2 = vld [vmem:[%s9603_s3 + $0x560] sm:$0xff] }
 0x269   :  { %5389 = vmatprep.subr.bf16.mxu0 %v5388_v5  ;;  %5419 = vmatprep.subr.bf16.mxu1 %v5917_v50  ;;  %v5434_v5 = vpack.c.bf16 %v2202_v11, %v2199_v44  ;;  %v2228_v44 = vld [vmem:[%s9603_s3 + $0x540] sm:$0xff]  ;;  %v5454_v11 = vpack.c.bf16 %v2232_v2, %v2229_v7 }
 0x26a   :  { %v2612_v7 = vld [vmem:[%s9604_s4 + $0xe0] sm:$0xff] }
 0x26c   :  { %5391 = vmatpush1.bf16.msra.mxu0 %v5390_v28  ;;  %5421 = vmatpush1.bf16.msra.mxu1 %v5420_v30  ;;  %v2208_v28 = vld [vmem:[%s9603_s3 + $0x4a0] sm:$0xff]  ;;  %v5436_v30 = vpack.c.bf16 %v2201_v21, %v2198_v18  ;;  %v2235_v18 = vld [vmem:[%s9603_s3 + $0x578] sm:$0xff] }
 0x26d   :  { %5423 = vmatprep.subr.bf16.mxu0 %v5422_v34  ;;  %5462 = vmatprep.subr.bf16.mxu1 %v5917_v50  ;;  %v2204_v34 = vld [vmem:[%s9603_s3 + $0x480] sm:$0xff]  ;;  %v5438_v35 = vpack.c.bf16 %v2208_v28, %v2205_v27  ;;  %v2239_v28 = vld [vmem:[%s9603_s3 + $0x598] sm:$0xff] }
 0x26e   :  { %v5440_v41 = vpack.c.bf16 %v2207_v36, %v2204_v34  ;;  %v2236_v27 = vld [vmem:[%s9603_s3 + $0x580] sm:$0xff]  ;;  %v1595_v36 = vsub.s32 2, %v6095_v42 }
 0x26f   :  { %2047 = vmatmul.mubr.f32.vlgmr.msra.gmra.mrb[34].mxu0 %v1961_v19  ;;  %2130 = vmatmul.mubr.f32.vlgmr.msra.gmra.mrb[36].mxu1 %v1961_v19  ;;  %v2217_v19 = vld [vmem:[%s9603_s3 + $0x4e8] sm:$0xff]  ;;  %v2172_v34 = vld [vmem:[#allocation3] sm:$0xfc] }
 0x270   :  { %4804 = vmatprep.mubr.msk.f32.mxu0 %vm40_vm6, %v1968_v54  ;;  %4807 = vmatprep.mubr.msk.f32.mxu1 %vm40_vm6, %v1968_v54  ;;  %v5446_v48 = vpack.c.bf16 %v2220_v29, %v2217_v19  ;;  %v2219_v54 = vld [vmem:[%s9603_s3 + $0x4f8] sm:$0xff]  ;;  %v2248_v38 = vrot.slane %v2172_v34, 2  ;;  %v2594_v19 = vld [vmem:[%s9604_s4 + $0x50] sm:$0xff] }
 0x271   :  { %5425 = vmatpush1.bf16.msra.mxu0 %v5424_v52  ;;  %5464 = vmatpush1.bf16.msra.mxu1 %v5463_v53  ;;  %v2213_v52 = vld [vmem:[%s9603_s3 + $0x4c8] sm:$0xff]  ;;  %v2212_v53 = vld [vmem:[%s9603_s3 + $0x4c0] sm:$0xff] }
 0x272   :  { %5427 = vmatprep.subr.bf16.mxu0 %v5426_v14  ;;  %5465 = vmatprep.subr.bf16.mxu1 %v5917_v50  ;;  %v5444_v14 = vpack.c.bf16 %v2213_v52, %v2210_v47  ;;  %v5478_v24 = vpack.c.bf16 %v2215_v10, %v2212_v53  ;;  %v2258_v47 = vrot.slane %v2178_v31, 2  ;;  %v2584_v53 = vld [vmem:[%s9604_s4] sm:$0xff]  ;;  %v2591_v10 = vld [vmem:[%s9604_s4 + $0x38] sm:$0xff] }
 0x273   :  { %2053 = vmatmul.mubr.f32.gmra.mrb[36].mxu0 %v1966_v60  ;;  %2135 = vmatmul.mubr.f32.gmra.mrb[38].mxu1 %v1966_v60  ;;  %v2225_v60 = vld [vmem:[%s9603_s3 + $0x528] sm:$0xff]  ;;  %v5496_v29 = vpack.c.bf16 %v2594_v19, %v2591_v10  ;;  %v2640_v31 = vld [vmem:[%s9604_s4 + $0x1c0] sm:$0xff]  ;;  %v2635_v19 = vld [vmem:[%s9604_s4 + $0x198] sm:$0xff] }
 0x274   :  { %4805 = vmatprep.mubr.msk.f32.mxu0 %vm40_vm6, %v1972_v6  ;;  %4808 = vmatprep.mubr.msk.f32.mxu1 %vm40_vm6, %v1972_v6  ;;  %v5452_v4 = vpack.c.bf16 %v2225_v60, %v2222_v26  ;;  %v2259_v17 = vsel %vm232_vm4, %v2254_v8, %v2258_v47  ;;  %v5494_v8 = vpack.c.bf16 %v2587_v1, %v2584_v53  ;;  %v2605_v60 = vld [vmem:[%s9604_s4 + $0xa8] sm:$0xff]  ;;  %v2643_v47 = vld [vmem:[%s9604_s4 + $0x1d8] sm:$0xff]  ;;  %v2632_v10 = vld [vmem:[%s9604_s4 + $0x180] sm:$0xff] }
 0x275   :  { %5429 = vmatpush1.bf16.msra.mxu0 %v5428_v51  ;;  %5467 = vmatpush1.bf16.msra.mxu1 %v5466_v56  ;;  %v5448_v51 = vpack.c.bf16 %v2219_v54, %v2216_v33  ;;  %v5481_v56 = vpack.c.bf16 %v2221_v59, %v2218_v55  ;;  %v2600_v54 = vld [vmem:[%s9604_s4 + $0x80] sm:$0xff] }
 0x276   :  { %5431 = vmatprep.subr.bf16.mxu0 %v5430_v63  ;;  %5468 = vmatprep.subr.bf16.mxu1 %v5917_v50  ;;  %v2227_v63 = vld [vmem:[%s9603_s3 + $0x538] sm:$0xff]  ;;  %v2596_v59 = vld [vmem:[%s9604_s4 + $0x60] sm:$0xff] }
 0x277   :  { %2059 = vmatmul.mubr.f32.gmra.mrb[38].mxu0 %v1970_v20  ;;  %2140 = vmatmul.mubr.f32.gmra.mrb[40].mxu1 %v1970_v20  ;;  %v5484_v6 = vpack.c.bf16 %v2227_v63, %v2224_v61  ;;  %v2238_v20 = vld [vmem:[%s9603_s3 + $0x590] sm:$0xff]  ;;  %v5502_v46 = vpack.c.bf16 %v2599_v62, %v2596_v59  ;;  %v2609_v63 = vld [vmem:[%s9604_s4 + $0xc8] sm:$0xff]  ;;  %v2648_v62 = vld [vmem:[%s9604_s4 + $0x200] sm:$0xff] }
 0x278   :  { %4809 = vmatprep.mubr.msk.f32.mxu0 %vm40_vm6, %v2253_v25  ;;  %4812 = vmatprep.mubr.msk.f32.mxu1 %vm40_vm6, %v2253_v25  ;;  %v5458_v23 = vpack.c.bf16 %v2238_v20, %v2235_v18  ;;  %v2237_v25 = vld [vmem:[%s9603_s3 + $0x588] sm:$0xff]  ;;  %v5508_v2 = vpack.c.bf16 %v2612_v7, %v2609_v63  ;;  %v2598_v63 = vld [vmem:[%s9604_s4 + $0x70] sm:$0xff] }
 0x279   :  { %5433 = vmatpush1.bf16.msra.mxu0 %v5432_v12  ;;  %5470 = vmatpush1.bf16.msra.mxu1 %v5469_v15  ;;  %v2231_v12 = vld [vmem:[%s9603_s3 + $0x558] sm:$0xff]  ;;  %v2233_v15 = vld [vmem:[%s9603_s3 + $0x568] sm:$0xff] }
 0x27a   :  { %5435 = vmatprep.subr.bf16.mxu0 %v5434_v5  ;;  %5471 = vmatprep.subr.bf16.mxu1 %v5917_v50  ;;  %v5456_v5 = vpack.c.bf16 %v2231_v12, %v2228_v44  ;;  %v5487_v21 = vpack.c.bf16 %v2233_v15, %v2230_v13  ;;  %v2618_v12 = vld [vmem:[%s9604_s4 + $0x110] sm:$0xff]  ;;  %v2617_v18 = vld [vmem:[%s9604_s4 + $0x108] sm:$0xff] }
 0x27b   :  { %v2614_v13 = vld [vmem:[%s9604_s4 + $0xf0] sm:$0xff]  ;;  %v2621_v20 = vld [vmem:[%s9604_s4 + $0x128] sm:$0xff] }
 0x27c   :  { %v2645_v59 = vld [vmem:[%s9604_s4 + $0x1e8] sm:$0xff] }
 0x27d   :  { %5437 = vmatpush1.bf16.msra.mxu0 %v5436_v30  ;;  %5473 = vmatpush1.bf16.msra.mxu1 %v5472_v32  ;;  %v5460_v30 = vpack.c.bf16 %v2237_v25, %v2234_v22  ;;  %v5490_v32 = vpack.c.bf16 %v2239_v28, %v2236_v27  ;;  %v2623_v25 = vld [vmem:[%s9604_s4 + $0x138] sm:$0xff]  ;;  %v2630_v28 = vld [vmem:[%s9604_s4 + $0x170] sm:$0xff]  ;;  %v2601_v7 = vld [vmem:[%s9604_s4 + $0x88] sm:$0xff] }
 0x27e   :  { %5439 = vmatprep.subr.bf16.mxu0 %v5438_v35  ;;  %5474 = vmatprep.subr.bf16.mxu1 %v5917_v50  ;;  %v7531_v35 = vld [vmem:[%s9607_s7] sm:$0x7]  ;;  %v2627_v27 = vld [vmem:[%s9604_s4 + $0x158] sm:$0xff] }
 0x27f   :  { %v1596_v40 = vrot.slane %v7531_v35, %v1595_v36 }
 0x281   :  { %5441 = vmatpush1.bf16.msra.mxu0 %v5440_v41  ;;  %5476 = vmatpush1.bf16.msra.mxu1 %v5475_v45  ;;  %v2250_v41 = vsel %vm232_vm4, %v2248_v38, %v2249_v3  ;;  %1602 = vst.msk [vmem:[#allocation5 + $0x10] sm:$0xff] %vm60_vm3, %v1596_v40  ;;  %v7542_v45 = vld [vmem:[#allocation4] sm:$0xff]  ;;  %1605 = vst.msk [vmem:[#allocation5 + $0x28] sm:$0xff] %vm60_vm3, %v1596_v40  ;;  %v2260_v3 = vrot.slane %v2179_v39, 2  ;;  %v2586_v39 = vld [vmem:[%s9604_s4 + $0x10] sm:$0xff] }
 0x282   :  { %5443 = vmatprep.subr.bf16.mxu0 %v5442_v49  ;;  %5477 = vmatprep.subr.bf16.mxu1 %v5917_v50  ;;  %61 = vst.msk [vmem:[#allocation4 + $0x10] sm:$0xff] %vm60_vm3, %v7542_v45  ;;  %64 = vst.msk [vmem:[#allocation4 + $0x28] sm:$0xff] %vm60_vm3, %v7542_v45 }
 0x283   :  { %67 = vst.msk [vmem:[#allocation4 + $0x40] sm:$0xff] %vm60_vm3, %v7542_v45  ;;  %1608 = vst.msk [vmem:[#allocation5 + $0x40] sm:$0xff] %vm60_vm3, %v1596_v40  ;;  %v2261_v49 = vsel %vm232_vm4, %v2256_v37, %v2260_v3  ;;  %v2626_v37 = vld [vmem:[%s9604_s4 + $0x150] sm:$0xff]  ;;  %v2589_v40 = vld [vmem:[%s9604_s4 + $0x28] sm:$0xff] }
 0x284   :  { %v5574_v3 = vpack.c.bf16 %v2589_v40, %v2586_v39  ;;  %v2610_v39 = vld [vmem:[%s9604_s4 + $0xd0] sm:$0xff]  ;;  %v2613_v40 = vld [vmem:[%s9604_s4 + $0xe8] sm:$0xff] }
 0x285   :  { %5445 = vmatpush1.bf16.msra.mxu0 %v5444_v14  ;;  %5479 = vmatpush1.bf16.msra.mxu1 %v5478_v24  ;;  %v2590_v14 = vld [vmem:[%s9604_s4 + $0x30] sm:$0xff]  ;;  %v2593_v24 = vld [vmem:[%s9604_s4 + $0x48] sm:$0xff] }
 0x286   :  { %5447 = vmatprep.subr.bf16.mxu0 %v5446_v48  ;;  %5480 = vmatprep.subr.bf16.mxu1 %v5917_v50  ;;  %v5498_v33 = vpack.c.bf16 %v2593_v24, %v2590_v14  ;;  %v2597_v48 = vld [vmem:[%s9604_s4 + $0x68] sm:$0xff]  ;;  %v2642_v14 = vld [vmem:[%s9604_s4 + $0x1d0] sm:$0xff]  ;;  %v5526_v24 = vpack.c.bf16 %v2635_v19, %v2632_v10  ;;  %v2672_v19 = vld [vmem:[%s9604_s4 + $0x2c0] sm:$0xff] }
 0x287   :  { %v5500_v55 = vpack.c.bf16 %v2600_v54, %v2597_v48  ;;  %v2638_v48 = vld [vmem:[%s9604_s4 + $0x1b0] sm:$0xff]  ;;  %v2641_v54 = vld [vmem:[%s9604_s4 + $0x1c8] sm:$0xff] }
 0x288   :  { %v2669_v10 = vld [vmem:[%s9604_s4 + $0x2a8] sm:$0xff] }
 0x289   :  { %5449 = vmatpush1.bf16.msra.mxu0 %v5448_v51  ;;  %5482 = vmatpush1.bf16.msra.mxu1 %v5481_v56  ;;  %v2603_v51 = vld [vmem:[%s9604_s4 + $0x98] sm:$0xff]  ;;  %v2606_v56 = vld [vmem:[%s9604_s4 + $0xb0] sm:$0xff] }
 0x28a   :  { %5451 = vmatprep.subr.bf16.mxu0 %v5450_v58  ;;  %5483 = vmatprep.subr.bf16.mxu1 %v5917_v50  ;;  %v5504_v26 = vpack.c.bf16 %v2606_v56, %v2603_v51  ;;  %v2602_v58 = vld [vmem:[%s9604_s4 + $0x90] sm:$0xff]  ;;  %v5532_v51 = vpack.c.bf16 %v2648_v62, %v2645_v59  ;;  %v2649_v56 = vld [vmem:[%s9604_s4 + $0x208] sm:$0xff] }
 0x28b   :  { %v5506_v61 = vpack.c.bf16 %v2605_v60, %v2602_v58  ;;  %v2647_v58 = vld [vmem:[%s9604_s4 + $0x1f8] sm:$0xff]  ;;  %v2622_v59 = vld [vmem:[%s9604_s4 + $0x130] sm:$0xff]  ;;  %v2625_v62 = vld [vmem:[%s9604_s4 + $0x148] sm:$0xff] }
 0x28d   :  { %5453 = vmatpush1.bf16.msra.mxu0 %v5452_v4  ;;  %5485 = vmatpush1.bf16.msra.mxu1 %v5484_v6  ;;  %v2608_v4 = vld [vmem:[%s9604_s4 + $0xc0] sm:$0xff]  ;;  %v2611_v6 = vld [vmem:[%s9604_s4 + $0xd8] sm:$0xff] }
 0x28e   :  { %5455 = vmatprep.subr.bf16.mxu0 %v5454_v11  ;;  %5486 = vmatprep.subr.bf16.mxu1 %v5917_v50  ;;  %v5510_v44 = vpack.c.bf16 %v2611_v6, %v2608_v4  ;;  %v2615_v11 = vld [vmem:[%s9604_s4 + $0xf8] sm:$0xff]  ;;  %v2654_v6 = vld [vmem:[%s9604_s4 + $0x230] sm:$0xff] }
 0x28f   :  { %v5512_v15 = vpack.c.bf16 %v2618_v12, %v2615_v11  ;;  %v2651_v4 = vld [vmem:[%s9604_s4 + $0x218] sm:$0xff] }
 0x290   :  { %v5536_v11 = vpack.c.bf16 %v2654_v6, %v2651_v4  ;;  %v2655_v12 = vld [vmem:[%s9604_s4 + $0x238] sm:$0xff]  ;;  %v2628_v4 = vld [vmem:[%s9604_s4 + $0x160] sm:$0xff] }
 0x291   :  { %5457 = vmatpush1.bf16.msra.mxu0 %v5456_v5  ;;  %5488 = vmatpush1.bf16.msra.mxu1 %v5487_v21  ;;  %v2624_v5 = vld [vmem:[%s9604_s4 + $0x140] sm:$0xff]  ;;  %v5514_v21 = vpack.c.bf16 %v2617_v18, %v2614_v13  ;;  %v2650_v13 = vld [vmem:[%s9604_s4 + $0x210] sm:$0xff]  ;;  %v2631_v6 = vld [vmem:[%s9604_s4 + $0x178] sm:$0xff] }
 0x292   :  { %5459 = vmatprep.subr.bf16.mxu0 %v5458_v23  ;;  %5489 = vmatprep.subr.bf16.mxu1 %v5917_v50  ;;  %v5516_v22 = vpack.c.bf16 %v2624_v5, %v2621_v20  ;;  %v2620_v23 = vld [vmem:[%s9604_s4 + $0x120] sm:$0xff] }
 0x293   :  { %v5518_v34 = vpack.c.bf16 %v2623_v25, %v2620_v23  ;;  %v2604_v5 = vld [vmem:[%s9604_s4 + $0xa0] sm:$0xff]  ;;  %v2657_v23 = vld [vmem:[%s9604_s4 + $0x248] sm:$0xff] }
 0x294   :  { %v2660_v25 = vld [vmem:[%s9604_s4 + $0x260] sm:$0xff] }
 0x295   :  { %5461 = vmatpush1.bf16.msra.mxu0 %v5460_v30  ;;  %5491 = vmatpush1.bf16.msra.mxu1 %v5490_v32  ;;  %v2634_v30 = vld [vmem:[%s9604_s4 + $0x190] sm:$0xff]  ;;  %v2637_v32 = vld [vmem:[%s9604_s4 + $0x1a8] sm:$0xff] }
 0x296   :  { %v5572_v38 = vpack.c.bf16 %v2637_v32, %v2634_v30  ;;  %v2661_v30 = vld [vmem:[%s9604_s4 + $0x268] sm:$0xff]  ;;  %v2656_v32 = vld [vmem:[%s9604_s4 + $0x240] sm:$0xff] }
 0x298   :  { %2336 = vmatmul.mubr.f32.vlgmr.msra.gmra.mrb[40].mxu0 %v2250_v41  ;;  %2419 = vmatmul.mubr.f32.vlgmr.msra.gmra.mrb[42].mxu1 %v2250_v41  ;;  %v5520_v41 = vpack.c.bf16 %v2630_v28, %v2627_v27  ;;  %v2658_v27 = vld [vmem:[%s9604_s4 + $0x250] sm:$0xff]  ;;  %v5540_v28 = vpack.c.bf16 %v2660_v25, %v2657_v23  ;;  %v1614_v23 = vld [vmem:[#allocation5 + $0x28] sm:$0xff] }
 0x299   :  { %4810 = vmatprep.mubr.msk.f32.mxu0 %vm40_vm6, %v2257_v0  ;;  %4813 = vmatprep.mubr.msk.f32.mxu1 %vm40_vm6, %v2257_v0  ;;  %v2629_v0 = vld [vmem:[%s9604_s4 + $0x168] sm:$0xff] }
 0x29a   :  { %5573 = vmatprep.subr.bf16.mxu1 %v5572_v38  ;;  %v5522_v53 = vpack.c.bf16 %v2629_v0, %v2626_v37  ;;  %v5588_v37 = vpack.c.bf16 %v2661_v30, %v2658_v27  ;;  %v2663_v0 = vld [vmem:[%s9604_s4 + $0x278] sm:$0xff] }
 0x29b   :  { %5575 = vmatpush3.bf16.msra.mxu1 %v5574_v3  ;;  %v2666_v3 = vld [vmem:[%s9604_s4 + $0x290] sm:$0xff] }
 0x29c   :  { %2342 = vmatmul.mubr.f32.gmra.mrb[42].mxu0 %v7179_v16  ;;  %2424 = vmatmul.mubr.f32.gmra.mrb[44].mxu1 %v7179_v16  ;;  %v2588_v16 = vld [vmem:[%s9604_s4 + $0x20] sm:$0xff] }
 0x29d   :  { %4811 = vmatprep.mubr.msk.f32.mxu0 %vm40_vm6, %v2261_v49  ;;  %4814 = vmatprep.mubr.msk.f32.mxu1 %vm40_vm6, %v2261_v49  ;;  %v5492_v52 = vpack.c.bf16 %v2588_v16, %v2585_v9  ;;  %v2633_v49 = vld [vmem:[%s9604_s4 + $0x188] sm:$0xff]  ;;  %v5576_v9 = vpack.c.bf16 %v2643_v47, %v2640_v31  ;;  %v2592_v16 = vld [vmem:[%s9604_s4 + $0x40] sm:$0xff]  ;;  %v5544_v47 = vpack.c.bf16 %v2666_v3, %v2663_v0  ;;  %vm70_vm6 = vcmask 517120  }
 0x29e   :  { %v2664_v31 = vld [vmem:[%s9604_s4 + $0x280] sm:$0xff]  ;;  %71 = vst.msk [vmem:[#allocation4 + $0x58] sm:$0x3] %vm70_vm6, %v7542_v45  ;;  %v1588_v0 = vrot.slane %v7531_v35, %v6267_v57  ;;  %v1592_v3 = vrot.slane %v7531_v35, %v6098_v43 }
 0x29f   :  { %5493 = vmatprep.subr.bf16.mxu0 %v5492_v52  ;;  %v2595_v52 = vld [vmem:[%s9604_s4 + $0x58] sm:$0xff]  ;;  %5577 = vmatprep.subr.bf16.mxu1 %v5576_v9  ;;  %v2665_v9 = vld [vmem:[%s9604_s4 + $0x288] sm:$0xff] }
 0x2a0   :  { %2348 = vmatmul.mubr.f32.gmra.mrb[44].mxu0 %v2259_v17  ;;  %2429 = vmatmul.mubr.f32.gmra.mrb[46].mxu1 %v2259_v17  ;;  %v2636_v17 = vld [vmem:[%s9604_s4 + $0x1a0] sm:$0xff]  ;;  %v5578_v1 = vpack.c.bf16 %v2595_v52, %v2592_v16 }
 0x2a1   :  { %5495 = vmatpush1.bf16.msra.mxu0 %v5494_v8  ;;  %v5524_v8 = vpack.c.bf16 %v2636_v17, %v2633_v49  ;;  %v2667_v49 = vld [vmem:[%s9604_s4 + $0x298] sm:$0xff]  ;;  %v2662_v17 = vld [vmem:[%s9604_s4 + $0x270] sm:$0xff] }
 0x2a2   :  { %5497 = vmatprep.subr.bf16.mxu0 %v5496_v29  ;;  %v2639_v29 = vld [vmem:[%s9604_s4 + $0x1b8] sm:$0xff]  ;;  %5579 = vmatpush3.bf16.msra.mxu1 %v5578_v1  ;;  %v5592_v16 = vpack.c.bf16 %v2667_v49, %v2664_v31  ;;  %v5546_v52 = vpack.c.bf16 %v2665_v9, %v2662_v17 }
 0x2a3   :  { %v2619_v1 = vld [vmem:[%s9604_s4 + $0x118] sm:$0xff] }
 0x2a5   :  { %5499 = vmatpush1.bf16.msra.mxu0 %v5498_v33  ;;  %v5528_v33 = vpack.c.bf16 %v2642_v14, %v2639_v29  ;;  %v2670_v29 = vld [vmem:[%s9604_s4 + $0x2b0] sm:$0xff]  ;;  %v5548_v14 = vpack.c.bf16 %v2672_v19, %v2669_v10 }
 0x2a6   :  { %5501 = vmatprep.subr.bf16.mxu0 %v5500_v55  ;;  %v5530_v55 = vpack.c.bf16 %v2641_v54, %v2638_v48  ;;  %v2671_v48 = vld [vmem:[%s9604_s4 + $0x2b8] sm:$0xff] }
 0x2a9   :  { %5503 = vmatpush1.bf16.msra.mxu0 %v5502_v46  ;;  %v2646_v46 = vld [vmem:[%s9604_s4 + $0x1f0] sm:$0xff] }
 0x2aa   :  { %5505 = vmatprep.subr.bf16.mxu0 %v5504_v26  ;;  %v2644_v26 = vld [vmem:[%s9604_s4 + $0x1e0] sm:$0xff]  ;;  %v5580_v60 = vpack.c.bf16 %v2649_v56, %v2646_v46  ;;  %v5598_v46 = vpack.c.bf16 %v2625_v62, %v2622_v59  ;;  %v2678_v56 = vld [vmem:[%s9604_s4 + $0x2f0] sm:$0xff] }
 0x2ac   :  { %5581 = vmatprep.subr.bf16.mxu1 %v5580_v60  ;;  %v2679_v60 = vld [vmem:[%s9604_s4 + $0x2f8] sm:$0xff] }
 0x2ad   :  { %5507 = vmatpush1.bf16.msra.mxu0 %v5506_v61  ;;  %v5534_v61 = vpack.c.bf16 %v2647_v58, %v2644_v26  ;;  %v2676_v26 = vld [vmem:[%s9604_s4 + $0x2e0] sm:$0xff] }
 0x2ae   :  { %5509 = vmatprep.subr.bf16.mxu0 %v5508_v2  ;;  %v5582_v2 = vpack.c.bf16 %v2601_v7, %v2598_v63  ;;  %v2677_v63 = vld [vmem:[%s9604_s4 + $0x2e8] sm:$0xff]  ;;  %v5600_v7 = vpack.c.bf16 %v2679_v60, %v2676_v26 }
 0x2b0   :  { %5583 = vmatpush3.bf16.msra.mxu1 %v5582_v2 }
 0x2b1   :  { %5511 = vmatpush1.bf16.msra.mxu0 %v5510_v44  ;;  %v2652_v44 = vld [vmem:[%s9604_s4 + $0x220] sm:$0xff] }
 0x2b2   :  { %5513 = vmatprep.subr.bf16.mxu0 %v5512_v15  ;;  %v2653_v15 = vld [vmem:[%s9604_s4 + $0x228] sm:$0xff]  ;;  %v5584_v18 = vpack.c.bf16 %v2655_v12, %v2652_v44  ;;  %v5602_v44 = vpack.c.bf16 %v2631_v6, %v2628_v4  ;;  %v2684_v12 = vld [vmem:[%s9604_s4 + $0x320] sm:$0xff] }
 0x2b3   :  { %v5538_v20 = vpack.c.bf16 %v2653_v15, %v2650_v13  ;;  %v1611_v15 = vld [vmem:[#allocation5 + $0x10] sm:$0xff] }
 0x2b4   :  { %5585 = vmatprep.subr.bf16.mxu1 %v5584_v18 }
 0x2b5   :  { %5515 = vmatpush1.bf16.msra.mxu0 %v5514_v21  ;;  %v2607_v21 = vld [vmem:[%s9604_s4 + $0xb8] sm:$0xff] }
 0x2b6   :  { %5517 = vmatprep.subr.bf16.mxu0 %v5516_v22  ;;  %v5586_v22 = vpack.c.bf16 %v2607_v21, %v2604_v5 }
 0x2b8   :  { %5587 = vmatpush3.bf16.msra.mxu1 %v5586_v22 }
 0x2b9   :  { %5519 = vmatpush1.bf16.msra.mxu0 %v5518_v34  ;;  %v2659_v34 = vld [vmem:[%s9604_s4 + $0x258] sm:$0xff]  ;;  %5589 = vmatprep.subr.bf16.mxu1 %v5588_v37 }
 0x2ba   :  { %5521 = vmatprep.subr.bf16.mxu0 %v5520_v41  ;;  %v5542_v38 = vpack.c.bf16 %v2659_v34, %v2656_v32  ;;  %v5590_v41 = vpack.c.bf16 %v2613_v40, %v2610_v39  ;;  %v1617_v34 = vld [vmem:[#allocation5 + $0x40] sm:$0xff] }
 0x2bc   :  { %5591 = vmatpush3.bf16.msra.mxu1 %v5590_v41 }
 0x2bd   :  { %5523 = vmatpush1.bf16.msra.mxu0 %v5522_v53  ;;  %v2616_v53 = vld [vmem:[%s9604_s4 + $0x100] sm:$0xff]  ;;  %5593 = vmatprep.subr.bf16.mxu1 %v5592_v16 }
 0x2be   :  { %5525 = vmatprep.subr.bf16.mxu0 %v5524_v8  ;;  %v5594_v8 = vpack.c.bf16 %v2619_v1, %v2616_v53 }
 0x2c0   :  { %5595 = vmatpush3.bf16.msra.mxu1 %v5594_v8 }
 0x2c1   :  { %5527 = vmatpush1.bf16.msra.mxu0 %v5526_v24  ;;  %v2673_v24 = vld [vmem:[%s9604_s4 + $0x2c8] sm:$0xff] }
 0x2c2   :  { %5529 = vmatprep.subr.bf16.mxu0 %v5528_v33  ;;  %v2668_v33 = vld [vmem:[%s9604_s4 + $0x2a0] sm:$0xff]  ;;  %v5596_v54 = vpack.c.bf16 %v2673_v24, %v2670_v29 }
 0x2c4   :  { %5597 = vmatprep.subr.bf16.mxu1 %v5596_v54 }
 0x2c5   :  { %5531 = vmatpush1.bf16.msra.mxu0 %v5530_v55  ;;  %v5550_v55 = vpack.c.bf16 %v2671_v48, %v2668_v33  ;;  %5599 = vmatpush3.bf16.msra.mxu1 %v5598_v46 }
 0x2c6   :  { %5533 = vmatprep.subr.bf16.mxu0 %v5532_v51  ;;  %v2675_v51 = vld [vmem:[%s9604_s4 + $0x2d8] sm:$0xff]  ;;  %5601 = vmatprep.subr.bf16.mxu1 %v5600_v7 }
 0x2c7   :  { %v5552_v58 = vpack.c.bf16 %v2678_v56, %v2675_v51 }
 0x2c9   :  { %5535 = vmatpush1.bf16.msra.mxu0 %v5534_v61  ;;  %v2674_v61 = vld [vmem:[%s9604_s4 + $0x2d0] sm:$0xff]  ;;  %5603 = vmatpush3.bf16.msra.mxu1 %v5602_v44 }
 0x2ca   :  { %5537 = vmatprep.subr.bf16.mxu0 %v5536_v11  ;;  %v5554_v2 = vpack.c.bf16 %v2677_v63, %v2674_v61  ;;  %5604 = vmatprep.subr.bf16.mxu1 %v5917_v50  ;;  %v2681_v11 = vld [vmem:[%s9604_s4 + $0x308] sm:$0xff] }
 0x2cb   :  { %v5556_v13 = vpack.c.bf16 %v2684_v12, %v2681_v11 }
 0x2cd   :  { %5539 = vmatpush1.bf16.msra.mxu0 %v5538_v20 }
 0x2ce   :  { %5541 = vmatprep.subr.bf16.mxu0 %v5540_v28 }
 0x2d1   :  { %5543 = vmatpush1.bf16.msra.mxu0 %v5542_v38 }
 0x2d2   :  { %5545 = vmatprep.subr.bf16.mxu0 %v5544_v47 }
 0x2d5   :  { %5547 = vmatpush1.bf16.msra.mxu0 %v5546_v52 }
 0x2d6   :  { %5549 = vmatprep.subr.bf16.mxu0 %v5548_v14 }
 0x2d9   :  { %5551 = vmatpush1.bf16.msra.mxu0 %v5550_v55 }
 0x2da   :  { %5553 = vmatprep.subr.bf16.mxu0 %v5552_v58 }
 0x2dd   :  { %5555 = vmatpush1.bf16.msra.mxu0 %v5554_v2 }
 0x2de   :  { %5557 = vmatprep.subr.bf16.mxu0 %v5556_v13 }
 0x31a   :  { %v1759_v18 = vpop.f32.mrb[28].mxu0  ;;  %v1842_v20 = vpop.f32.mrb[30].mxu1 }
 0x31b   :  { %v1858_v5 = vadd.f32 %v1842_v20, %v1611_v15  ;;  %v1761_v21 = vpop.f32.mrb[29].mxu0  ;;  %v1844_v22 = vpop.f32.mrb[31].mxu1  ;;  %v1856_v31 = vadd.f32 %v1759_v18, %v1588_v0  ;;  %v2540_v18 = vld [vmem:[%s9608_s8] sm:$0x7] }
 0x31c   :  { %v1857_v47 = vadd.f32 %v1761_v21, %v1592_v3 }
 0x31d   :  { %1867 = vst.msk [vmem:[#allocation5 + $0x10] sm:$0xff] %vm60_vm3, %v1858_v5 }
 0x322   :  { %v1765_v25 = vpop.f32.mrb[30].mxu0  ;;  %v1847_v27 = vpop.f32.mrb[32].mxu1 }
 0x323   :  { %v1861_v28 = vadd.f32 %v1847_v27, %v1614_v23  ;;  %v1767_v30 = vpop.f32.mrb[31].mxu0  ;;  %v1849_v32 = vpop.f32.mrb[33].mxu1  ;;  %v1859_v10 = vadd.f32 %v1765_v25, %v1588_v0 }
 0x324   :  { %v1876_v17 = vld [vmem:[#allocation5 + $0x10] sm:$0xff]  ;;  %v1860_v19 = vadd.f32 %v1767_v30, %v1592_v3 }
 0x325   :  { %1870 = vst.msk [vmem:[#allocation5 + $0x28] sm:$0xff] %vm60_vm3, %v1861_v28 }
 0x328   :  { %v1771_v37 = vpop.f32.mrb[32].mxu0  ;;  %v1852_v38 = vpop.f32.mrb[34].mxu1 }
 0x329   :  { %v1864_v39 = vadd.f32 %v1852_v38, %v1617_v34  ;;  %v1773_v40 = vpop.f32.mrb[33].mxu0  ;;  %v1854_v41 = vpop.f32.mrb[35].mxu1  ;;  %v1862_v59 = vadd.f32 %v1771_v37, %v1588_v0  ;;  %v7882_v37 = vrot.slane %v2540_v18, %v1595_v36  ;;  %v2680_v36 = vld [vmem:[%s9604_s4 + $0x300] sm:$0xff] }
 0x32a   :  { %v1863_v62 = vadd.f32 %v1773_v40, %v1592_v3 }
 0x32b   :  { %1873 = vst.msk [vmem:[#allocation5 + $0x40] sm:$0xff] %vm60_vm3, %v1864_v39 }
 0x32c   :  { %v1879_v14 = vld [vmem:[#allocation5 + $0x28] sm:$0xff] }
 0x332   :  { %v1882_v51 = vld [vmem:[#allocation5 + $0x40] sm:$0xff] }
 0x342   :  { %v2048_v49 = vpop.f32.mrb[34].mxu0  ;;  %v2131_v9 = vpop.f32.mrb[36].mxu1 }
 0x343   :  { %v2145_v16 = vadd.f32 %v2048_v49, %v1856_v31  ;;  %v2147_v52 = vadd.f32 %v2131_v9, %v1876_v17  ;;  %v2050_v53 = vpop.f32.mrb[35].mxu0  ;;  %v2133_v1 = vpop.f32.mrb[37].mxu1  ;;  %v2683_v9 = vld [vmem:[%s9604_s4 + $0x318] sm:$0xff] }
 0x344   :  { %v2146_v8 = vadd.f32 %v2050_v53, %v1857_v47  ;;  %v2685_v53 = vld [vmem:[%s9604_s4 + $0x328] sm:$0xff]  ;;  %v2687_v1 = vld [vmem:[%s9604_s4 + $0x338] sm:$0xff] }
 0x345   :  { %2156 = vst.msk [vmem:[#allocation5 + $0x10] sm:$0xff] %vm60_vm3, %v2147_v52 }
 0x346   :  { %v2054_v29 = vpop.f32.mrb[36].mxu0  ;;  %v2136_v24 = vpop.f32.mrb[38].mxu1 }
 0x347   :  { %v2148_v33 = vadd.f32 %v2054_v29, %v1859_v10  ;;  %v2150_v48 = vadd.f32 %v2136_v24, %v1879_v14  ;;  %v2056_v35 = vpop.f32.mrb[37].mxu0  ;;  %v2138_v54 = vpop.f32.mrb[39].mxu1  ;;  %v7912_v29 = vld [vmem:[%s9604_s4 + $0x330] sm:$0xff]  ;;  %v7917_v14 = vld [vmem:[%s9604_s4 + $0x348] sm:$0xff]  ;;  %v7922_v24 = vld [vmem:[%s9604_s4 + $0x340] sm:$0xff] }
 0x348   :  { %v2149_v55 = vadd.f32 %v2056_v35, %v1860_v19 }
 0x349   :  { %2159 = vst.msk [vmem:[#allocation5 + $0x28] sm:$0xff] %vm60_vm3, %v2150_v48 }
 0x34a   :  { %v2060_v46 = vpop.f32.mrb[38].mxu0  ;;  %v2141_v56 = vpop.f32.mrb[40].mxu1 }
 0x34b   :  { %v2151_v26 = vadd.f32 %v2060_v46, %v1862_v59  ;;  %v2153_v58 = vadd.f32 %v2141_v56, %v1882_v51  ;;  %v2062_v60 = vpop.f32.mrb[39].mxu0  ;;  %v2143_v61 = vpop.f32.mrb[41].mxu1  ;;  %v5558_v51 = vpack.c.bf16 %v2683_v9, %v2680_v36  ;;  %v2698_v36 = vld [vmem:[%s9604_s4 + $0x390] sm:$0xff]  ;;  %v2701_v9 = vld [vmem:[%s9604_s4 + $0x3a8] sm:$0xff] }
 0x34c   :  { %v2152_v63 = vadd.f32 %v2062_v60, %v1863_v62  ;;  %v2165_v2 = vld [vmem:[#allocation5 + $0x10] sm:$0xff] }
 0x34d   :  { %2162 = vst.msk [vmem:[#allocation5 + $0x40] sm:$0xff] %vm60_vm3, %v2153_v58 }
 0x350   :  { %v2168_v5 = vld [vmem:[#allocation5 + $0x28] sm:$0xff] }
 0x354   :  { %v2171_v39 = vld [vmem:[#allocation5 + $0x40] sm:$0xff] }
 0x36b   :  { %v2337_v7 = vpop.f32.mrb[40].mxu0  ;;  %v2420_v4 = vpop.f32.mrb[42].mxu1 }
 0x36c   :  { %v2434_v6 = vadd.f32 %v2337_v7, %v2145_v16  ;;  %v2436_v44 = vadd.f32 %v2420_v4, %v2165_v2  ;;  %v2339_v11 = vpop.f32.mrb[41].mxu0  ;;  %v2422_v12 = vpop.f32.mrb[43].mxu1  ;;  %v2682_v16 = vld [vmem:[%s9604_s4 + $0x310] sm:$0xff]  ;;  %v2693_v7 = vld [vmem:[%s9604_s4 + $0x368] sm:$0xff] }
 0x36d   :  { %v2435_v13 = vadd.f32 %v2339_v11, %v2146_v8  ;;  %v2690_v8 = vld [vmem:[%s9604_s4 + $0x350] sm:$0xff]  ;;  %v5605_v56 = vpack.c.bf16 %v2685_v53, %v2682_v16  ;;  %v2696_v12 = vld [vmem:[%s9604_s4 + $0x380] sm:$0xff]  ;;  %v3079_v53 = vld [vmem:[%s9604_s4 + $0x3c8] sm:$0xff] }
 0x36e   :  { %v2458_v15 = vmax.f32 %v2434_v6, 0.0  ;;  %2445 = vst.msk [vmem:[#allocation5 + $0x10] sm:$0xff] %vm60_vm3, %v2436_v44  ;;  %v5560_v61 = vpack.c.bf16 %v2690_v8, %v2687_v1  ;;  %v2700_v16 = vld [vmem:[%s9604_s4 + $0x3a0] sm:$0xff]  ;;  %v3128_v8 = vld [vmem:[%s9604_s4 + $0x550] sm:$0xff] }
 0x36f   :  { %v2343_v20 = vpop.f32.mrb[42].mxu0  ;;  %v2425_v21 = vpop.f32.mrb[44].mxu1  ;;  %v2459_v22 = vmax.f32 %v2435_v13, 0.0  ;;  %v3082_v1 = vld [vmem:[%s9604_s4 + $0x3e0] sm:$0xff] }
 0x370   :  { %v7875_v23 = vrot.slane %v2458_v15, 7  ;;  %v2437_v25 = vadd.f32 %v2343_v20, %v2148_v33  ;;  %v2439_v27 = vadd.f32 %v2425_v21, %v2168_v5  ;;  %v2345_v28 = vpop.f32.mrb[43].mxu0  ;;  %v2427_v30 = vpop.f32.mrb[45].mxu1  ;;  %v7927_v33 = vld [vmem:[%s9604_s4 + $0x358] sm:$0xff]  ;;  %v5562_v20 = vpack.c.bf16 %v7917_v14, %v7912_v29 }
 0x371   :  { %v2438_v32 = vadd.f32 %v2345_v28, %v2149_v55  ;;  %v7877_v34 = vrot.slane %v2459_v22, 7  ;;  %v5608_v5 = vpack.c.bf16 %v7927_v33, %v7922_v24  ;;  %v2692_v28 = vld [vmem:[%s9604_s4 + $0x360] sm:$0xff]  ;;  %v5570_v29 = vpack.c.bf16 %v2701_v9, %v2698_v36 }
 0x372   :  { %2485 = vst [vmem:[#allocation4] sm:$0xfe] %v7875_v23  ;;  %2446 = vst [vmem:[#allocation5 + $0x18] sm:$0xff] %v2437_v25  ;;  %v5616_v33 = vpack.c.bf16 %v3082_v1, %v3079_v53  ;;  %v3152_v1 = vld [vmem:[%s9604_s4 + $0x610] sm:$0xff] }
 0x373   :  { %2448 = vst.msk [vmem:[#allocation5 + $0x28] sm:$0xff] %vm60_vm3, %v2439_v27  ;;  %2447 = vst [vmem:[#allocation5 + $0x20] sm:$0xff] %v2438_v32  ;;  %v2349_v38 = vpop.f32.mrb[44].mxu0  ;;  %v2430_v40 = vpop.f32.mrb[46].mxu1 }
 0x374   :  { %2486 = vst [vmem:[#allocation4 + $0x8] sm:$0xfe] %v7877_v34  ;;  %v2440_v41 = vadd.f32 %v2349_v38, %v2151_v26  ;;  %v2442_v0 = vadd.f32 %v2430_v40, %v2171_v39  ;;  %v2351_v3 = vpop.f32.mrb[45].mxu0  ;;  %v2432_v31 = vpop.f32.mrb[47].mxu1  ;;  %v2695_v38 = vld [vmem:[%s9604_s4 + $0x378] sm:$0xff]  ;;  %v2694_v39 = vld [vmem:[%s9604_s4 + $0x370] sm:$0xff] }
 0x375   :  { %v2454_v47 = vld [vmem:[#allocation5 + $0x10] sm:$0xff]  ;;  %v2441_v49 = vadd.f32 %v2351_v3, %v2152_v63  ;;  %v2697_v40 = vld [vmem:[%s9604_s4 + $0x388] sm:$0xff]  ;;  %v2699_v3 = vld [vmem:[%s9604_s4 + $0x398] sm:$0xff] }
 0x376   :  { %v2460_v17 = vmax.f32 %v2454_v47, 0.0  ;;  %2559 = vst.msk [vmem:[#allocation5 + $0x10] sm:$0xff] %vm60_vm3, %v7882_v37  ;;  %v2502_v42 = vmax.f32 %v2440_v41, 0.0  ;;  %2451 = vst.msk [vmem:[#allocation5 + $0x40] sm:$0xff] %vm60_vm3, %v2442_v0  ;;  %v2702_v31 = vld [vmem:[%s9604_s4 + $0x3b0] sm:$0xff] }
 0x377   :  { %v2503_v52 = vmax.f32 %v2441_v49, 0.0  ;;  %v5566_v49 = vpack.c.bf16 %v2695_v38, %v2692_v28  ;;  %v3100_v38 = vld [vmem:[%s9604_s4 + $0x470] sm:$0xff] }
 0x378   :  { %v2472_v10 = vrot.slane %v2460_v17, 7  ;;  %v7907_v19 = vrot.slane %v2502_v42, 7  ;;  %v5611_v17 = vpack.c.bf16 %v2697_v40, %v2694_v39  ;;  %v5568_v42 = vpack.c.bf16 %v2702_v31, %v2699_v3  ;;  %v3146_v39 = vld [vmem:[%s9604_s4 + $0x5e0] sm:$0xff]  ;;  %v3149_v40 = vld [vmem:[%s9604_s4 + $0x5f8] sm:$0xff] }
 0x379   :  { %v2455_v48 = vld [vmem:[#allocation5 + $0x18] sm:$0x7]  ;;  %v2493_v35 = vld [vmem:[#allocation5 + $0x18] sm:$0xe0]  ;;  %v2516_v46 = vrot.slane %v2503_v52, 7  ;;  %v2575_v4 = vld [vmem:[#allocation4] sm:$0xff]  ;;  %v5708_v9 = vpack.c.bf16 %v3149_v40, %v3146_v39 }
 0x37a   :  { %v2457_v54 = vld [vmem:[#allocation5 + $0x28] sm:$0x7]  ;;  %2488 = vst.msk [vmem:[#allocation4 + $0x10] sm:$0xfe] %vm2487_vm7, %v2472_v10  ;;  %v2495_v59 = vld [vmem:[#allocation5 + $0x28] sm:$0xe0] }
 0x37b   :  { %v2463_v55 = vmax.f32 %v2457_v54, 0.0  ;;  %v2456_v62 = vld [vmem:[#allocation5 + $0x20] sm:$0x7]  ;;  %2536 = vst [vmem:[#allocation4 + $0x48] sm:$0x1] %v7907_v19  ;;  %v2501_v26 = vmax.f32 %v2495_v59, 0.0 }
 0x37c   :  { %2562 = vst.msk [vmem:[#allocation5 + $0x28] sm:$0xff] %vm60_vm3, %v7882_v37  ;;  %v2494_v58 = vld [vmem:[#allocation5 + $0x20] sm:$0xe0]  ;;  %v2576_v60 = vld [vmem:[#allocation4 + $0x8] sm:$0xff]  ;;  %v2462_v63 = vmax.f32 %v2456_v62, 0.0  ;;  %v2461_v44 = vmax.f32 %v2455_v48, 0.0 }
 0x37d   :  { %v2477_v2 = vrot.slane %v2463_v55, 7  ;;  %2537 = vst [vmem:[#allocation4 + $0x50] sm:$0x1] %v2516_v46  ;;  %2777 = vmatprep.mubr.f32.mxu0 %v2576_v60  ;;  %2943 = vmatprep.mubr.f32.mxu1 %v2576_v60  ;;  %v2500_v6 = vmax.f32 %v2494_v58, 0.0  ;;  %v2499_v11 = vmax.f32 %v2493_v35, 0.0  ;;  %v2498_v13 = vld [vmem:[#allocation5 + $0x40] sm:$0xff] }
 0x37e   :  { %v2513_v15 = vrot.slane %v2501_v26, 7  ;;  %2778 = vmatmul.mubr.f32.vlgmr.msra.gmra.mrb[46].mxu0 %v2575_v4  ;;  %2944 = vmatmul.mubr.f32.vlgmr.msra.gmra.mrb[48].mxu1 %v2575_v4  ;;  %v2475_v18 = vrot.slane %v2462_v63, 7  ;;  %v2504_v22 = vmax.f32 %v2498_v13, 0.0  ;;  %2565 = vst.msk [vmem:[#allocation5 + $0x40] sm:$0xff] %vm60_vm3, %v7882_v37  ;;  %v2473_v27 = vrot.slane %v2461_v44, 7  ;;  %v2703_v52 = vld [vmem:[%s9604_s4 + $0x3b8] sm:$0xff] }
 0x37f   :  { %v2478_v21 = vsel %vm1526_vm15, %v2472_v10, %v2477_v2  ;;  %5559 = vmatpush1.bf16.msra.mxu0 %v5558_v51  ;;  %5606 = vmatpush3.bf16.msra.mxu1 %v5605_v56  ;;  %v2512_v25 = vrot.slane %v2500_v6, 7  ;;  %v2511_v32 = vrot.slane %v2499_v11, 7  ;;  %v5564_v37 = vpack.c.bf16 %v2696_v12, %v2693_v7  ;;  %v3131_v10 = vld [vmem:[%s9604_s4 + $0x568] sm:$0xff]  ;;  %v3078_v35 = vld [vmem:[%s9604_s4 + $0x3c0] sm:$0xff]  ;;  %v3081_v54 = vld [vmem:[%s9604_s4 + $0x3d8] sm:$0xff] }
 0x380   :  { %2492 = vst.msk [vmem:[#allocation4 + $0x28] sm:$0xf] %vm2491_vm8, %v2478_v21  ;;  %5561 = vmatprep.subr.bf16.mxu0 %v5560_v61  ;;  %5607 = vmatprep.subr.bf16.mxu1 %v5917_v50  ;;  %v2476_v30 = vsel %vm1526_vm15, %v7877_v34, %v2475_v18  ;;  %v2518_v41 = vrot.slane %v2504_v22, 7  ;;  %v2474_v34 = vsel %vm1526_vm15, %v7875_v23, %v2473_v27  ;;  %v3080_v55 = vld [vmem:[%s9604_s4 + $0x3d0] sm:$0xff]  ;;  %v3083_v59 = vld [vmem:[%s9604_s4 + $0x3e8] sm:$0xff]  ;;  %v3085_v62 = vld [vmem:[%s9604_s4 + $0x3f8] sm:$0xff] }
 0x381   :  { %2532 = vst.msk [vmem:[#allocation4 + $0x28] sm:$0xc0] %vm2531_vm9, %v2513_v15  ;;  %2490 = vst [vmem:[#allocation4 + $0x20] sm:$0xf] %v2476_v30  ;;  %v7966_v0 = vsel %vm1526_vm15, %v2512_v25, %v2516_v46  ;;  %v7977_v47 = vsel %vm1526_vm15, %v2511_v32, %v7907_v19  ;;  %v5614_v14 = vpack.c.bf16 %v2703_v52, %v2700_v16  ;;  %v3088_v46 = vld [vmem:[%s9604_s4 + $0x410] sm:$0xff]  ;;  %v3134_v51 = vld [vmem:[%s9604_s4 + $0x580] sm:$0xff] }
 0x382   :  { %2530 = vst [vmem:[#allocation4 + $0x20] sm:$0xc0] %v2512_v25  ;;  %2489 = vst [vmem:[#allocation4 + $0x18] sm:$0xf] %v2474_v34  ;;  %v2519_v23 = vsel %vm1526_vm15, %v2513_v15, %v2518_v41  ;;  %v5696_v48 = vpack.c.bf16 %v3131_v10, %v3128_v8  ;;  %v3137_v56 = vld [vmem:[%s9604_s4 + $0x598] sm:$0xff]  ;;  %v5618_v26 = vpack.c.bf16 %v3081_v54, %v3078_v35  ;;  %v3084_v60 = vld [vmem:[%s9604_s4 + $0x3f0] sm:$0xff] }
 0x383   :  { %2529 = vst [vmem:[#allocation4 + $0x18] sm:$0xc0] %v2511_v32  ;;  %2534 = vst [vmem:[#allocation4 + $0x38] sm:$0xff] %v7966_v0  ;;  %5563 = vmatpush1.bf16.msra.mxu0 %v5562_v20  ;;  %5609 = vmatpush3.bf16.msra.mxu1 %v5608_v5  ;;  %v5698_v58 = vpack.c.bf16 %v3083_v59, %v3080_v55  ;;  %v3087_v61 = vld [vmem:[%s9604_s4 + $0x408] sm:$0xff]  ;;  %v3086_v63 = vld [vmem:[%s9604_s4 + $0x400] sm:$0xff]  ;;  %v5620_v4 = vpack.c.bf16 %v3088_v46, %v3085_v62 }
 0x384   :  { %2539 = vst.msk [vmem:[#allocation4 + $0x58] sm:$0x1] %vm2538_vm10, %v2518_v41  ;;  %2533 = vst [vmem:[#allocation4 + $0x30] sm:$0xff] %v7977_v47  ;;  %5565 = vmatprep.subr.bf16.mxu0 %v5564_v37  ;;  %5610 = vmatprep.subr.bf16.mxu1 %v5917_v50  ;;  %v3089_v7 = vld [vmem:[%s9604_s4 + $0x418] sm:$0xff]  ;;  %v2577_v2 = vld [vmem:[#allocation4 + $0x10] sm:$0xff]  ;;  %v5700_v6 = vpack.c.bf16 %v3137_v56, %v3134_v51  ;;  %v5622_v15 = vpack.c.bf16 %v3087_v61, %v3084_v60 }
 0x385   :  { %2535 = vst.msk [vmem:[#allocation4 + $0x40] sm:$0xff] %vm60_vm3, %v2519_v23  ;;  %v3091_v44 = vld [vmem:[%s9604_s4 + $0x428] sm:$0xff]  ;;  %v3094_v11 = vld [vmem:[%s9604_s4 + $0x440] sm:$0xff]  ;;  %v3140_v12 = vld [vmem:[%s9604_s4 + $0x5b0] sm:$0xff]  ;;  %v5702_v18 = vpack.c.bf16 %v3089_v7, %v3086_v63 }
 0x386   :  { %v3143_v13 = vld [vmem:[%s9604_s4 + $0x5c8] sm:$0xff]  ;;  %v3090_v20 = vld [vmem:[%s9604_s4 + $0x420] sm:$0xff]  ;;  %v3093_v5 = vld [vmem:[%s9604_s4 + $0x438] sm:$0xff]  ;;  %v5624_v27 = vpack.c.bf16 %v3094_v11, %v3091_v44 }
 0x387   :  { %5567 = vmatpush1.bf16.msra.mxu0 %v5566_v49  ;;  %5612 = vmatpush3.bf16.msra.mxu1 %v5611_v17  ;;  %v3092_v21 = vld [vmem:[%s9604_s4 + $0x430] sm:$0xff]  ;;  %v3095_v22 = vld [vmem:[%s9604_s4 + $0x448] sm:$0xff]  ;;  %v5704_v28 = vpack.c.bf16 %v3143_v13, %v3140_v12  ;;  %v3097_v32 = vld [vmem:[%s9604_s4 + $0x458] sm:$0xff]  ;;  %v5626_v41 = vpack.c.bf16 %v3093_v5, %v3090_v20 }
 0x388   :  { %5569 = vmatprep.subr.bf16.mxu0 %v5568_v42  ;;  %5613 = vmatprep.subr.bf16.mxu1 %v5917_v50  ;;  %v8089_v25 = vld [vmem:[#allocation4 + $0x28] sm:$0xff]  ;;  %v3096_v34 = vld [vmem:[%s9604_s4 + $0x450] sm:$0xff]  ;;  %v5706_v31 = vpack.c.bf16 %v3095_v22, %v3092_v21  ;;  %v3098_v49 = vld [vmem:[%s9604_s4 + $0x460] sm:$0xff]  ;;  %v5628_v36 = vpack.c.bf16 %v3100_v38, %v3097_v32 }
 0x389   :  { %v8008_v19 = vld [vmem:[#allocation4 + $0x20] sm:$0xff]  ;;  %v3067_v30 = vld [vmem:[#allocation4 + $0x8] sm:$0xfe]  ;;  %v3101_v17 = vld [vmem:[%s9604_s4 + $0x478] sm:$0xff] }
 0x38a   :  { %2783 = vmatprep.mubr.f32.mxu0 %v8008_v19  ;;  %2948 = vmatprep.mubr.f32.mxu1 %v8008_v19  ;;  %v8013_v24 = vld [vmem:[#allocation4 + $0x18] sm:$0xff]  ;;  %v3214_v37 = vrot.slane %v8008_v19, 1  ;;  %v3213_v3 = vrot.slane %v3067_v30, 1  ;;  %v3099_v23 = vld [vmem:[%s9604_s4 + $0x468] sm:$0xff]  ;;  %v3106_v52 = vld [vmem:[%s9604_s4 + $0x4a0] sm:$0xff] }
 0x38b   :  { %2784 = vmatmul.mubr.f32.gmra.mrb[48].mxu0 %v8013_v24  ;;  %2949 = vmatmul.mubr.f32.gmra.mrb[50].mxu1 %v8013_v24  ;;  %v3103_v16 = vld [vmem:[%s9604_s4 + $0x488] sm:$0xff]  ;;  %v5630_v10 = vpack.c.bf16 %v3099_v23, %v3096_v34  ;;  %v3104_v35 = vld [vmem:[%s9604_s4 + $0x490] sm:$0xff]  ;;  %v3109_v59 = vld [vmem:[%s9604_s4 + $0x4b8] sm:$0xff] }
 0x38c   :  { %2789 = vmatprep.mubr.f32.mxu0 %v7966_v0  ;;  %2953 = vmatprep.mubr.f32.mxu1 %v7966_v0  ;;  %v8123_v42 = vld [vmem:[#allocation4 + $0x40] sm:$0xff]  ;;  %v3215_v53 = vsel %vm796_vm12, %v3213_v3, %v3214_v37  ;;  %v3155_v8 = vld [vmem:[%s9604_s4 + $0x628] sm:$0xff]  ;;  %v3112_v62 = vld [vmem:[%s9604_s4 + $0x4d0] sm:$0xff] }
 0x38d   :  { %5571 = vmatpush1.bf16.msra.mxu0 %v5570_v29  ;;  %5615 = vmatpush3.bf16.msra.mxu1 %v5614_v14  ;;  %v5710_v29 = vpack.c.bf16 %v3101_v17, %v3098_v49  ;;  %v5632_v14 = vpack.c.bf16 %v3106_v52, %v3103_v16  ;;  %v5712_v54 = vpack.c.bf16 %v3155_v8, %v3152_v1  ;;  %v3107_v55 = vld [vmem:[%s9604_s4 + $0x4a8] sm:$0xff]  ;;  %v3158_v46 = vld [vmem:[%s9604_s4 + $0x640] sm:$0xff]  ;;  %v3161_v51 = vld [vmem:[%s9604_s4 + $0x658] sm:$0xff] }
 0x38e   :  { %5617 = vmatprep.subr.bf16.mxu1 %v5616_v33  ;;  %5697 = vmatprep.subr.bf16.mxu0 %v5696_v48  ;;  %v3102_v33 = vld [vmem:[%s9604_s4 + $0x480] sm:$0xff]  ;;  %v3105_v48 = vld [vmem:[%s9604_s4 + $0x498] sm:$0xff]  ;;  %v3108_v60 = vld [vmem:[%s9604_s4 + $0x4b0] sm:$0xff]  ;;  %v5716_v7 = vpack.c.bf16 %v3161_v51, %v3158_v46 }
 0x38f   :  { %2790 = vmatmul.mubr.f32.gmra.mrb[50].mxu0 %v7977_v47  ;;  %2954 = vmatmul.mubr.f32.gmra.mrb[52].mxu1 %v7977_v47  ;;  %v5634_v56 = vpack.c.bf16 %v3105_v48, %v3102_v33  ;;  %v3111_v61 = vld [vmem:[%s9604_s4 + $0x4c8] sm:$0xff]  ;;  %v3110_v63 = vld [vmem:[%s9604_s4 + $0x4c0] sm:$0xff]  ;;  %v3164_v44 = vld [vmem:[%s9604_s4 + $0x670] sm:$0xff] }
 0x390   :  { %2860 = vmatprep.mubr.f32.mxu0 %v7542_v45  ;;  %5005 = vmatprep.mubr.msk.f32.mxu1 %vm5918_vm11, %v7542_v45  ;;  %v3167_v11 = vld [vmem:[%s9604_s4 + $0x688] sm:$0xff]  ;;  %v5638_v12 = vpack.c.bf16 %v3111_v61, %v3108_v60  ;;  %v3117_v20 = vld [vmem:[%s9604_s4 + $0x4f8] sm:$0xff]  ;;  %v3116_v5 = vld [vmem:[%s9604_s4 + $0x4f0] sm:$0xff] }
 0x391   :  { %v5720_v21 = vpack.c.bf16 %v3167_v11, %v3164_v44  ;;  %v3119_v22 = vld [vmem:[%s9604_s4 + $0x508] sm:$0xff]  ;;  %v3170_v30 = vld [vmem:[%s9604_s4 + $0x6a0] sm:$0xff]  ;;  %v3173_v32 = vld [vmem:[%s9604_s4 + $0x6b8] sm:$0xff] }
 0x392   :  { %v5722_v39 = vpack.c.bf16 %v3119_v22, %v3116_v5  ;;  %v3123_v34 = vld [vmem:[%s9604_s4 + $0x528] sm:$0xff]  ;;  %v3122_v3 = vld [vmem:[%s9604_s4 + $0x520] sm:$0xff]  ;;  %v3125_v23 = vld [vmem:[%s9604_s4 + $0x538] sm:$0xff] }
 0x393   :  { %4815 = vmatmul.mubr.msk.f32.vlgmr.msra.gmra.mrb[46].mxu0 %vm60_vm3, %v2577_v2  ;;  %5006 = vmatmul.mubr.msk.f32.vlgmr.msra.gmra.mrb[54].mxu1 %vm60_vm3, %v2577_v2  ;;  %v3113_v2 = vld [vmem:[%s9604_s4 + $0x4d8] sm:$0xff]  ;;  %v3127_v49 = vld [vmem:[%s9604_s4 + $0x548] sm:$0xff]  ;;  %v3130_v17 = vld [vmem:[%s9604_s4 + $0x560] sm:$0xff] }
 0x394   :  { %5619 = vmatpush1.bf16.msra.mxu1 %v5618_v26  ;;  %5699 = vmatpush3.bf16.msra.mxu0 %v5698_v58  ;;  %v5714_v26 = vpack.c.bf16 %v3107_v55, %v3104_v35  ;;  %v5636_v58 = vpack.c.bf16 %v3112_v62, %v3109_v59  ;;  %v5718_v13 = vpack.c.bf16 %v3113_v2, %v3110_v63  ;;  %v3126_v52 = vld [vmem:[%s9604_s4 + $0x540] sm:$0xff]  ;;  %v3176_v8 = vld [vmem:[%s9604_s4 + $0x6d0] sm:$0xff]  ;;  %v3221_v62 = vrot.slane %v7966_v0, 1  ;;  %v3141_v44 = vld [vmem:[%s9604_s4 + $0x5b8] sm:$0xff] }
 0x395   :  { %2866 = vmatprep.mubr.f32.mxu0 %v7542_v45  ;;  %5008 = vmatprep.mubr.msk.f32.mxu1 %vm5918_vm11, %v7542_v45  ;;  %v5648_v16 = vpack.c.bf16 %v3130_v17, %v3127_v49  ;;  %v3066_v1 = vld [vmem:[#allocation4] sm:$0xfe]  ;;  %v3136_v33 = vld [vmem:[%s9604_s4 + $0x590] sm:$0xff]  ;;  %v3219_v2 = vrot.slane %v7977_v47, 1  ;;  %v3191_v47 = vld [vmem:[%s9604_s4 + $0x748] sm:$0xff] }
 0x396   :  { %5621 = vmatprep.subr.bf16.mxu1 %v5620_v4  ;;  %5701 = vmatprep.subr.bf16.mxu0 %v5700_v6  ;;  %v3115_v4 = vld [vmem:[%s9604_s4 + $0x4e8] sm:$0xff]  ;;  %v3118_v6 = vld [vmem:[%s9604_s4 + $0x500] sm:$0xff]  ;;  %v3210_v35 = vrot.slane %v3066_v1, 1  ;;  %v3132_v55 = vld [vmem:[%s9604_s4 + $0x570] sm:$0xff]  ;;  %v8280_v60 = vsel %vm796_vm12, %v3214_v37, %v3221_v62  ;;  %v3217_v1 = vrot.slane %v8089_v25, 1 }
 0x397   :  { %4816 = vmatmul.mubr.msk.f32.gmra.mrb[48].mxu0 %vm60_vm3, %v8089_v25  ;;  %5009 = vmatmul.mubr.msk.f32.gmra.mrb[56].mxu1 %vm60_vm3, %v8089_v25  ;;  %v3076_v59 = vld [vmem:[#allocation4 + $0x50] sm:$0x1]  ;;  %v3182_v51 = vld [vmem:[%s9604_s4 + $0x700] sm:$0xff]  ;;  %v3153_v17 = vld [vmem:[%s9604_s4 + $0x618] sm:$0xff] }
 0x398   :  { %5623 = vmatpush1.bf16.msra.mxu1 %v5622_v15  ;;  %5703 = vmatpush3.bf16.msra.mxu0 %v5702_v18  ;;  %v5640_v15 = vpack.c.bf16 %v3118_v6, %v3115_v4  ;;  %v3114_v18 = vld [vmem:[%s9604_s4 + $0x4e0] sm:$0xff]  ;;  %v3227_v63 = vrot.slane %v3076_v59, 1  ;;  %v3188_v37 = vld [vmem:[%s9604_s4 + $0x730] sm:$0xff]  ;;  %v3617_v59 = vld [vmem:[%s9604_s4 + $0x7c8] sm:$0xff] }
 0x399   :  { %2872 = vmatprep.mubr.f32.mxu0 %v7542_v45  ;;  %5011 = vmatprep.mubr.msk.f32.mxu1 %vm5918_vm11, %v7542_v45  ;;  %v5642_v38 = vpack.c.bf16 %v3117_v20, %v3114_v18  ;;  %v3142_v0 = vld [vmem:[%s9604_s4 + $0x5c0] sm:$0xff]  ;;  %v3156_v25 = vld [vmem:[%s9604_s4 + $0x630] sm:$0xff] }
 0x39a   :  { %5625 = vmatprep.subr.bf16.mxu1 %v5624_v27  ;;  %5705 = vmatprep.subr.bf16.mxu0 %v5704_v28  ;;  %v3121_v27 = vld [vmem:[%s9604_s4 + $0x518] sm:$0xff]  ;;  %v3124_v28 = vld [vmem:[%s9604_s4 + $0x530] sm:$0xff]  ;;  %v3138_v6 = vld [vmem:[%s9604_s4 + $0x5a0] sm:$0xff]  ;;  %v8308_v20 = vsel %vm796_vm12, %v3221_v62, %v3227_v63 }
 0x39b   :  { %4817 = vmatmul.mubr.msk.f32.gmra.mrb[50].mxu0 %vm60_vm3, %v8123_v42  ;;  %5012 = vmatmul.mubr.msk.f32.gmra.mrb[58].mxu1 %vm60_vm3, %v8123_v42  ;;  %v5644_v40 = vpack.c.bf16 %v3124_v28, %v3121_v27  ;;  %v5658_v5 = vpack.c.bf16 %v3141_v44, %v3138_v6  ;;  %v3144_v27 = vld [vmem:[%s9604_s4 + $0x5d0] sm:$0xff]  ;;  %v3147_v28 = vld [vmem:[%s9604_s4 + $0x5e8] sm:$0xff]  ;;  %v3150_v49 = vld [vmem:[%s9604_s4 + $0x600] sm:$0xff] }
 0x39c   :  { %5627 = vmatpush1.bf16.msra.mxu1 %v5626_v41  ;;  %3307 = vmatprep.mubr.f32.mxu1 %v3215_v53  ;;  %v3120_v41 = vld [vmem:[%s9604_s4 + $0x510] sm:$0xff]  ;;  %v3163_v62 = vld [vmem:[%s9604_s4 + $0x668] sm:$0xff]  ;;  %v3077_v63 = vld [vmem:[#allocation4 + $0x58] sm:$0x1] }
 0x39d   :  { %5707 = vmatpush3.bf16.msra.mxu0 %v5706_v31  ;;  %3473 = vmatprep.mubr.f32.mxu0 %v3215_v53  ;;  %v5724_v31 = vpack.c.bf16 %v3173_v32, %v3170_v30  ;;  %v3129_v53 = vld [vmem:[%s9604_s4 + $0x558] sm:$0xff]  ;;  %v3194_v30 = vld [vmem:[%s9604_s4 + $0x760] sm:$0xff] }
 0x39e   :  { %5629 = vmatprep.subr.bf16.mxu1 %v5628_v36  ;;  %5709 = vmatprep.subr.bf16.mxu0 %v5708_v9  ;;  %v5646_v36 = vpack.c.bf16 %v3123_v34, %v3120_v41  ;;  %v5726_v9 = vpack.c.bf16 %v3125_v23, %v3122_v3  ;;  %v5650_v48 = vpack.c.bf16 %v3129_v53, %v3126_v52  ;;  %v3197_v32 = vld [vmem:[%s9604_s4 + $0x778] sm:$0xff]  ;;  %v3609_v41 = vld [vmem:[%s9604_s4 + $0x788] sm:$0xff]  ;;  %v3612_v34 = vld [vmem:[%s9604_s4 + $0x7a0] sm:$0xff] }
 0x39f   :  { %v5662_v3 = vpack.c.bf16 %v3147_v28, %v3144_v27  ;;  %v3611_v52 = vld [vmem:[%s9604_s4 + $0x798] sm:$0xff]  ;;  %v3744_v27 = vrot.slane %v8008_v19, 2 }
 0x3a0   :  { %5631 = vmatpush1.bf16.msra.mxu1 %v5630_v10  ;;  %v3179_v10 = vld [vmem:[%s9604_s4 + $0x6e8] sm:$0xff]  ;;  %v3157_v53 = vld [vmem:[%s9604_s4 + $0x638] sm:$0xff] }
 0x3a1   :  { %5711 = vmatpush3.bf16.msra.mxu0 %v5710_v29  ;;  %5633 = vmatprep.subr.bf16.mxu1 %v5632_v14  ;;  %v3211_v29 = vrot.slane %v8013_v24, 1  ;;  %v3133_v14 = vld [vmem:[%s9604_s4 + $0x578] sm:$0xff]  ;;  %v3135_v24 = vld [vmem:[%s9604_s4 + $0x588] sm:$0xff] }
 0x3a2   :  { %5713 = vmatprep.subr.bf16.mxu0 %v5712_v54  ;;  %v5729_v54 = vpack.c.bf16 %v3179_v10, %v3176_v8  ;;  %v5652_v46 = vpack.c.bf16 %v3136_v33, %v3133_v14  ;;  %v5654_v61 = vpack.c.bf16 %v3135_v24, %v3132_v55  ;;  %v3160_v8 = vld [vmem:[%s9604_s4 + $0x650] sm:$0xff]  ;;  %v3615_v10 = vld [vmem:[%s9604_s4 + $0x7b8] sm:$0xff]  ;;  %v5666_v14 = vpack.c.bf16 %v3153_v17, %v3150_v49  ;;  %v3633_v17 = vld [vmem:[%s9604_s4 + $0x848] sm:$0xff] }
 0x3a3   :  { %v3614_v24 = vld [vmem:[%s9604_s4 + $0x7b0] sm:$0xff] }
 0x3a4   :  { %5635 = vmatpush1.bf16.msra.mxu1 %v5634_v56  ;;  %v3185_v56 = vld [vmem:[%s9604_s4 + $0x718] sm:$0xff] }
 0x3a5   :  { %5715 = vmatpush3.bf16.msra.mxu0 %v5714_v26  ;;  %5637 = vmatprep.subr.bf16.mxu1 %v5636_v58  ;;  %v8268_v26 = vsel %vm796_vm12, %v3210_v35, %v3211_v29  ;;  %v3139_v58 = vld [vmem:[%s9604_s4 + $0x5a8] sm:$0xff]  ;;  %v5732_v4 = vpack.c.bf16 %v3185_v56, %v3182_v51  ;;  %v3223_v51 = vrot.slane %v8123_v42, 1  ;;  %v3166_v56 = vld [vmem:[%s9604_s4 + $0x680] sm:$0xff]  ;;  %v5746_v42 = vpack.c.bf16 %v3617_v59, %v3614_v24  ;;  %v3180_v59 = vld [vmem:[%s9604_s4 + $0x6f0] sm:$0xff] }
 0x3a6   :  { %5717 = vmatprep.subr.bf16.mxu0 %v5716_v7  ;;  %v3075_v7 = vld [vmem:[#allocation4 + $0x48] sm:$0x1]  ;;  %v5656_v11 = vpack.c.bf16 %v3142_v0, %v3139_v58  ;;  %v3624_v0 = vld [vmem:[%s9604_s4 + $0x800] sm:$0xff]  ;;  %v5672_v6 = vpack.c.bf16 %v3166_v56, %v3163_v62 }
 0x3a7   :  { %v3225_v18 = vrot.slane %v3075_v7, 1  ;;  %v3159_v35 = vld [vmem:[%s9604_s4 + $0x648] sm:$0xff]  ;;  %v3162_v7 = vld [vmem:[%s9604_s4 + $0x660] sm:$0xff] }
 0x3a8   :  { %5639 = vmatpush1.bf16.msra.mxu1 %v5638_v12  ;;  %v3145_v12 = vld [vmem:[%s9604_s4 + $0x5d8] sm:$0xff]  ;;  %v3621_v58 = vld [vmem:[%s9604_s4 + $0x7e8] sm:$0xff] }
 0x3a9   :  { %5719 = vmatpush3.bf16.msra.mxu0 %v5718_v13  ;;  %5641 = vmatprep.subr.bf16.mxu1 %v5640_v15  ;;  %v3148_v13 = vld [vmem:[%s9604_s4 + $0x5f0] sm:$0xff]  ;;  %v8304_v15 = vsel %vm796_vm12, %v3211_v29, %v3219_v2  ;;  %v5748_v44 = vpack.c.bf16 %v3624_v0, %v3621_v58  ;;  %v3183_v62 = vld [vmem:[%s9604_s4 + $0x708] sm:$0xff] }
 0x3aa   :  { %5721 = vmatprep.subr.bf16.mxu0 %v5720_v21  ;;  %v5735_v21 = vpack.c.bf16 %v3191_v47, %v3188_v37  ;;  %v5660_v22 = vpack.c.bf16 %v3148_v13, %v3145_v12  ;;  %v3618_v29 = vld [vmem:[%s9604_s4 + $0x7d0] sm:$0xff]  ;;  %v3623_v37 = vld [vmem:[%s9604_s4 + $0x7f8] sm:$0xff]  ;;  %v8419_v12 = vsel %vm796_vm12, %v3217_v1, %v3223_v51  ;;  %v3229_v13 = vrot.slane %v3077_v63, 1  ;;  %v3641_v58 = vld [vmem:[%s9604_s4 + $0x888] sm:$0xff] }
 0x3ab   :  { %v5744_v55 = vpack.c.bf16 %v3618_v29, %v3615_v10  ;;  %v3172_v47 = vld [vmem:[%s9604_s4 + $0x6b0] sm:$0xff]  ;;  %v3632_v10 = vld [vmem:[%s9604_s4 + $0x840] sm:$0xff]  ;;  %v3187_v0 = vld [vmem:[%s9604_s4 + $0x728] sm:$0xff] }
 0x3ac   :  { %5643 = vmatpush1.bf16.msra.mxu1 %v5642_v38  ;;  %v3151_v38 = vld [vmem:[%s9604_s4 + $0x608] sm:$0xff]  ;;  %v8451_v49 = vsel %vm796_vm12, %v3223_v51, %v3229_v13  ;;  %v3638_v51 = vld [vmem:[%s9604_s4 + $0x870] sm:$0xff]  ;;  %v3651_v13 = vld [vmem:[%s9604_s4 + $0x8d8] sm:$0xff] }
 0x3ad   :  { %5723 = vmatpush3.bf16.msra.mxu0 %v5722_v39  ;;  %5645 = vmatprep.subr.bf16.mxu1 %v5644_v40  ;;  %v3154_v39 = vld [vmem:[%s9604_s4 + $0x620] sm:$0xff]  ;;  %v8331_v40 = vsel %vm796_vm12, %v3219_v2, %v3225_v18  ;;  %v3165_v2 = vld [vmem:[%s9604_s4 + $0x678] sm:$0xff]  ;;  %v3597_v18 = vld [vmem:[#allocation4 + $0x8] sm:$0xfc] }
 0x3ae   :  { %5725 = vmatprep.subr.bf16.mxu0 %v5724_v31  ;;  %v5738_v31 = vpack.c.bf16 %v3197_v32, %v3194_v30  ;;  %v5664_v23 = vpack.c.bf16 %v3154_v39, %v3151_v38  ;;  %v3168_v30 = vld [vmem:[%s9604_s4 + $0x690] sm:$0xff]  ;;  %v3171_v32 = vld [vmem:[%s9604_s4 + $0x6a8] sm:$0xff]  ;;  %v3743_v39 = vrot.slane %v3597_v18, 2 }
 0x3af   :  { %v3626_v38 = vld [vmem:[%s9604_s4 + $0x810] sm:$0xff]  ;;  %v3645_v63 = vld [vmem:[%s9604_s4 + $0x8a8] sm:$0xff] }
 0x3b0   :  { %5647 = vmatpush1.bf16.msra.mxu1 %v5646_v36  ;;  %v3608_v36 = vld [vmem:[%s9604_s4 + $0x780] sm:$0xff]  ;;  %v3654_v18 = vld [vmem:[%s9604_s4 + $0x8f0] sm:$0xff] }
 0x3b1   :  { %5727 = vmatpush3.bf16.msra.mxu0 %v5726_v9  ;;  %5649 = vmatprep.subr.bf16.mxu1 %v5648_v16  ;;  %v3068_v9 = vld [vmem:[#allocation4 + $0x10] sm:$0xfe]  ;;  %v5740_v16 = vpack.c.bf16 %v3612_v34, %v3609_v41 }
 0x3b2   :  { %5728 = vmatprep.subr.bf16.mxu0 %v5917_v50  ;;  %v3216_v33 = vrot.slane %v3068_v9, 1  ;;  %v8464_v9 = vsel %vm232_vm4, %v3743_v39, %v3744_v27  ;;  %v3661_v39 = vld [vmem:[%s9604_s4 + $0x928] sm:$0xff] }
 0x3b4   :  { %3474 = vmatmul.mubr.f32.vlgmr.msra.gmra.mrb[52].mxu0 %v8268_v26  ;;  %5651 = vmatpush1.bf16.msra.mxu1 %v5650_v48  ;;  %v5742_v48 = vpack.c.bf16 %v3611_v52, %v3608_v36  ;;  %v3636_v36 = vld [vmem:[%s9604_s4 + $0x860] sm:$0xff] }
 0x3b5   :  { %3478 = vmatprep.mubr.f32.mxu0 %v8280_v60  ;;  %5730 = vmatpush3.bf16.msra.mxu0 %v5729_v54  ;;  %v5668_v54 = vpack.c.bf16 %v3160_v8, %v3157_v53  ;;  %v3177_v8 = vld [vmem:[%s9604_s4 + $0x6d8] sm:$0xff]  ;;  %v5756_v29 = vpack.c.bf16 %v3636_v36, %v3633_v17  ;;  %v3610_v17 = vld [vmem:[%s9604_s4 + $0x790] sm:$0xff]  ;;  %v3613_v36 = vld [vmem:[%s9604_s4 + $0x7a8] sm:$0xff] }
 0x3b6   :  { %5653 = vmatprep.subr.bf16.mxu1 %v5652_v46  ;;  %5731 = vmatprep.subr.bf16.mxu0 %v5917_v50  ;;  %v8384_v46 = vsel %vm796_vm12, %v3216_v33, %v3217_v1  ;;  %v3174_v1 = vld [vmem:[%s9604_s4 + $0x6c0] sm:$0xff]  ;;  %v3181_v33 = vld [vmem:[%s9604_s4 + $0x6f8] sm:$0xff] }
 0x3b8   :  { %3479 = vmatmul.mubr.f32.gmra.mrb[54].mxu0 %v8304_v15  ;;  %5655 = vmatpush1.bf16.msra.mxu1 %v5654_v61  ;;  %v5670_v61 = vpack.c.bf16 %v3159_v35, %v3156_v25  ;;  %v3639_v25 = vld [vmem:[%s9604_s4 + $0x878] sm:$0xff]  ;;  %v3642_v35 = vld [vmem:[%s9604_s4 + $0x890] sm:$0xff] }
 0x3b9   :  { %3483 = vmatprep.mubr.f32.mxu0 %v8308_v20  ;;  %5733 = vmatpush3.bf16.msra.mxu0 %v5732_v4  ;;  %v3620_v4 = vld [vmem:[%s9604_s4 + $0x7e0] sm:$0xff]  ;;  %v5760_v56 = vpack.c.bf16 %v3642_v35, %v3639_v25  ;;  %v3619_v35 = vld [vmem:[%s9604_s4 + $0x7d8] sm:$0xff] }
 0x3ba   :  { %5657 = vmatprep.subr.bf16.mxu1 %v5656_v11  ;;  %5734 = vmatprep.subr.bf16.mxu0 %v5917_v50  ;;  %v3169_v11 = vld [vmem:[%s9604_s4 + $0x698] sm:$0xff]  ;;  %v5750_v28 = vpack.c.bf16 %v3623_v37, %v3620_v4  ;;  %v3616_v25 = vld [vmem:[%s9604_s4 + $0x7c0] sm:$0xff] }
 0x3bb   :  { %v5676_v41 = vpack.c.bf16 %v3172_v47, %v3169_v11  ;;  %v3647_v37 = vld [vmem:[%s9604_s4 + $0x8b8] sm:$0xff]  ;;  %v3196_v47 = vld [vmem:[%s9604_s4 + $0x770] sm:$0xff] }
 0x3bc   :  { %3484 = vmatmul.mubr.f32.gmra.mrb[56].mxu0 %v8331_v40  ;;  %5659 = vmatpush1.bf16.msra.mxu1 %v5658_v5  ;;  %v3627_v5 = vld [vmem:[%s9604_s4 + $0x818] sm:$0xff] }
 0x3bd   :  { %5736 = vmatpush3.bf16.msra.mxu0 %v5735_v21  ;;  %5661 = vmatprep.subr.bf16.mxu1 %v5660_v22  ;;  %v3630_v21 = vld [vmem:[%s9604_s4 + $0x830] sm:$0xff]  ;;  %v5674_v22 = vpack.c.bf16 %v3165_v2, %v3162_v7  ;;  %v5686_v7 = vpack.c.bf16 %v3183_v62, %v3180_v59  ;;  %v5762_v2 = vpack.c.bf16 %v3641_v58, %v3638_v51  ;;  %v3193_v11 = vld [vmem:[%s9604_s4 + $0x758] sm:$0xff]  ;;  %v3673_v59 = vld [vmem:[%s9604_s4 + $0x988] sm:$0xff] }
 0x3be   :  { %5737 = vmatprep.subr.bf16.mxu0 %v5917_v50  ;;  %5030 = vmatprep.mubr.msk.f32.mxu0 %vm5918_vm11, %v7542_v45  ;;  %v5752_v34 = vpack.c.bf16 %v3630_v21, %v3627_v5  ;;  %v3669_v62 = vld [vmem:[%s9604_s4 + $0x968] sm:$0xff]  ;;  %v3672_v51 = vld [vmem:[%s9604_s4 + $0x980] sm:$0xff] }
 0x3c0   :  { %5663 = vmatpush1.bf16.msra.mxu1 %v5662_v3  ;;  %v3629_v3 = vld [vmem:[%s9604_s4 + $0x828] sm:$0xff] }
 0x3c1   :  { %5739 = vmatpush3.bf16.msra.mxu0 %v5738_v31  ;;  %5665 = vmatprep.subr.bf16.mxu1 %v5664_v23  ;;  %v3175_v31 = vld [vmem:[%s9604_s4 + $0x6c8] sm:$0xff]  ;;  %v3178_v23 = vld [vmem:[%s9604_s4 + $0x6e0] sm:$0xff]  ;;  %v5754_v52 = vpack.c.bf16 %v3629_v3, %v3626_v38  ;;  %v3658_v38 = vld [vmem:[%s9604_s4 + $0x910] sm:$0xff] }
 0x3c2   :  { %5741 = vmatprep.subr.bf16.mxu0 %v5740_v16  ;;  %v5678_v16 = vpack.c.bf16 %v3171_v32, %v3168_v30  ;;  %v5680_v53 = vpack.c.bf16 %v3178_v23, %v3175_v31  ;;  %v3650_v30 = vld [vmem:[%s9604_s4 + $0x8d0] sm:$0xff]  ;;  %v3653_v32 = vld [vmem:[%s9604_s4 + $0x8e8] sm:$0xff]  ;;  %v5820_v23 = vpack.c.bf16 %v3661_v39, %v3658_v38 }
 0x3c3   :  { %v5770_v31 = vpack.c.bf16 %v3653_v32, %v3650_v30  ;;  %v3634_v32 = vld [vmem:[%s9604_s4 + $0x850] sm:$0xff]  ;;  %v3637_v38 = vld [vmem:[%s9604_s4 + $0x868] sm:$0xff] }
 0x3c4   :  { %5031 = vmatmul.mubr.msk.f32.vlgmr.msra.gmra.mrb[58].mxu0 %vm60_vm3, %v8384_v46  ;;  %5667 = vmatpush1.bf16.msra.mxu1 %v5666_v14  ;;  %v3635_v14 = vld [vmem:[%s9604_s4 + $0x858] sm:$0xff] }
 0x3c5   :  { %5743 = vmatpush1.bf16.msra.mxu0 %v5742_v48  ;;  %5033 = vmatprep.mubr.msk.f32.mxu0 %vm5918_vm11, %v7542_v45  ;;  %v3184_v48 = vld [vmem:[%s9604_s4 + $0x710] sm:$0xff] }
 0x3c6   :  { %5669 = vmatprep.subr.bf16.mxu1 %v5668_v54  ;;  %5745 = vmatprep.subr.bf16.mxu0 %v5744_v55  ;;  %v5682_v54 = vpack.c.bf16 %v3177_v8, %v3174_v1  ;;  %v5758_v55 = vpack.c.bf16 %v3635_v14, %v3632_v10  ;;  %v5684_v24 = vpack.c.bf16 %v3184_v48, %v3181_v33  ;;  %v3667_v1 = vld [vmem:[%s9604_s4 + $0x958] sm:$0xff]  ;;  %v3666_v10 = vld [vmem:[%s9604_s4 + $0x950] sm:$0xff] }
 0x3c7   :  { %v3663_v8 = vld [vmem:[%s9604_s4 + $0x938] sm:$0xff]  ;;  %v3662_v48 = vld [vmem:[%s9604_s4 + $0x930] sm:$0xff] }
 0x3c8   :  { %5034 = vmatmul.mubr.msk.f32.gmra.mrb[60].mxu0 %vm60_vm3, %v8419_v12  ;;  %5671 = vmatpush1.bf16.msra.mxu1 %v5670_v61  ;;  %v3190_v61 = vld [vmem:[%s9604_s4 + $0x740] sm:$0xff] }
 0x3c9   :  { %5747 = vmatpush1.bf16.msra.mxu0 %v5746_v42  ;;  %5036 = vmatprep.mubr.msk.f32.mxu0 %vm5918_vm11, %v7542_v45  ;;  %v3648_v42 = vld [vmem:[%s9604_s4 + $0x8c0] sm:$0xff]  ;;  %v5688_v4 = vpack.c.bf16 %v3190_v61, %v3187_v0  ;;  %v3622_v61 = vld [vmem:[%s9604_s4 + $0x7f0] sm:$0xff] }
 0x3ca   :  { %5673 = vmatprep.subr.bf16.mxu1 %v5672_v6  ;;  %5749 = vmatprep.subr.bf16.mxu0 %v5748_v44  ;;  %v3189_v6 = vld [vmem:[%s9604_s4 + $0x738] sm:$0xff]  ;;  %v3644_v44 = vld [vmem:[%s9604_s4 + $0x8a0] sm:$0xff] }
 0x3cb   :  { %v5766_v21 = vpack.c.bf16 %v3647_v37, %v3644_v44 }
 0x3cc   :  { %5037 = vmatmul.mubr.msk.f32.gmra.mrb[62].mxu0 %vm60_vm3, %v8451_v49  ;;  %5675 = vmatpush1.bf16.msra.mxu1 %v5674_v22  ;;  %v5692_v22 = vpack.c.bf16 %v3196_v47, %v3193_v11  ;;  %v3628_v11 = vld [vmem:[%s9604_s4 + $0x820] sm:$0xff]  ;;  %v3631_v47 = vld [vmem:[%s9604_s4 + $0x838] sm:$0xff] }
 0x3cd   :  { %5751 = vmatpush1.bf16.msra.mxu0 %v5750_v28  ;;  %3837 = vmatprep.mubr.f32.mxu0 %v8464_v9  ;;  %v3195_v28 = vld [vmem:[%s9604_s4 + $0x768] sm:$0xff] }
 0x3ce   :  { %5677 = vmatprep.subr.bf16.mxu1 %v5676_v41  ;;  %5753 = vmatprep.subr.bf16.mxu0 %v5752_v34  ;;  %v3657_v41 = vld [vmem:[%s9604_s4 + $0x908] sm:$0xff]  ;;  %v3660_v34 = vld [vmem:[%s9604_s4 + $0x920] sm:$0xff] }
 0x3d0   :  { %5679 = vmatpush1.bf16.msra.mxu1 %v5678_v16  ;;  %v5772_v16 = vpack.c.bf16 %v3660_v34, %v3657_v41  ;;  %v3688_v41 = vld [vmem:[%s9604_s4 + $0xa00] sm:$0xff]  ;;  %v3691_v34 = vld [vmem:[%s9604_s4 + $0xa18] sm:$0xff] }
 0x3d1   :  { %5755 = vmatpush1.bf16.msra.mxu0 %v5754_v52  ;;  %5681 = vmatprep.subr.bf16.mxu1 %v5680_v53  ;;  %v3659_v52 = vld [vmem:[%s9604_s4 + $0x918] sm:$0xff]  ;;  %v3664_v53 = vld [vmem:[%s9604_s4 + $0x940] sm:$0xff] }
 0x3d2   :  { %5757 = vmatprep.subr.bf16.mxu0 %v5756_v29  ;;  %v5822_v29 = vpack.c.bf16 %v3613_v36, %v3610_v17  ;;  %v5824_v33 = vpack.c.bf16 %v3667_v1, %v3664_v53  ;;  %v5840_v17 = vpack.c.bf16 %v3691_v34, %v3688_v41  ;;  %v3686_v36 = vld [vmem:[%s9604_s4 + $0x9f0] sm:$0xff]  ;;  %v3689_v1 = vld [vmem:[%s9604_s4 + $0xa08] sm:$0xff] }
 0x3d3   :  { %3308 = vmatmul.mubr.f32.vlgmr.msra.gmra.mrb[60].mxu1 %v8268_v26  ;;  %v3186_v26 = vld [vmem:[%s9604_s4 + $0x720] sm:$0xff] }
 0x3d4   :  { %3313 = vmatprep.mubr.f32.mxu1 %v8280_v60  ;;  %5683 = vmatpush1.bf16.msra.mxu1 %v5682_v54  ;;  %v5764_v60 = vpack.c.bf16 %v3648_v42, %v3645_v63  ;;  %v5690_v5 = vpack.c.bf16 %v3189_v6, %v3186_v26  ;;  %v5776_v54 = vpack.c.bf16 %v3666_v10, %v3663_v8  ;;  %v3625_v63 = vld [vmem:[%s9604_s4 + $0x808] sm:$0xff]  ;;  %v3675_v26 = vld [vmem:[%s9604_s4 + $0x998] sm:$0xff]  ;;  %v3678_v6 = vld [vmem:[%s9604_s4 + $0x9b0] sm:$0xff] }
 0x3d5   :  { %5759 = vmatpush1.bf16.msra.mxu0 %v5758_v55  ;;  %5685 = vmatprep.subr.bf16.mxu1 %v5684_v24  ;;  %v3665_v55 = vld [vmem:[%s9604_s4 + $0x948] sm:$0xff]  ;;  %v3670_v24 = vld [vmem:[%s9604_s4 + $0x970] sm:$0xff]  ;;  %v5780_v42 = vpack.c.bf16 %v3672_v51, %v3669_v62  ;;  %v5830_v44 = vpack.c.bf16 %v3625_v63, %v3622_v61  ;;  %v3700_v62 = vld [vmem:[%s9604_s4 + $0xa60] sm:$0xff] }
 0x3d6   :  { %5761 = vmatprep.subr.bf16.mxu0 %v5760_v56  ;;  %v5826_v56 = vpack.c.bf16 %v3619_v35, %v3616_v25  ;;  %v5778_v58 = vpack.c.bf16 %v3665_v55, %v3662_v48  ;;  %v5828_v0 = vpack.c.bf16 %v3673_v59, %v3670_v24  ;;  %v3694_v8 = vld [vmem:[%s9604_s4 + $0xa30] sm:$0xff]  ;;  %v3697_v10 = vld [vmem:[%s9604_s4 + $0xa48] sm:$0xff]  ;;  %v5794_v48 = vpack.c.bf16 %v3689_v1, %v3686_v36  ;;  %v3692_v35 = vld [vmem:[%s9604_s4 + $0xa20] sm:$0xff] }
 0x3d7   :  { %3314 = vmatmul.mubr.f32.gmra.mrb[62].mxu1 %v8304_v15  ;;  %v3192_v15 = vld [vmem:[%s9604_s4 + $0x750] sm:$0xff]  ;;  %v5844_v25 = vpack.c.bf16 %v3697_v10, %v3694_v8  ;;  %v3649_v55 = vld [vmem:[%s9604_s4 + $0x8c8] sm:$0xff]  ;;  %v3695_v59 = vld [vmem:[%s9604_s4 + $0xa38] sm:$0xff] }
 0x3d8   :  { %3319 = vmatprep.mubr.f32.mxu1 %v8308_v20  ;;  %5687 = vmatpush1.bf16.msra.mxu1 %v5686_v7  ;;  %v5768_v20 = vpack.c.bf16 %v3654_v18, %v3651_v13  ;;  %v5694_v3 = vpack.c.bf16 %v3195_v28, %v3192_v15  ;;  %v3671_v7 = vld [vmem:[%s9604_s4 + $0x978] sm:$0xff]  ;;  %v5784_v13 = vpack.c.bf16 %v3678_v6, %v3675_v26  ;;  %v3677_v18 = vld [vmem:[%s9604_s4 + $0x9a8] sm:$0xff]  ;;  %v3684_v15 = vld [vmem:[%s9604_s4 + $0x9e0] sm:$0xff] }
 0x3d9   :  { %5763 = vmatpush1.bf16.msra.mxu0 %v5762_v2  ;;  %5689 = vmatprep.subr.bf16.mxu1 %v5688_v4  ;;  %v3676_v2 = vld [vmem:[%s9604_s4 + $0x9a0] sm:$0xff]  ;;  %v3679_v4 = vld [vmem:[%s9604_s4 + $0x9b8] sm:$0xff]  ;;  %v5834_v28 = vpack.c.bf16 %v3631_v47, %v3628_v11  ;;  %v3705_v6 = vld [vmem:[%s9604_s4 + $0xa88] sm:$0xff] }
 0x3da   :  { %5765 = vmatprep.subr.bf16.mxu0 %v5764_v60  ;;  %v5832_v37 = vpack.c.bf16 %v3679_v4, %v3676_v2  ;;  %v3703_v51 = vld [vmem:[%s9604_s4 + $0xa78] sm:$0xff]  ;;  %v3652_v63 = vld [vmem:[%s9604_s4 + $0x8e0] sm:$0xff]  ;;  %v3698_v2 = vld [vmem:[%s9604_s4 + $0xa50] sm:$0xff] }
 0x3db   :  { %3320 = vmatmul.mubr.f32.gmra.mrb[64].mxu1 %v8331_v40  ;;  %v3656_v40 = vld [vmem:[%s9604_s4 + $0x900] sm:$0xff]  ;;  %v5848_v61 = vpack.c.bf16 %v3703_v51, %v3700_v62  ;;  %v3701_v4 = vld [vmem:[%s9604_s4 + $0xa68] sm:$0xff]  ;;  %v3599_v26 = vld [vmem:[#allocation4 + $0x18] sm:$0xff] }
 0x3dc   :  { %5691 = vmatpush1.bf16.msra.mxu1 %v5690_v5  ;;  %3390 = vmatprep.mubr.f32.mxu1 %v7542_v45  ;;  %v5774_v14 = vpack.c.bf16 %v3659_v52, %v3656_v40  ;;  %v3682_v5 = vld [vmem:[%s9604_s4 + $0x9d0] sm:$0xff]  ;;  %v3643_v52 = vld [vmem:[%s9604_s4 + $0x898] sm:$0xff]  ;;  %v3596_v11 = vld [vmem:[#allocation4] sm:$0xfc] }
 0x3dd   :  { %5767 = vmatpush1.bf16.msra.mxu0 %v5766_v21  ;;  %5693 = vmatprep.subr.bf16.mxu1 %v5692_v22  ;;  %v3685_v21 = vld [vmem:[%s9604_s4 + $0x9e8] sm:$0xff]  ;;  %v3704_v47 = vld [vmem:[%s9604_s4 + $0xa80] sm:$0xff]  ;;  %v3722_v51 = vld [vmem:[%s9604_s4 + $0xb10] sm:$0xff] }
 0x3de   :  { %5769 = vmatprep.subr.bf16.mxu0 %v5768_v20  ;;  %v3681_v22 = vld [vmem:[%s9604_s4 + $0x9c8] sm:$0xff]  ;;  %v5836_v20 = vpack.c.bf16 %v3685_v21, %v3682_v5  ;;  %v3707_v5 = vld [vmem:[%s9604_s4 + $0xa98] sm:$0xff]  ;;  %v3706_v21 = vld [vmem:[%s9604_s4 + $0xa90] sm:$0xff] }
 0x3df   :  { %v5788_v39 = vpack.c.bf16 %v3684_v15, %v3681_v22  ;;  %v3709_v22 = vld [vmem:[%s9604_s4 + $0xaa8] sm:$0xff]  ;;  %v3716_v10 = vld [vmem:[%s9604_s4 + $0xae0] sm:$0xff] }
 0x3e0   :  { %5695 = vmatpush1.bf16.msra.mxu1 %v5694_v3  ;;  %v3687_v3 = vld [vmem:[%s9604_s4 + $0x9f8] sm:$0xff]  ;;  %v3717_v36 = vld [vmem:[%s9604_s4 + $0xae8] sm:$0xff] }
 0x3e1   :  { %5771 = vmatpush1.bf16.msra.mxu0 %v5770_v31  ;;  %5821 = vmatprep.subr.bf16.mxu1 %v5820_v23  ;;  %v3690_v31 = vld [vmem:[%s9604_s4 + $0xa10] sm:$0xff]  ;;  %v5838_v23 = vpack.c.bf16 %v3637_v38, %v3634_v32  ;;  %v5806_v32 = vpack.c.bf16 %v3707_v5, %v3704_v47 }
 0x3e2   :  { %5773 = vmatprep.subr.bf16.mxu0 %v5772_v16  ;;  %v3640_v16 = vld [vmem:[%s9604_s4 + $0x880] sm:$0xff]  ;;  %v5792_v53 = vpack.c.bf16 %v3690_v31, %v3687_v3  ;;  %v3606_v38 = vld [vmem:[#allocation4 + $0x50] sm:$0x3]  ;;  %v3713_v31 = vld [vmem:[%s9604_s4 + $0xac8] sm:$0xff] }
 0x3e3   :  { %4821 = vmatmul.mubr.msk.f32.vlgmr.msra.gmra.mrb[60].mxu1 %vm60_vm3, %v8384_v46  ;;  %v3668_v46 = vld [vmem:[%s9604_s4 + $0x960] sm:$0xff]  ;;  %v3710_v3 = vld [vmem:[%s9604_s4 + $0xab0] sm:$0xff] }
 0x3e4   :  { %5823 = vmatpush3.bf16.msra.mxu1 %v5822_v29  ;;  %3396 = vmatprep.mubr.f32.mxu1 %v7542_v45  ;;  %v5782_v60 = vpack.c.bf16 %v3671_v7, %v3668_v46  ;;  %v3693_v29 = vld [vmem:[%s9604_s4 + $0xa28] sm:$0xff]  ;;  %v5798_v46 = vpack.c.bf16 %v3695_v59, %v3692_v35  ;;  %v5810_v19 = vpack.c.bf16 %v3713_v31, %v3710_v3  ;;  %v3726_v35 = vld [vmem:[%s9604_s4 + $0xb30] sm:$0xff] }
 0x3e5   :  { %5775 = vmatpush1.bf16.msra.mxu0 %v5774_v14  ;;  %5825 = vmatprep.subr.bf16.mxu1 %v5824_v33  ;;  %v3696_v14 = vld [vmem:[%s9604_s4 + $0xa40] sm:$0xff]  ;;  %v5842_v33 = vpack.c.bf16 %v3643_v52, %v3640_v16  ;;  %v3757_v52 = vrot.slane %v3606_v38, 2 }
 0x3e6   :  { %5777 = vmatprep.subr.bf16.mxu0 %v5776_v54  ;;  %v3646_v54 = vld [vmem:[%s9604_s4 + $0x8b0] sm:$0xff]  ;;  %v5796_v24 = vpack.c.bf16 %v3696_v14, %v3693_v29  ;;  %v3720_v16 = vld [vmem:[%s9604_s4 + $0xb00] sm:$0xff]  ;;  %v3719_v29 = vld [vmem:[%s9604_s4 + $0xaf8] sm:$0xff] }
 0x3e7   :  { %4822 = vmatmul.mubr.msk.f32.gmra.mrb[62].mxu1 %vm60_vm3, %v8419_v12  ;;  %v3674_v12 = vld [vmem:[%s9604_s4 + $0x990] sm:$0xff]  ;;  %v5812_v8 = vpack.c.bf16 %v3720_v16, %v3717_v36 }
 0x3e8   :  { %5827 = vmatpush3.bf16.msra.mxu1 %v5826_v56  ;;  %3402 = vmatprep.mubr.f32.mxu1 %v7542_v45  ;;  %v5786_v30 = vpack.c.bf16 %v3677_v18, %v3674_v12  ;;  %v3699_v56 = vld [vmem:[%s9604_s4 + $0xa58] sm:$0xff]  ;;  %v5802_v12 = vpack.c.bf16 %v3701_v4, %v3698_v2  ;;  %v3718_v14 = vld [vmem:[%s9604_s4 + $0xaf0] sm:$0xff]  ;;  %v3604_v2 = vld [vmem:[#allocation4 + $0x40] sm:$0xff] }
 0x3e9   :  { %5779 = vmatpush1.bf16.msra.mxu0 %v5778_v58  ;;  %5829 = vmatprep.subr.bf16.mxu1 %v5828_v0  ;;  %v3702_v58 = vld [vmem:[%s9604_s4 + $0xa70] sm:$0xff]  ;;  %v5846_v0 = vpack.c.bf16 %v3649_v55, %v3646_v54  ;;  %v5814_v55 = vpack.c.bf16 %v3719_v29, %v3716_v10 }
 0x3ea   :  { %5781 = vmatprep.subr.bf16.mxu0 %v5780_v42  ;;  %v3655_v42 = vld [vmem:[%s9604_s4 + $0x8f8] sm:$0xff]  ;;  %v5800_v7 = vpack.c.bf16 %v3702_v58, %v3699_v56  ;;  %v3725_v56 = vld [vmem:[%s9604_s4 + $0xb28] sm:$0xff]  ;;  %v3724_v58 = vld [vmem:[%s9604_s4 + $0xb20] sm:$0xff] }
 0x3eb   :  { %4823 = vmatmul.mubr.msk.f32.gmra.mrb[64].mxu1 %vm60_vm3, %v8451_v49  ;;  %v3680_v49 = vld [vmem:[%s9604_s4 + $0x9c0] sm:$0xff] }
 0x3ec   :  { %5831 = vmatpush3.bf16.msra.mxu1 %v5830_v44  ;;  %4003 = vmatprep.mubr.f32.mxu1 %v8464_v9  ;;  %v3683_v9 = vld [vmem:[%s9604_s4 + $0x9d8] sm:$0xff]  ;;  %v3708_v44 = vld [vmem:[%s9604_s4 + $0xaa0] sm:$0xff] }
 0x3ed   :  { %5783 = vmatpush1.bf16.msra.mxu0 %v5782_v60  ;;  %5833 = vmatprep.subr.bf16.mxu1 %v5832_v37  ;;  %v5790_v40 = vpack.c.bf16 %v3683_v9, %v3680_v49  ;;  %v5850_v60 = vpack.c.bf16 %v3655_v42, %v3652_v63  ;;  %v3603_v37 = vld [vmem:[#allocation4 + $0x38] sm:$0xff]  ;;  %v5804_v18 = vpack.c.bf16 %v3708_v44, %v3705_v6  ;;  %v3740_v49 = vrot.slane %v3596_v11, 2  ;;  %v3598_v42 = vld [vmem:[#allocation4 + $0x10] sm:$0xfc] }
 0x3ee   :  { %5785 = vmatprep.subr.bf16.mxu0 %v5784_v13  ;;  %v3741_v13 = vrot.slane %v3599_v26, 2  ;;  %v3751_v15 = vrot.slane %v3603_v37, 2  ;;  %v5853_v9 = vpack.c.bf16 %v3709_v22, %v3706_v21  ;;  %v3746_v4 = vrot.slane %v3598_v42, 2  ;;  %v3607_v44 = vld [vmem:[#allocation4 + $0x58] sm:$0x3] }
 0x3ef   :  { %v3753_v6 = vrot.slane %v3604_v2, 2  ;;  %v5890_v2 = vld [vmem:[%s9608_s8] sm:$0x7]  ;;  %s4754_s8 = sshll.u32 %s5919_s30, 4  ;;  %s4755_s8 = int_to_ptr.vmem [resolvable:$true] %s4754_s8 }
 0x3f0   :  { %5835 = vmatpush3.bf16.msra.mxu1 %v5834_v28  ;;  %v3602_v28 = vld [vmem:[#allocation4 + $0x30] sm:$0xff]  ;;  %s5891_s12 = scalar_lea.vmem %s4755_s8, 32  ;;  %p5896_p1 = scmp.lt.s32.totalorder %s4755_s8, %s4755_s8 }
 0x3f1   :  { %5787 = vmatpush1.bf16.msra.mxu0 %v5786_v30  ;;  %5837 = vmatprep.subr.bf16.mxu1 %v5836_v20  ;;  %v3711_v30 = vld [vmem:[%s9604_s4 + $0xab8] sm:$0xff]  ;;  %v3714_v20 = vld [vmem:[%s9604_s4 + $0xad0] sm:$0xff]  ;;  %v3749_v41 = vrot.slane %v3602_v28, 2  ;;  %p5892_p0 = scmp.ne.s32.totalorder %s4755_s8, %s5891_s12  ;;  %p5897_p2 = scmp.lt.s32.totalorder %s5891_s12, %s5891_s12 }
 0x3f2   :  { %5789 = vmatprep.subr.bf16.mxu0 %v5788_v39  ;;  %v3742_v39 = vsel %vm232_vm4, %v3740_v49, %v3741_v13  ;;  %v5808_v34 = vpack.c.bf16 %v3714_v20, %v3711_v30  ;;  %v2568_v30 = vld [vmem:[#allocation5 + $0x10] sm:$0xff] }
 0x3f3   :  { %p5898_p3 = por %p5897_p2, %p5896_p1 }
 0x3f4   :  { %5839 = vmatpush3.bf16.msra.mxu1 %v5838_v23  ;;  %v3712_v23 = vld [vmem:[%s9604_s4 + $0xac0] sm:$0xff] }
 0x3f5   :  { %5791 = vmatpush1.bf16.msra.mxu0 %v5790_v40  ;;  %5841 = vmatprep.subr.bf16.mxu1 %v5840_v17  ;;  %v3752_v40 = vsel %vm232_vm4, %v3744_v27, %v3751_v15  ;;  %v3715_v17 = vld [vmem:[%s9604_s4 + $0xad8] sm:$0xff]  ;;  %v3750_v27 = vsel %vm232_vm4, %v3741_v13, %v3749_v41  ;;  %p5899_p4 = pnand %p5898_p3, %p5892_p0 }
 0x3f6   :  { %5793 = vmatprep.subr.bf16.mxu0 %v5792_v53  ;;  %v3605_v53 = vld [vmem:[#allocation4 + $0x48] sm:$0x3]  ;;  %v5856_v1 = vpack.c.bf16 %v3715_v17, %v3712_v23  ;;  %v2574_v17 = vld [vmem:[#allocation5 + $0x40] sm:$0xff] }
 0x3f7   :  { %v3755_v54 = vrot.slane %v3605_v53, 2 }
 0x3f8   :  { %5843 = vmatpush3.bf16.msra.mxu1 %v5842_v33  ;;  %v3758_v33 = vsel %vm232_vm4, %v3751_v15, %v3757_v52 }
 0x3f9   :  { %5795 = vmatpush1.bf16.msra.mxu0 %v5794_v48  ;;  %5845 = vmatprep.subr.bf16.mxu1 %v5844_v25  ;;  %v3721_v48 = vld [vmem:[%s9604_s4 + $0xb08] sm:$0xff]  ;;  %v3723_v25 = vld [vmem:[%s9604_s4 + $0xb18] sm:$0xff] }
 0x3fa   :  { %5797 = vmatprep.subr.bf16.mxu0 %v5796_v24  ;;  %v3756_v24 = vsel %vm232_vm4, %v3749_v41, %v3755_v54  ;;  %v5859_v59 = vpack.c.bf16 %v3721_v48, %v3718_v14  ;;  %v5816_v62 = vpack.c.bf16 %v3726_v35, %v3723_v25 }
 0x3fc   :  { %5847 = vmatpush3.bf16.msra.mxu1 %v5846_v0  ;;  %v3727_v0 = vld [vmem:[%s9604_s4 + $0xb38] sm:$0xff] }
 0x3fd   :  { %5799 = vmatpush1.bf16.msra.mxu0 %v5798_v46  ;;  %5849 = vmatprep.subr.bf16.mxu1 %v5848_v61  ;;  %v3601_v46 = vld [vmem:[#allocation4 + $0x28] sm:$0xff]  ;;  %v5818_v61 = vpack.c.bf16 %v3725_v56, %v3722_v51  ;;  %v5862_v63 = vpack.c.bf16 %v3727_v0, %v3724_v58 }
 0x3fe   :  { %5801 = vmatprep.subr.bf16.mxu0 %v5800_v7  ;;  %v3747_v7 = vrot.slane %v3601_v46, 2 }
 0x400   :  { %5851 = vmatpush3.bf16.msra.mxu1 %v5850_v60  ;;  %v3748_v26 = vsel %vm232_vm4, %v3746_v4, %v3747_v7  ;;  %v3759_v60 = vrot.slane %v3607_v44, 2  ;;  %v2545_v4 = vrot.slane %v5890_v2, %v6267_v57 }
 0x401   :  { %5803 = vmatpush1.bf16.msra.mxu0 %v5802_v12  ;;  %5852 = vmatprep.subr.bf16.mxu1 %v5917_v50 }
 0x402   :  { %5805 = vmatprep.subr.bf16.mxu0 %v5804_v18  ;;  %v3760_v37 = vsel %vm232_vm4, %v3753_v6, %v3759_v60 }
 0x403   :  { %4004 = vmatmul.mubr.f32.vlgmr.msra.gmra.mrb[66].mxu1 %v3742_v39 }
 0x404   :  { %3838 = vmatmul.mubr.f32.vlgmr.msra.gmra.mrb[64].mxu0 %v3742_v39  ;;  %4008 = vmatprep.mubr.f32.mxu1 %v3752_v40 }
 0x405   :  { %3843 = vmatprep.mubr.f32.mxu0 %v3752_v40  ;;  %5807 = vmatpush1.bf16.msra.mxu0 %v5806_v32 }
 0x406   :  { %5854 = vmatpush3.bf16.msra.mxu1 %v5853_v9  ;;  %5809 = vmatprep.subr.bf16.mxu0 %v5808_v34  ;;  %v2571_v9 = vld [vmem:[#allocation5 + $0x28] sm:$0xff] }
 0x407   :  { %4009 = vmatmul.mubr.f32.gmra.mrb[68].mxu1 %v3750_v27  ;;  %5855 = vmatprep.subr.bf16.mxu1 %v5917_v50 }
 0x408   :  { %3844 = vmatmul.mubr.f32.gmra.mrb[66].mxu0 %v3750_v27  ;;  %4013 = vmatprep.mubr.f32.mxu1 %v3758_v33 }
 0x409   :  { %3849 = vmatprep.mubr.f32.mxu0 %v3758_v33  ;;  %5811 = vmatpush1.bf16.msra.mxu0 %v5810_v19 }
 0x40a   :  { %5857 = vmatpush3.bf16.msra.mxu1 %v5856_v1  ;;  %5813 = vmatprep.subr.bf16.mxu0 %v5812_v8 }
 0x40b   :  { %4014 = vmatmul.mubr.f32.gmra.mrb[70].mxu1 %v3756_v24  ;;  %5858 = vmatprep.subr.bf16.mxu1 %v5917_v50 }
 0x40c   :  { %3850 = vmatmul.mubr.f32.gmra.mrb[68].mxu0 %v3756_v24  ;;  %5055 = vmatprep.mubr.msk.f32.mxu1 %vm5918_vm11, %v7542_v45 }
 0x40d   :  { %5815 = vmatpush1.bf16.msra.mxu0 %v5814_v55  ;;  %3920 = vmatprep.mubr.f32.mxu0 %v7542_v45 }
 0x40e   :  { %5860 = vmatpush3.bf16.msra.mxu1 %v5859_v59  ;;  %5817 = vmatprep.subr.bf16.mxu0 %v5816_v62 }
 0x40f   :  { %5861 = vmatprep.subr.bf16.mxu1 %v5917_v50  ;;  %v3754_v50 = vsel %vm232_vm4, %v3747_v7, %v3753_v6  ;;  %vm4452_vm4 = vcmask 1047557  }
 0x411   :  { %5819 = vmatpush1.bf16.msra.mxu0 %v5818_v61 }
 0x412   :  { %5863 = vmatpush3.bf16.msra.mxu1 %v5862_v63 }
 0x414   :  { %4827 = vmatmul.mubr.msk.f32.vlgmr.msra.gmra.mrb[64].mxu0 %vm60_vm3, %v3748_v26 }
 0x415   :  { %5056 = vmatmul.mubr.msk.f32.vlgmr.msra.gmra.mrb[72].mxu1 %vm60_vm3, %v3748_v26  ;;  %3926 = vmatprep.mubr.f32.mxu0 %v7542_v45  ;;  %v2549_v26 = vrot.slane %v5890_v2, %v6098_v43 }
 0x416   :  { %5058 = vmatprep.mubr.msk.f32.mxu1 %vm5918_vm11, %v7542_v45 }
 0x418   :  { %4828 = vmatmul.mubr.msk.f32.gmra.mrb[66].mxu0 %vm60_vm3, %v3754_v50 }
 0x419   :  { %5059 = vmatmul.mubr.msk.f32.gmra.mrb[74].mxu1 %vm60_vm3, %v3754_v50  ;;  %3932 = vmatprep.mubr.f32.mxu0 %v7542_v45 }
 0x41a   :  { %5061 = vmatprep.mubr.msk.f32.mxu1 %vm5918_vm11, %v7542_v45 }
 0x41c   :  { %4829 = vmatmul.mubr.msk.f32.gmra.mrb[68].mxu0 %vm60_vm3, %v3760_v37 }
 0x41d   :  { %5062 = vmatmul.mubr.msk.f32.gmra.mrb[76].mxu1 %vm60_vm3, %v3760_v37 }
 0x451   :  { %v4865_v12 = vpop.f32.mrb[48].mxu1 }
 0x452   :  { %v4866_v11 = vpop.f32.mrb[49].mxu1 }
 0x453   :  { %v4867_v47 = vadd.f32 %v4866_v11, %v4865_v12 }
 0x45e   :  { %v4868_v13 = vpop.f32.mrb[50].mxu1 }
 0x45f   :  { %v4869_v18 = vpop.f32.mrb[51].mxu1 }
 0x460   :  { %v4870_v5 = vadd.f32 %v4869_v18, %v4868_v13 }
 0x462   :  { %v4871_v21 = vpop.f32.mrb[52].mxu1 }
 0x463   :  { %v4872_v22 = vpop.f32.mrb[53].mxu1 }
 0x464   :  { %v4873_v15 = vadd.f32 %v4872_v22, %v4871_v21 }
 0x466   :  { %v2862_v28 = vpop.f32.mrb[46].mxu0  ;;  %v3025_v20 = vpop.f32.mrb[54].mxu1 }
 0x467   :  { %v3026_v49 = vadd.f32 %v4867_v47, %v3025_v20  ;;  %v2864_v45 = vpop.f32.mrb[47].mxu0  ;;  %v5007_v32 = vpop.f32.mrb[55].mxu1  ;;  %v3039_v6 = vadd.f32 %v2862_v28, %v2545_v4  ;;  %v8885_v20 = vld [vmem:[%s9609_s9 + $0x18] sm:$0xf8] }
 0x468   :  { %v3040_v44 = vadd.f32 %v2864_v45, %v2549_v26  ;;  %v8895_v45 = vld [vmem:[%s9609_s9 + $0x30] sm:$0x3f]  ;;  %v8900_v32 = vld [vmem:[%s9609_s9 + $0x38] sm:$0x3f] }
 0x469   :  { %v3041_v38 = vadd.f32 %v3026_v49, %v2568_v30  ;;  %v8890_v49 = vld [vmem:[%s9609_s9 + $0x20] sm:$0xf8] }
 0x46a   :  { %v2868_v39 = vpop.f32.mrb[48].mxu0  ;;  %v3030_v41 = vpop.f32.mrb[56].mxu1 }
 0x46b   :  { %3050 = vst.msk [vmem:[#allocation5 + $0x10] sm:$0xff] %vm60_vm3, %v3041_v38  ;;  %v3031_v34 = vadd.f32 %v4870_v5, %v3030_v41  ;;  %v2870_v3 = vpop.f32.mrb[49].mxu0  ;;  %v5010_v31 = vpop.f32.mrb[57].mxu1  ;;  %v3042_v11 = vadd.f32 %v2868_v39, %v2545_v4  ;;  %v8905_v38 = vld [vmem:[%s9609_s9 + $0x30] sm:$0xc0] }
 0x46c   :  { %v3043_v47 = vadd.f32 %v2870_v3, %v2549_v26  ;;  %v8910_v39 = vld [vmem:[%s9609_s9 + $0x38] sm:$0xc0]  ;;  %v8920_v41 = vld [vmem:[%s9609_s9 + $0x50] sm:$0xff]  ;;  %v8930_v3 = vld [vmem:[%s9609_s9 + $0x80] sm:$0xf] }
 0x46d   :  { %v3044_v23 = vadd.f32 %v3031_v34, %v2571_v9  ;;  %v8915_v9 = vld [vmem:[%s9609_s9 + $0x48] sm:$0xff]  ;;  %v8925_v34 = vld [vmem:[%s9609_s9 + $0x78] sm:$0xf] }
 0x46e   :  { %v2874_v40 = vpop.f32.mrb[50].mxu0  ;;  %v3035_v36 = vpop.f32.mrb[58].mxu1  ;;  %v8935_v31 = vld [vmem:[%s9609_s9 + $0x28] sm:$0xf8] }
 0x46f   :  { %3053 = vst.msk [vmem:[#allocation5 + $0x28] sm:$0xff] %vm60_vm3, %v3044_v23  ;;  %v3036_v16 = vadd.f32 %v4873_v15, %v3035_v36  ;;  %v2876_v52 = vpop.f32.mrb[51].mxu0  ;;  %v5013_v19 = vpop.f32.mrb[59].mxu1  ;;  %v3045_v22 = vadd.f32 %v2874_v40, %v2545_v4  ;;  %v8940_v23 = vld [vmem:[%s9609_s9 + $0x40] sm:$0x3f]  ;;  %v4179_v40 = vrot.slane %v8885_v20, 3 }
 0x470   :  { %v3046_v57 = vadd.f32 %v2876_v52, %v2549_v26  ;;  %v9613_v36 = vrot.slane %v8895_v45, 3  ;;  %v4242_v52 = vrot.slane %v8905_v38, 6  ;;  %v4245_v19 = vrot.slane %v8910_v39, 6  ;;  %v4548_v26 = vld [vmem:[%s9609_s9 + $0x38] sm:$0xc0] }
 0x471   :  { %v3047_v53 = vadd.f32 %v3036_v16, %v2574_v17  ;;  %v4182_v17 = vrot.slane %v8890_v49, 3  ;;  %v9612_v16 = vrot.slane %v8900_v32, 3  ;;  %v9032_v20 = vld [vmem:[%s9609_s9 + $0x28] sm:$0xf8]  ;;  %v4568_v49 = vrot.slane %v4548_v26, 1 }
 0x472   :  { %v3059_v24 = vld [vmem:[#allocation5 + $0x10] sm:$0xff] }
 0x473   :  { %3056 = vst.msk [vmem:[#allocation5 + $0x40] sm:$0xff] %vm60_vm3, %v3047_v53  ;;  %v8951_v53 = vld [vmem:[%s9609_s9 + $0x18] sm:$0xf8]  ;;  %v9037_v39 = vld [vmem:[%s9609_s9 + $0x70] sm:$0xfe] }
 0x474   :  { %9629 = vst [vmem:[#allocation10_spill] sm:$0xff] %v9037_v39  ;;  %v9640_v39 = vrot.slane %v8915_v9, 1 }
 0x476   :  { %v3062_v58 = vld [vmem:[#allocation5 + $0x28] sm:$0xff] }
 0x47a   :  { %v3065_v42 = vld [vmem:[#allocation5 + $0x40] sm:$0xff] }
 0x487   :  { %v4917_v27 = vpop.f32.mrb[52].mxu0 }
 0x488   :  { %v4918_v1 = vpop.f32.mrb[53].mxu0 }
 0x489   :  { %v4919_v8 = vadd.f32 %v4918_v1, %v4917_v27  ;;  %v8956_v27 = vld [vmem:[%s9609_s9] sm:$0xff]  ;;  %v4243_v1 = vrot.slane %v8915_v9, 6 }
 0x48b   :  { %v4920_v10 = vpop.f32.mrb[54].mxu0 }
 0x48c   :  { %v4921_v29 = vpop.f32.mrb[55].mxu0 }
 0x48d   :  { %v4922_v14 = vadd.f32 %v4921_v29, %v4920_v10  ;;  %v9187_v10 = vld [vmem:[%s9609_s9 + $0x70] sm:$0xfe] }
 0x48f   :  { %v4923_v33 = vpop.f32.mrb[56].mxu0 }
 0x490   :  { %v4924_v48 = vpop.f32.mrb[57].mxu0 }
 0x491   :  { %v4925_v25 = vadd.f32 %v4924_v48, %v4923_v33  ;;  %v4185_v33 = vrot.slane %v8935_v31, 3  ;;  %v9614_v48 = vrot.slane %v8940_v23, 3  ;;  %v9042_v31 = vld [vmem:[%s9609_s9 + $0x88] sm:$0xf] }
 0x497   :  { %v3555_v35 = vpop.f32.mrb[58].mxu0 }
 0x498   :  { %v3556_v54 = vadd.f32 %v4919_v8, %v3555_v35  ;;  %v5032_v55 = vpop.f32.mrb[59].mxu0  ;;  %v4246_v8 = vrot.slane %v8920_v41, 6  ;;  %v8977_v35 = vld [vmem:[%s9609_s9 + $0x60] sm:$0xfe] }
 0x499   :  { %v9617_v55 = vrot.slane %v8956_v27, 3 }
 0x49a   :  { %v3571_v59 = vadd.f32 %v3556_v54, %v3059_v24  ;;  %v4226_v24 = vld [vmem:[%s9609_s9 + $0x40] sm:$0xc0] }
 0x49b   :  { %v3560_v62 = vpop.f32.mrb[60].mxu0 }
 0x49c   :  { %3580 = vst.msk [vmem:[#allocation5 + $0x10] sm:$0xff] %vm60_vm3, %v3571_v59  ;;  %v3561_v51 = vadd.f32 %v4922_v14, %v3560_v62  ;;  %v5035_v56 = vpop.f32.mrb[61].mxu0  ;;  %v8965_v14 = vld [vmem:[%s9609_s9 + $0x8] sm:$0xff]  ;;  %v9618_v62 = vrot.slane %v8915_v9, 1  ;;  %v9642_v9 = vrot.slane %v8930_v3, 1 }
 0x49d   :  { %v8988_v56 = vld [vmem:[%s9609_s9 + $0x58] sm:$0xff] }
 0x49e   :  { %v3574_v0 = vadd.f32 %v3561_v51, %v3062_v58  ;;  %9628 = vst [vmem:[#allocation9_spill] sm:$0xff] %v8988_v56  ;;  %v4547_v58 = vld [vmem:[%s9609_s9 + $0x30] sm:$0xc0] }
 0x49f   :  { %v3565_v46 = vpop.f32.mrb[62].mxu0 }
 0x4a0   :  { %3583 = vst.msk [vmem:[#allocation5 + $0x28] sm:$0xff] %vm60_vm3, %v3574_v0  ;;  %v3566_v61 = vadd.f32 %v4925_v25, %v3565_v46  ;;  %v5038_v63 = vpop.f32.mrb[63].mxu0  ;;  %v8972_v25 = vld [vmem:[%s9609_s9 + $0x20] sm:$0xf8]  ;;  %v8996_v0 = vld [vmem:[%s9609_s9 + $0x68] sm:$0xfe] }
 0x4a1   :  { %v4293_v63 = vld [vmem:[%s9609_s9 + $0x60] sm:$0xfe] }
 0x4a2   :  { %v3577_v7 = vadd.f32 %v3566_v61, %v3065_v42  ;;  %v9003_v61 = vld [vmem:[%s9609_s9 + $0x10] sm:$0xff] }
 0x4a4   :  { %3586 = vst.msk [vmem:[#allocation5 + $0x40] sm:$0xff] %vm60_vm3, %v3577_v7  ;;  %v4230_v7 = vld [vmem:[%s9609_s9 + $0x60] sm:$0x1] }
 0x4b6   :  { %v3392_v50 = vpop.f32.mrb[60].mxu1 }
 0x4b7   :  { %v8870_v60 = vadd.f32 %v3392_v50, %v3039_v6  ;;  %v3394_v37 = vpop.f32.mrb[61].mxu1  ;;  %v9616_v6 = vrot.slane %v8920_v41, 1 }
 0x4b8   :  { %v8872_v12 = vadd.f32 %v3394_v37, %v3040_v44  ;;  %v4231_v44 = vld [vmem:[%s9609_s9 + $0x68] sm:$0x1]  ;;  %v4248_v37 = vrot.slane %v4226_v24, 6  ;;  %v4422_v24 = vld [vmem:[%s9609_s9 + $0x18] sm:$0x7] }
 0x4b9   :  { %v4253_v38 = vrot.slane %v4231_v44, 6  ;;  %v4423_v44 = vld [vmem:[%s9609_s9 + $0x20] sm:$0x7] }
 0x4ba   :  { %v3398_v13 = vpop.f32.mrb[62].mxu1 }
 0x4bb   :  { %v8874_v18 = vadd.f32 %v3398_v13, %v3042_v11  ;;  %v3400_v5 = vpop.f32.mrb[63].mxu1  ;;  %v4249_v11 = vrot.slane %v8988_v56, 6  ;;  %v9615_v13 = vrot.slane %v8988_v56, 1 }
 0x4bc   :  { %v8876_v21 = vadd.f32 %v3400_v5, %v3043_v47  ;;  %v4565_v47 = vrot.slane %v4547_v58, 1  ;;  %v9055_v58 = vsel %vm1187_vm13, %v4179_v40, %v9613_v36  ;;  %v9071_v40 = vsel %vm1187_vm13, %v4185_v33, %v9614_v48  ;;  %v4424_v36 = vld [vmem:[%s9609_s9 + $0x28] sm:$0x7]  ;;  %v4488_v33 = vld [vmem:[%s9609_s9 + $0x38] sm:$0x3f] }
 0x4bd   :  { %v4438_v42 = vrot.slane %v4424_v36, 3  ;;  %v4501_v4 = vrot.slane %v4488_v33, 6  ;;  %v9129_v36 = vld [vmem:[%s9609_s9 + $0x68] sm:$0x1] }
 0x4be   :  { %v3404_v15 = vpop.f32.mrb[64].mxu1  ;;  %v9118_v29 = vsel %vm796_vm12, %v4565_v47, %v9618_v62  ;;  %v4350_v47 = vld [vmem:[%s9609_s9 + $0x78] sm:$0xf0] }
 0x4bf   :  { %v8878_v43 = vadd.f32 %v3404_v15, %v3045_v22  ;;  %v3406_v28 = vpop.f32.mrb[65].mxu1  ;;  %v4549_v22 = vld [vmem:[%s9609_s9 + $0x40] sm:$0xc0]  ;;  %v4251_v15 = vrot.slane %v4230_v7, 6  ;;  %v9060_v7 = vsel %vm1187_vm13, %v4182_v17, %v9612_v16  ;;  %v9076_v17 = vsel %vm113_vm0, %v4242_v52, %v4243_v1  ;;  %v4553_v16 = vld [vmem:[%s9609_s9 + $0x60] sm:$0x1] }
 0x4c0   :  { %v8880_v30 = vadd.f32 %v3406_v28, %v3046_v57  ;;  %v4232_v57 = vld [vmem:[%s9609_s9 + $0x70] sm:$0x1]  ;;  %v4571_v26 = vrot.slane %v4549_v22, 1  ;;  %v9081_v22 = vsel %vm113_vm0, %v4245_v19, %v4246_v8  ;;  %v9093_v52 = vsel %vm113_vm0, %v4248_v37, %v4249_v11  ;;  %v9099_v19 = vld [vmem:[%s9609_s9 + $0x80] sm:$0xf0] }
 0x4c1   :  { %v4255_v2 = vrot.slane %v4232_v57, 6  ;;  %9630 = vst [vmem:[#allocation11_spill] sm:$0xff] %v9099_v19  ;;  %v9109_v37 = vld [vmem:[%s9609_s9 + $0x88] sm:$0xf0]  ;;  %v4436_v57 = vrot.slane %v4423_v44, 3  ;;  %v4574_v44 = vrot.slane %v4553_v16, 1  ;;  %v9150_v16 = vsel %vm113_vm0, %v4246_v8, %v4253_v38 }
 0x4c2   :  { %9631 = vst [vmem:[#allocation12_spill] sm:$0xff] %v9109_v37  ;;  %9633 = vst [vmem:[#allocation14_spill] sm:$0xff] %v9150_v16  ;;  %v4305_v8 = vrot.slane %v4293_v63, 1  ;;  %v9207_v63 = vld [vmem:[%s9609_s9 + $0x78] sm:$0xf]  ;;  %v4576_v16 = vrot.slane %v9129_v36, 1 }
 0x4c3   :  { %v9153_v33 = vsel %vm113_vm0, %v4249_v11, %v4255_v2  ;;  %v9635_v11 = vrot.slane %v8965_v14, 3  ;;  %v9641_v37 = vrot.slane %v8925_v34, 1  ;;  %v3589_v19 = vld [vmem:[#allocation5 + $0x10] sm:$0xff]  ;;  %v4637_v36 = vrot.slane %v9207_v63, 4 }
 0x4c4   :  { %9634 = vst [vmem:[#allocation15_spill] sm:$0xff] %v9153_v33  ;;  %v9221_v33 = vsel %vm796_vm12, %v9640_v39, %v4574_v44 }
 0x4c5   :  { %v9177_v38 = vsel %vm1187_vm13, %v9635_v11, %v4436_v57  ;;  %v9639_v11 = vrot.slane %v8972_v25, 6 }
 0x4c7   :  { %v9202_v62 = vsel %vm113_vm0, %v9639_v11, %v4501_v4 }
 0x4d6   :  { %v4969_v54 = vpop.f32.mrb[66].mxu1 }
 0x4d7   :  { %v4970_v51 = vpop.f32.mrb[67].mxu1 }
 0x4d8   :  { %v8998_v46 = vadd.f32 %v4970_v51, %v4969_v54  ;;  %v9047_v54 = vld [vmem:[%s9609_s9 + $0x78] sm:$0xf0] }
 0x4da   :  { %v4972_v50 = vpop.f32.mrb[68].mxu1 }
 0x4db   :  { %v4973_v5 = vpop.f32.mrb[69].mxu1 }
 0x4dc   :  { %v9027_v28 = vadd.f32 %v4973_v5, %v4972_v50  ;;  %v4487_v50 = vld [vmem:[%s9609_s9 + $0x30] sm:$0x3f] }
 0x4dd   :  { %v4499_v59 = vrot.slane %v4487_v50, 6  ;;  %v4294_v50 = vld [vmem:[%s9609_s9 + $0x68] sm:$0xfe] }
 0x4de   :  { %v4975_v51 = vpop.f32.mrb[70].mxu1  ;;  %v4308_v56 = vrot.slane %v4294_v50, 1 }
 0x4df   :  { %v4976_v5 = vpop.f32.mrb[71].mxu1 }
 0x4e0   :  { %v9090_v48 = vadd.f32 %v4976_v5, %v4975_v51  ;;  %v4434_v5 = vrot.slane %v4422_v24, 3  ;;  %v9123_v51 = vsel %vm113_vm0, %v4243_v1, %v4251_v15  ;;  %v9140_v1 = vsel %vm796_vm12, %v4568_v49, %v9616_v6  ;;  %v4351_v24 = vld [vmem:[%s9609_s9 + $0x80] sm:$0xf0]  ;;  %v9161_v49 = vld [vmem:[%s9609_s9 + $0x90] sm:$0x7f] }
 0x4e1   :  { %9632 = vst [vmem:[#allocation13_spill] sm:$0xff] %v9123_v51  ;;  %v9145_v15 = vsel %vm796_vm12, %v4571_v26, %v9615_v13  ;;  %v9166_v26 = vld [vmem:[%s9609_s9 + $0x98] sm:$0x7f]  ;;  %v9182_v13 = vld [vmem:[%s9609_s9 + $0x40] sm:$0x3f]  ;;  %v9636_v6 = vrot.slane %v9003_v61, 3  ;;  %v4310_v39 = vsel %vm796_vm12, %v4308_v56, %v9642_v9 }
 0x4e2   :  { %v9172_v2 = vsel %vm1187_vm13, %v9617_v55, %v4434_v5  ;;  %v9638_v55 = vrot.slane %v8951_v53, 6 }
 0x4e3   :  { %v9192_v5 = vsel %vm1187_vm13, %v9636_v6, %v4438_v42  ;;  %v9212_v42 = vld [vmem:[%s9609_s9 + $0x80] sm:$0xf]  ;;  %vm4146_vm13 = vcmask 1042432  }
 0x4e4   :  { %9637 = vst [vmem:[#allocation16_spill] sm:$0xff] %v9192_v5  ;;  %v9197_v57 = vsel %vm113_vm0, %v9638_v55, %v4499_v59  ;;  %v4362_v5 = vrot.slane %v4350_v47, 4  ;;  %v4365_v59 = vrot.slane %v4351_v24, 4 }
 0x4e7   :  { %v3922_v6 = vpop.f32.mrb[64].mxu0 }
 0x4e8   :  { %v4099_v4 = vadd.f32 %v3922_v6, %v8870_v60  ;;  %v4085_v50 = vpop.f32.mrb[72].mxu1  ;;  %v3924_v11 = vpop.f32.mrb[65].mxu0  ;;  %v4307_v60 = vsel %vm796_vm12, %v4305_v8, %v9641_v37  ;;  %v9644_v8 = vrot.slane %v9166_v26, 4 }
 0x4e9   :  { %v4086_v47 = vadd.f32 %v8998_v46, %v4085_v50  ;;  %v4100_v55 = vadd.f32 %v3924_v11, %v8872_v12  ;;  %v5057_v24 = vpop.f32.mrb[73].mxu1  ;;  %v4639_v46 = vrot.slane %v9212_v42, 4  ;;  %v9643_v11 = vrot.slane %v9161_v49, 4 }
 0x4ea   :  { %4108 = vst [vmem:[#allocation5] sm:$0xff] %v4099_v4  ;;  %v4123_v51 = vmax.f32 %v4099_v4, 0.0  ;;  %v4367_v4 = vsel %vm366_vm5, %v4365_v59, %v9644_v8 }
 0x4eb   :  { %v4101_v44 = vadd.f32 %v4086_v47, %v3589_v19  ;;  %4109 = vst [vmem:[#allocation5 + $0x8] sm:$0xff] %v4100_v55  ;;  %v3928_v12 = vpop.f32.mrb[66].mxu0  ;;  %v4124_v50 = vmax.f32 %v4100_v55, 0.0  ;;  %v4364_v37 = vsel %vm366_vm5, %v4362_v5, %v9643_v11 }
 0x4ec   :  { %v4102_v24 = vadd.f32 %v3928_v12, %v8874_v18  ;;  %v4090_v6 = vpop.f32.mrb[74].mxu1  ;;  %v3930_v56 = vpop.f32.mrb[67].mxu0  ;;  %v4135_v63 = vmul.f32 %v8956_v27, %v4123_v51  ;;  %v4194_v42 = vmul.f32 %v9055_v58, %v4123_v51  ;;  %v4263_v19 = vmul.f32 %v9076_v17, %v4123_v51  ;;  %v4688_v18 = vld [vmem:[%s9609_s9 + $0x90] sm:$0x7f]  ;;  %v3592_v12 = vld [vmem:[#allocation5 + $0x28] sm:$0xff] }
 0x4ed   :  { %4110 = vst.msk [vmem:[#allocation5 + $0x10] sm:$0xff] %vm60_vm3, %v4101_v44  ;;  %v4091_v55 = vadd.f32 %v9027_v28, %v4090_v6  ;;  %v4103_v5 = vadd.f32 %v3930_v56, %v8876_v21  ;;  %v5060_v47 = vpop.f32.mrb[75].mxu1  ;;  %v4136_v9 = vmul.f32 %v8965_v14, %v4124_v50  ;;  %v4195_v59 = vmul.f32 %v9060_v7, %v4124_v50  ;;  %v9261_v7 = vld [vmem:[%s9609_s9 + $0x70] sm:$0x1] }
 0x4ee   :  { %4111 = vst [vmem:[#allocation5 + $0x18] sm:$0xff] %v4102_v24  ;;  %v4264_v58 = vmul.f32 %v9081_v22, %v4124_v50  ;;  %v4320_v17 = vmul.f32 %v4307_v60, %v4123_v51  ;;  %v4321_v11 = vmul.f32 %v4310_v39, %v4124_v50  ;;  %v4377_v44 = vmul.f32 %v4364_v37, %v4123_v51 }
 0x4ef   :  { %v4104_v8 = vadd.f32 %v4091_v55, %v3592_v12  ;;  %4112 = vst [vmem:[#allocation5 + $0x20] sm:$0xff] %v4103_v5  ;;  %v3934_v28 = vpop.f32.mrb[68].mxu0  ;;  %v9254_v21 = vadd.f32 %v4136_v9, %v4135_v63  ;;  %v9256_v6 = vadd.f32 %v4195_v59, %v4194_v42  ;;  %v4378_v24 = vmul.f32 %v4367_v4, %v4124_v50  ;;  %v9279_v4 = vld [vmem:[%s9609_s9 + $0x98] sm:$0x7f] }
 0x4f0   :  { %v4105_v56 = vadd.f32 %v3934_v28, %v8878_v43  ;;  %v4095_v22 = vpop.f32.mrb[76].mxu1  ;;  %v3936_v60 = vpop.f32.mrb[69].mxu0  ;;  %v9264_v39 = vadd.f32 %v4264_v58, %v4263_v19  ;;  %v9266_v51 = vadd.f32 %v4321_v11, %v4320_v17  ;;  %v4700_v37 = vrot.slane %v4688_v18, 7  ;;  %v3595_v19 = vld [vmem:[#allocation5 + $0x40] sm:$0xff] }
 0x4f1   :  { %4113 = vst.msk [vmem:[#allocation5 + $0x28] sm:$0xff] %vm60_vm3, %v4104_v8  ;;  %v4096_v63 = vadd.f32 %v9090_v48, %v4095_v22  ;;  %v4106_v42 = vadd.f32 %v3936_v60, %v8880_v30  ;;  %v5063_v55 = vpop.f32.mrb[77].mxu1  ;;  %v9645_v5 = vrot.slane %v8920_v41, 1  ;;  %v9274_v43 = vadd.f32 %v4378_v24, %v4377_v44 }
 0x4f2   :  { %v9281_v47 = vmax.f32 %v4105_v56, 0.0  ;;  %v9646_v48 = vrot.slane %v9182_v13, 6  ;;  %v9647_v30 = vrot.slane %v9032_v20, 6  ;;  %v4578_v41 = vrot.slane %v9261_v7, 1 }
 0x4f3   :  { %v4577_v50 = vsel %vm796_vm12, %v9645_v5, %v4576_v16  ;;  %v9648_v16 = vrot.slane %v8977_v35, 4  ;;  %v4107_v18 = vadd.f32 %v4096_v63, %v3595_v19  ;;  %4115 = vst [vmem:[#allocation5 + $0x38] sm:$0xff] %v4106_v42  ;;  %v9294_v12 = vmax.f32 %v4106_v42, 0.0 }
 0x4f4   :  { %v9288_v9 = vsel %vm113_vm0, %v9647_v30, %v9646_v48  ;;  %v9649_v58 = vrot.slane %v9042_v31, 1  ;;  %v9650_v17 = vrot.slane %v9187_v10, 1  ;;  %v9651_v11 = vrot.slane %v8996_v0, 4  ;;  %v4119_v8 = vld [vmem:[#allocation5 + $0x10] sm:$0xff] }
 0x4f5   :  { %v4638_v59 = vsel %vm366_vm5, %v9648_v16, %v4637_v36  ;;  %v4132_v36 = vld [vmem:[%s9609_s9 + $0x18] sm:$0x7]  ;;  %vm4150_vm0 = vcmask 518144   ;;  %v9311_v28 = vmul.f32 %v9172_v2, %v9281_v47  ;;  %v9315_v10 = vmul.f32 %v9197_v57, %v9281_v47  ;;  %4116 = vst.msk [vmem:[#allocation5 + $0x40] sm:$0xff] %vm60_vm3, %v4107_v18  ;;  %v4407_v60 = vld [vmem:[#allocation5 + $0x18] sm:$0xe0] }
 0x4f6   :  { %v9301_v13 = vsel %vm796_vm12, %v9650_v17, %v9649_v58  ;;  %v4640_v44 = vsel %vm366_vm5, %v9651_v11, %v4639_v46  ;;  %v9652_v24 = vrot.slane %v9047_v54, 7  ;;  %v4702_v46 = vrot.slane %v9279_v4, 7  ;;  %v4120_v63 = vld [vmem:[#allocation5 + $0x18] sm:$0x7]  ;;  %v4121_v5 = vld [vmem:[#allocation5 + $0x20] sm:$0x7] }
 0x4f7   :  { %v9324_v22 = vmax.f32 %v4119_v8, 0.0  ;;  %v9328_v2 = vmul.f32 %v9177_v38, %v9294_v12  ;;  %v9332_v57 = vmul.f32 %v9221_v33, %v9281_v47  ;;  %v9335_v42 = vmul.f32 %v4638_v59, %v9281_v47 }
 0x4f8   :  { %v9320_v56 = vsel %vm1526_vm15, %v9652_v24, %v4700_v37  ;;  %v4408_v37 = vld [vmem:[#allocation5 + $0x20] sm:$0xe0]  ;;  %v9337_v55 = vmax.f32 %v4407_v60, 0.0  ;;  %v9339_v19 = vmax.f32 %v4120_v63, 0.0  ;;  %v9343_v48 = vmul.f32 %v9202_v62, %v9294_v12  ;;  %v4409_v18 = vld [vmem:[#allocation5 + $0x28] sm:$0xe0] }
 0x4f9   :  { %v9346_v38 = vmul.f32 %v4577_v50, %v9294_v12  ;;  %v4137_v33 = vmul.f32 %v9003_v61, %v9324_v22  ;;  %v4196_v30 = vmul.f32 %v9071_v40, %v9324_v22  ;;  %v9352_v16 = vmax.f32 %v4408_v37, 0.0  ;;  %v4122_v17 = vld [vmem:[#allocation5 + $0x28] sm:$0x7]  ;;  %v4133_v37 = vld [vmem:[%s9609_s9 + $0x20] sm:$0x7] }
 0x4fa   :  { %v4265_v59 = vmul.f32 %v9093_v52, %v9324_v22  ;;  %v9653_v58 = vrot.slane %v8956_v27, 3  ;;  %v9359_v11 = vmax.f32 %v4121_v5, 0.0  ;;  %v4138_v50 = vmul.f32 %v4132_v36, %v9339_v19 }
 0x4fb   :  { %v9654_v8 = vrot.slane %v8951_v53, 6  ;;  %v4142_v40 = vsel %vm60_vm3, %v4137_v33, 0.0  ;;  %v4201_v60 = vsel %vm60_vm3, %v4196_v30, 0.0  ;;  %v9367_v63 = vmax.f32 %v4409_v18, 0.0  ;;  %v4134_v33 = vld [vmem:[%s9609_s9 + $0x28] sm:$0x7] }
 0x4fc   :  { %v4446_v62 = vmul.f32 %v9653_v58, %v9337_v55  ;;  %v9655_v52 = vrot.slane %v8965_v14, 3  ;;  %v4143_v36 = vadd.f32 %v4142_v40, %v9254_v21  ;;  %v4202_v5 = vadd.f32 %v4201_v60, %v9256_v6 }
 0x4fd   :  { %v4511_v24 = vmul.f32 %v9654_v8, %v9337_v55  ;;  %v9382_v30 = vmul.f32 %v4640_v44, %v9294_v12  ;;  %v9656_v14 = vrot.slane %v9003_v61, 3  ;;  %v4270_v8 = vsel %vm60_vm3, %v4265_v59, 0.0 }
 0x4fe   :  { %v4447_v27 = vmul.f32 %v9655_v52, %v9352_v16  ;;  %v4453_v53 = vsel %vm4452_vm4, %v4446_v62, 0.0  ;;  %v9389_v21 = vmax.f32 %v4122_v17, 0.0  ;;  %4144 = vadd.xlane.f32.xlu1 %v4143_v36  ;;  %v4139_v62 = vmul.f32 %v4133_v37, %v9359_v11 }
 0x4ff   :  { %v4448_v18 = vmul.f32 %v9656_v14, %v9367_v63  ;;  %v4147_v40 = vsel %vm4146_vm13, %v4138_v50, 0.0  ;;  %v9657_v44 = vrot.slane %v8972_v25, 6  ;;  %v4517_v17 = vsel %vm4452_vm4, %v4511_v24, 0.0 }
 0x500   :  { %v4454_v58 = vsel %vm4452_vm4, %v4447_v27, 0.0  ;;  %v4140_v61 = vmul.f32 %v4134_v33, %v9389_v21  ;;  %v9658_v27 = vrot.slane %v9032_v20, 6  ;;  %v9659_v50 = vrot.slane %v8895_v45, 3 }
 0x501   :  { %v4455_v6 = vadd.f32 %v4454_v58, %v4453_v53  ;;  %v4512_v60 = vmul.f32 %v9657_v44, %v9352_v16  ;;  %v4457_v52 = vsel %vm4456_vm14, %v4448_v18, 0.0  ;;  %v4148_v53 = vsel %vm4146_vm13, %v4139_v62, 0.0 }
 0x502   :  { %v4513_v59 = vmul.f32 %v9658_v27, %v9367_v63  ;;  %v4197_v25 = vmul.f32 %v9659_v50, %v9339_v19  ;;  %v4271_v14 = vadd.f32 %v4270_v8, %v9264_v39  ;;  %v4149_v18 = vadd.f32 %v4148_v53, %v4147_v40  ;;  %4203 = vadd.xlane.f32.xlu1 %v4202_v5 }
 0x503   :  { %v4458_v36 = vadd.f32 %v4457_v52, %v4455_v6  ;;  %v4518_v37 = vsel %vm4452_vm4, %v4512_v60, 0.0  ;;  %v4151_v33 = vsel %vm4150_vm0, %v4140_v61, 0.0  ;;  %v9660_v20 = vrot.slane %v8900_v32, 3  ;;  %v9662_v52 = vld [vmem:[#allocation13_spill] sm:$0xff] }
 0x504   :  { %v4519_v58 = vadd.f32 %v4518_v37, %v4517_v17  ;;  %v9661_v6 = vrot.slane %v8940_v23, 3  ;;  %v4205_v44 = vsel %vm4146_vm13, %v4197_v25, 0.0  ;;  %v4586_v45 = vmul.f32 %v9118_v29, %v9337_v55  ;;  %v9663_v17 = vld [vmem:[#allocation14_spill] sm:$0xff] }
 0x505   :  { %4459 = vadd.xlane.f32.xlu0 %v4458_v36  ;;  %v4198_v24 = vmul.f32 %v9660_v20, %v9359_v11  ;;  %v4152_v39 = vadd.f32 %v4151_v33, %v4149_v18  ;;  %v4520_v8 = vsel %vm4456_vm14, %v4513_v59, 0.0  ;;  %v4587_v5 = vmul.f32 %v9140_v1, %v9352_v16  ;;  %v9664_v36 = vld [vmem:[#allocation15_spill] sm:$0xff] }
 0x506   :  { %v4199_v62 = vmul.f32 %v9661_v6, %v9389_v21  ;;  %v4588_v40 = vmul.f32 %v9145_v15, %v9367_v63  ;;  %v4592_v23 = vsel %vm4452_vm4, %v4586_v45, 0.0  ;;  %v4266_v61 = vmul.f32 %v9662_v52, %v9339_v19  ;;  %4272 = vadd.xlane.f32.xlu1 %v4271_v14  ;;  %v9667_v14 = vld [vmem:[#allocation10_spill] sm:$0xff] }
 0x507   :  { %v4206_v32 = vsel %vm4146_vm13, %v4198_v24, 0.0  ;;  %v4593_v29 = vsel %vm4452_vm4, %v4587_v5, 0.0  ;;  %v4267_v1 = vmul.f32 %v9663_v17, %v9359_v11  ;;  %v4268_v53 = vmul.f32 %v9664_v36, %v9389_v21 }
 0x508   :  { %v4208_v60 = vsel %vm4150_vm0, %v4199_v62, 0.0  ;;  %v4207_v27 = vadd.f32 %v4206_v32, %v4205_v44  ;;  %v4595_v59 = vsel %vm4456_vm14, %v4588_v40, 0.0  ;;  %v4594_v15 = vadd.f32 %v4593_v29, %v4592_v23  ;;  %v4412_v44 = vld [vmem:[#allocation5 + $0x40] sm:$0xff] }
 0x509   :  { %4153 = vadd.xlane.f32.xlu0 %v4152_v39  ;;  %v4274_v37 = vsel %vm4146_vm13, %v4266_v61, 0.0  ;;  %v9665_v50 = vrot.slane %v8977_v35, 4  ;;  %v4521_v18 = vadd.f32 %v4520_v8, %v4519_v58  ;;  %v4275_v33 = vsel %vm4146_vm13, %v4267_v1, 0.0 }
 0x50a   :  { %v9666_v20 = vrot.slane %v8996_v0, 4  ;;  %v9668_v6 = vrot.slane %v9667_v14, 4  ;;  %v4209_v45 = vadd.f32 %v4208_v60, %v4207_v27  ;;  %v4596_v39 = vadd.f32 %v4595_v59, %v4594_v15  ;;  %v4627_v59 = vld [vmem:[%s9609_s9 + $0x88] sm:$0xf]  ;;  %v9673_v15 = vld [vmem:[#allocation11_spill] sm:$0xff] }
 0x50b   :  { %v4649_v25 = vmul.f32 %v9665_v50, %v9337_v55  ;;  %v4276_v5 = vadd.f32 %v4275_v33, %v4274_v37  ;;  %v4277_v40 = vsel %vm4150_vm0, %v4268_v53, 0.0  ;;  %v9669_v8 = vrot.slane %v8925_v34, 1  ;;  %4522 = vadd.xlane.f32.xlu1 %v4521_v18  ;;  %v4355_v37 = vld [vmem:[%s9609_s9 + $0xa0] sm:$0x7f] }
 0x50c   :  { %v4650_v24 = vmul.f32 %v9666_v20, %v9352_v16  ;;  %v4651_v62 = vmul.f32 %v9668_v6, %v9367_v63  ;;  %v9670_v0 = vrot.slane %v8930_v3, 1  ;;  %v9671_v61 = vrot.slane %v9042_v31, 1  ;;  %v4352_v31 = vld [vmem:[%s9609_s9 + $0x88] sm:$0xf0]  ;;  %v9675_v33 = vld [vmem:[#allocation12_spill] sm:$0xff] }
 0x50d   :  { %v4655_v35 = vsel %vm4452_vm4, %v4649_v25, 0.0  ;;  %v4323_v32 = vmul.f32 %v9669_v8, %v9339_v19  ;;  %4210 = vadd.xlane.f32.xlu0 %v4209_v45  ;;  %v4278_v52 = vadd.f32 %v4277_v40, %v4276_v5  ;;  %v4418_v29 = vmax.f32 %v4412_v44, 0.0  ;;  %v9678_v44 = vld [vmem:[#allocation9_spill] sm:$0xff] }
 0x50e   :  { %v4656_v58 = vsel %vm4452_vm4, %v4650_v24, 0.0  ;;  %v4324_v23 = vmul.f32 %v9670_v0, %v9359_v11  ;;  %v4658_v60 = vsel %vm4456_vm14, %v4651_v62, 0.0  ;;  %v4325_v27 = vmul.f32 %v9671_v61, %v9389_v21  ;;  %v9677_v24 = vld [vmem:[#allocation16_spill] sm:$0xff] }
 0x50f   :  { %v4331_v34 = vsel %vm4146_vm13, %v4323_v32, 0.0  ;;  %v9672_v3 = vrot.slane %v9047_v54, 7  ;;  %v9674_v36 = vrot.slane %v9673_v15, 7  ;;  %v4657_v50 = vadd.f32 %v4656_v58, %v4655_v35  ;;  %4597 = vadd.xlane.f32.xlu1 %v4596_v39 }
 0x510   :  { %v4332_v17 = vsel %vm4146_vm13, %v4324_v23, 0.0  ;;  %v4334_v18 = vsel %vm4150_vm0, %v4325_v27, 0.0  ;;  %v9676_v54 = vrot.slane %v9675_v33, 7  ;;  %v4451_v6 = vmul.f32 %v9677_v24, %v4418_v29 }
 0x511   :  { %v4712_v1 = vmul.f32 %v9672_v3, %v9337_v55  ;;  %v4713_v53 = vmul.f32 %v9674_v36, %v9352_v16  ;;  %v4333_v25 = vadd.f32 %v4332_v17, %v4331_v34  ;;  %v4461_v62 = vadd.f32 %v9328_v2, %v9311_v28  ;;  %4279 = vadd.xlane.f32.xlu0 %v4278_v52  ;;  %v4690_v28 = vld [vmem:[%s9609_s9 + $0xa0] sm:$0x7f] }
 0x512   :  { %v4714_v55 = vmul.f32 %v9676_v54, %v9367_v63  ;;  %v9679_v45 = vrot.slane %v9678_v44, 1  ;;  %v4641_v40 = vrot.slane %v4627_v59, 4  ;;  %v4368_v35 = vrot.slane %v4352_v31, 4 }
 0x513   :  { %v4718_v20 = vsel %vm4452_vm4, %v4712_v1, 0.0  ;;  %v4719_v16 = vsel %vm4452_vm4, %v4713_v53, 0.0  ;;  %v4369_v63 = vrot.slane %v4355_v37, 4  ;;  %v4524_v58 = vadd.f32 %v9343_v48, %v9315_v10 }
 0x514   :  { %v4579_v5 = vsel %vm796_vm12, %v9679_v45, %v4578_v41  ;;  %v4599_v8 = vadd.f32 %v9346_v38, %v9332_v57  ;;  %v9680_v7 = vmov %v9674_v36  ;;  %v4715_v41 = vmul.f32 %v9320_v56, %v9281_v47 }
 0x515   :  { %v4703_v2 = vsel %vm1526_vm15, %v9680_v7, %v4702_v46  ;;  %v4659_v39 = vadd.f32 %v4658_v60, %v4657_v50  ;;  %v4335_v32 = vadd.f32 %v4334_v18, %v4333_v25  ;;  %v4720_v0 = vadd.f32 %v4719_v16, %v4718_v20 }
 0x516   :  { %v4721_v10 = vsel %vm4456_vm14, %v4714_v55, 0.0  ;;  %v4462_v57 = vsel %vm60_vm3, %v4451_v6, 0.0  ;;  %v4516_v48 = vmul.f32 %v9288_v9, %v4418_v29  ;;  %v4591_v38 = vmul.f32 %v4579_v5, %v4418_v29 }
 0x517   :  { %v4662_v4 = vadd.f32 %v9382_v30, %v9335_v42  ;;  %4660 = vadd.xlane.f32.xlu1 %v4659_v39  ;;  %4336 = vadd.xlane.f32.xlu0 %v4335_v32  ;;  %v9681_v46 = vrot.slane %v9667_v14, 4  ;;  %v4704_v47 = vrot.slane %v4690_v28, 7  ;;  %v4716_v56 = vmul.f32 %v4703_v2, %v9294_v12 }
 0x518   :  { %v4722_v52 = vadd.f32 %v4721_v10, %v4720_v0  ;;  %v4463_v60 = vadd.f32 %v4462_v57, %v4461_v62  ;;  %v4322_v61 = vmul.f32 %v9301_v13, %v9324_v22  ;;  %v4525_v9 = vsel %vm60_vm3, %v4516_v48, 0.0 }
 0x519   :  { %v4642_v23 = vsel %vm366_vm5, %v9681_v46, %v4641_v40  ;;  %v4725_v27 = vadd.f32 %v4716_v56, %v4715_v41  ;;  %v4600_v59 = vsel %vm60_vm3, %v4591_v38, 0.0  ;;  %v4370_v30 = vsel %vm366_vm5, %v4368_v35, %v4369_v63  ;;  %v4163_v38 = vld [vmem:[%s9610_s10] sm:$0x1] }
 0x51a   :  { %v4654_v42 = vmul.f32 %v4642_v23, %v4418_v29  ;;  %v9682_v14 = vmov %v9676_v54  ;;  %v4526_v12 = vadd.f32 %v4525_v9, %v4524_v58  ;;  %v4601_v17 = vadd.f32 %v4600_v59, %v4599_v8  ;;  %v4220_v9 = vld [vmem:[%s9610_s10] sm:$0x1] }
 0x51b   :  { %4723 = vadd.xlane.f32.xlu1 %v4722_v52  ;;  %4464 = vadd.xlane.f32.xlu0 %v4463_v60  ;;  %v4705_v34 = vsel %vm1526_vm15, %v9682_v14, %v4704_v47  ;;  %v4327_v3 = vsel %vm60_vm3, %v4322_v61, 0.0  ;;  %v4379_v13 = vmul.f32 %v4370_v30, %v9324_v22  ;;  %v9683_v36 = vrot.slane %v9161_v49, 4 }
 0x51c   :  { %v4663_v1 = vsel %vm60_vm3, %v4654_v42, 0.0  ;;  %v4717_v15 = vmul.f32 %v4705_v34, %v4418_v29  ;;  %v9684_v31 = vrot.slane %v9166_v26, 4  ;;  %v4328_v50 = vadd.f32 %v4327_v3, %v9266_v51 }
 0x51d   :  { %v4380_v53 = vmul.f32 %v9683_v36, %v9339_v19  ;;  %v4664_v25 = vadd.f32 %v4663_v1, %v4662_v4  ;;  %v4384_v18 = vsel %vm60_vm3, %v4379_v13, 0.0  ;;  %v4382_v33 = vmul.f32 %v4369_v63, %v9389_v21 }
 0x51e   :  { %v4381_v37 = vmul.f32 %v9684_v31, %v9359_v11  ;;  %v4726_v22 = vsel %vm60_vm3, %v4717_v15, 0.0  ;;  %v4385_v26 = vadd.f32 %v4384_v18, %v9274_v43  ;;  %vm4165_vm5 = vcmask 0  }
 0x51f   :  { %4527 = vadd.xlane.f32.xlu1 %v4526_v12  ;;  %4602 = vadd.xlane.f32.xlu0 %v4601_v17  ;;  %v4388_v29 = vsel %vm4146_vm13, %v4380_v53, 0.0  ;;  %v4727_v19 = vadd.f32 %v4726_v22, %v4725_v27  ;;  %v4391_v54 = vsel %vm4150_vm0, %v4382_v33, 0.0  ;;  %vm4222_vm12 = vcmask 8200   ;;  %v4289_v53 = vld [vmem:[%s9610_s10] sm:$0x1] }
 0x520   :  { %v4389_v49 = vsel %vm4146_vm13, %v4381_v37, 0.0  ;;  %vm4291_vm15 = vcmask 16400  }
 0x521   :  { %v4390_v11 = vadd.f32 %v4389_v49, %v4388_v29 }
 0x523   :  { %4329 = vadd.xlane.f32.xlu1 %v4328_v50  ;;  %4665 = vadd.xlane.f32.xlu0 %v4664_v25  ;;  %v4392_v51 = vadd.f32 %v4391_v54, %v4390_v11 }
 0x527   :  { %4386 = vadd.xlane.f32.xlu1 %v4385_v26  ;;  %4728 = vadd.xlane.f32.xlu0 %v4727_v19 }
 0x52b   :  { %4393 = vadd.xlane.f32.xlu0 %v4392_v51 }
 0x58b   :  { %v4145_v55 = vpop.xlane.xlu1 %4144 }
 0x58f   :  { %v4204_v20 = vpop.xlane.xlu1 %4203 }
 0x592   :  { %v4460_v16 = vpop.xlane.xlu0 %4459 }
 0x593   :  { %v4273_v21 = vpop.xlane.xlu1 %4272  ;;  %v4468_v27 = vrot.slane %v4460_v16, 5 }
 0x596   :  { %v4154_v24 = vpop.xlane.xlu0 %4153 }
 0x597   :  { %v4155_v6 = vsel %vm4146_vm13, %v4154_v24, 0.0 }
 0x598   :  { %v4156_v62 = vadd.f32 %v4155_v6, %v4145_v55  ;;  %v4523_v45 = vpop.xlane.xlu1 %4522 }
 0x599   :  { %v4531_v15 = vrot.slane %v4523_v45, 5 }
 0x59a   :  { %v4157_v44 = vrot.slane %v4156_v62, 4  ;;  %v4211_v5 = vpop.xlane.xlu0 %4210 }
 0x59b   :  { %v4212_v43 = vsel %vm4146_vm13, %v4211_v5, 0.0 }
 0x59c   :  { %v4158_v40 = vadd.f32 %v4157_v44, %v4156_v62  ;;  %v4213_v35 = vadd.f32 %v4212_v43, %v4204_v20  ;;  %v4598_v8 = vpop.xlane.xlu1 %4597 }
 0x59d   :  { %v4606_v36 = vrot.slane %v4598_v8, 5 }
 0x59e   :  { %v4159_v63 = vrot.slane %v4158_v40, 2  ;;  %v4214_v58 = vrot.slane %v4213_v35, 4  ;;  %v4280_v28 = vpop.xlane.xlu0 %4279 }
 0x59f   :  { %v4281_v7 = vsel %vm4146_vm13, %v4280_v28, 0.0 }
 0x5a0   :  { %v4160_v2 = vadd.f32 %v4159_v63, %v4158_v40  ;;  %v4215_v41 = vadd.f32 %v4214_v58, %v4213_v35  ;;  %v4282_v39 = vadd.f32 %v4281_v7, %v4273_v21 }
 0x5a2   :  { %v4161_v32 = vrot.slane %v4160_v2, 1  ;;  %v4216_v0 = vrot.slane %v4215_v41, 2  ;;  %v4283_v10 = vrot.slane %v4282_v39, 4 }
 0x5a4   :  { %v4661_v57 = vpop.xlane.xlu1 %4660  ;;  %v4337_v48 = vpop.xlane.xlu0 %4336  ;;  %v4162_v4 = vadd.f32 %v4161_v32, %v4160_v2  ;;  %v4217_v46 = vadd.f32 %v4216_v0, %v4215_v41  ;;  %v4284_v23 = vadd.f32 %v4283_v10, %v4282_v39  ;;  %v4481_v0 = vld [vmem:[%s9610_s10] sm:$0x1] }
 0x5a5   :  { %v4338_v25 = vsel %vm4146_vm13, %v4337_v48, 0.0  ;;  %v4669_v20 = vrot.slane %v4661_v57, 5 }
 0x5a6   :  { %v4164_v47 = vadd.f32 %v4163_v38, %v4162_v4  ;;  %v4218_v56 = vrot.slane %v4217_v46, 1  ;;  %v4285_v52 = vrot.slane %v4284_v23, 2 }
 0x5a8   :  { %v4724_v60 = vpop.xlane.xlu1 %4723  ;;  %v4465_v61 = vpop.xlane.xlu0 %4464  ;;  %4166 = vst.msk [vmem:[#allocation6] sm:$0x1] %vm4165_vm5, %v4164_v47  ;;  %v4219_v42 = vadd.f32 %v4218_v56, %v4217_v46  ;;  %v4286_v30 = vadd.f32 %v4285_v52, %v4284_v23 }
 0x5a9   :  { %v4469_v59 = vrot.slane %v4465_v61, 5  ;;  %v4732_v8 = vrot.slane %v4724_v60, 5 }
 0x5aa   :  { %v4221_v12 = vadd.f32 %v4220_v9, %v4219_v42  ;;  %v4287_v17 = vrot.slane %v4286_v30, 1 }
 0x5ab   :  { %v4470_v14 = vsel %vm4146_vm13, %v4468_v27, %v4469_v59  ;;  %v4473_v34 = vsel %vm4146_vm13, %v4469_v59, 0.0 }
 0x5ac   :  { %v4474_v3 = vadd.f32 %v4473_v34, %v4470_v14  ;;  %v4528_v13 = vpop.xlane.xlu1 %4527  ;;  %v4603_v1 = vpop.xlane.xlu0 %4602  ;;  %v4288_v50 = vadd.f32 %v4287_v17, %v4286_v30  ;;  %4223 = vst.msk [vmem:[#allocation6] sm:$0x1] %vm4222_vm12, %v4221_v12  ;;  %v4544_v30 = vld [vmem:[%s9610_s10] sm:$0x1] }
 0x5ad   :  { %v4532_v31 = vrot.slane %v4528_v13, 5  ;;  %v4607_v37 = vrot.slane %v4603_v1, 5  ;;  %v4619_v14 = vld [vmem:[%s9610_s10] sm:$0x1] }
 0x5ae   :  { %v4475_v18 = vrot.slane %v4474_v3, 4  ;;  %v4290_v26 = vadd.f32 %v4289_v53, %v4288_v50  ;;  %v4346_v1 = vld [vmem:[%s9610_s10] sm:$0x1] }
 0x5af   :  { %v4533_v22 = vsel %vm4146_vm13, %v4531_v15, %v4532_v31  ;;  %v4536_v33 = vsel %vm4146_vm13, %v4532_v31, 0.0  ;;  %v4608_v29 = vsel %vm4146_vm13, %v4606_v36, %v4607_v37  ;;  %v4611_v49 = vsel %vm4146_vm13, %v4607_v37, 0.0 }
 0x5b0   :  { %v4476_v19 = vadd.f32 %v4475_v18, %v4474_v3  ;;  %v4537_v11 = vadd.f32 %v4536_v33, %v4533_v22  ;;  %v4612_v54 = vadd.f32 %v4611_v49, %v4608_v29  ;;  %v4330_v51 = vpop.xlane.xlu1 %4329  ;;  %v4666_v55 = vpop.xlane.xlu0 %4665  ;;  %4292 = vst.msk [vmem:[#allocation6] sm:$0x1] %vm4291_vm15, %v4290_v26  ;;  %v4682_v29 = vld [vmem:[%s9610_s10] sm:$0x1] }
 0x5b1   :  { %v4339_v16 = vadd.f32 %v4338_v25, %v4330_v51  ;;  %v4670_v21 = vrot.slane %v4666_v55, 5  ;;  %v4745_v55 = vld [vmem:[%s9610_s10] sm:$0x1] }
 0x5b2   :  { %v4477_v24 = vrot.slane %v4476_v19, 2  ;;  %v4538_v6 = vrot.slane %v4537_v11, 4  ;;  %v4613_v62 = vrot.slane %v4612_v54, 4 }
 0x5b3   :  { %v4340_v44 = vrot.slane %v4339_v16, 4  ;;  %v4671_v45 = vsel %vm4146_vm13, %v4669_v20, %v4670_v21  ;;  %v4674_v5 = vsel %vm4146_vm13, %v4670_v21, 0.0  ;;  %v4403_v21 = vld [vmem:[%s9610_s10] sm:$0x1] }
 0x5b4   :  { %v4478_v43 = vadd.f32 %v4477_v24, %v4476_v19  ;;  %v4539_v40 = vadd.f32 %v4538_v6, %v4537_v11  ;;  %v4614_v35 = vadd.f32 %v4613_v62, %v4612_v54  ;;  %v4675_v63 = vadd.f32 %v4674_v5, %v4671_v45  ;;  %v4729_v58 = vpop.xlane.xlu0 %4728  ;;  %v4387_v42 = vpop.xlane.xlu1 %4386 }
 0x5b5   :  { %v4341_v28 = vadd.f32 %v4340_v44, %v4339_v16  ;;  %v4733_v7 = vrot.slane %v4729_v58, 5 }
 0x5b6   :  { %v4479_v2 = vrot.slane %v4478_v43, 1  ;;  %v4540_v41 = vrot.slane %v4539_v40, 2  ;;  %v4615_v39 = vrot.slane %v4614_v35, 2  ;;  %v4676_v32 = vrot.slane %v4675_v63, 4 }
 0x5b7   :  { %v4342_v10 = vrot.slane %v4341_v28, 2  ;;  %v4734_v57 = vsel %vm4146_vm13, %v4732_v8, %v4733_v7  ;;  %v4737_v48 = vsel %vm4146_vm13, %v4733_v7, 0.0 }
 0x5b8   :  { %v4480_v38 = vadd.f32 %v4479_v2, %v4478_v43  ;;  %v4541_v4 = vadd.f32 %v4540_v41, %v4539_v40  ;;  %v4616_v46 = vadd.f32 %v4615_v39, %v4614_v35  ;;  %v4677_v23 = vadd.f32 %v4676_v32, %v4675_v63  ;;  %v4394_v47 = vpop.xlane.xlu0 %4393 }
 0x5b9   :  { %v4343_v56 = vadd.f32 %v4342_v10, %v4341_v28  ;;  %v4738_v52 = vadd.f32 %v4737_v48, %v4734_v57  ;;  %v4395_v60 = vsel %vm4146_vm13, %v4394_v47, 0.0 }
 0x5ba   :  { %v4482_v61 = vadd.f32 %v4481_v0, %v4480_v38  ;;  %v4542_v27 = vrot.slane %v4541_v4, 1  ;;  %v4617_v9 = vrot.slane %v4616_v46, 1  ;;  %v4678_v59 = vrot.slane %v4677_v23, 2 }
 0x5bb   :  { %v4344_v34 = vrot.slane %v4343_v56, 1  ;;  %v4739_v12 = vrot.slane %v4738_v52, 4  ;;  %v4396_v17 = vadd.f32 %v4395_v60, %v4387_v42 }
 0x5bc   :  { %4483 = vst.msk [vmem:[#allocation6 + $0x1] sm:$0x1] %vm4165_vm5, %v4482_v61  ;;  %v4543_v3 = vadd.f32 %v4542_v27, %v4541_v4  ;;  %v4618_v13 = vadd.f32 %v4617_v9, %v4616_v46  ;;  %v4679_v15 = vadd.f32 %v4678_v59, %v4677_v23 }
 0x5bd   :  { %v4345_v36 = vadd.f32 %v4344_v34, %v4343_v56  ;;  %v4740_v53 = vadd.f32 %v4739_v12, %v4738_v52  ;;  %v4397_v31 = vrot.slane %v4396_v17, 4 }
 0x5be   :  { %v4545_v37 = vadd.f32 %v4544_v30, %v4543_v3  ;;  %v4620_v50 = vadd.f32 %v4619_v14, %v4618_v13  ;;  %v4680_v25 = vrot.slane %v4679_v15, 1 }
 0x5bf   :  { %v4347_v18 = vadd.f32 %v4346_v1, %v4345_v36  ;;  %v4741_v22 = vrot.slane %v4740_v53, 2  ;;  %v4398_v33 = vadd.f32 %v4397_v31, %v4396_v17 }
 0x5c0   :  { %v4681_v49 = vadd.f32 %v4680_v25, %v4679_v15  ;;  %4546 = vst.msk [vmem:[#allocation6 + $0x1] sm:$0x1] %vm4222_vm12, %v4545_v37 }
 0x5c1   :  { %v4742_v26 = vadd.f32 %v4741_v22, %v4740_v53  ;;  %v4399_v19 = vrot.slane %v4398_v33, 2  ;;  %4349 = vst.msk [vmem:[#allocation6] sm:$0x1] %vm4348_vm1, %v4347_v18 }
 0x5c2   :  { %4621 = vst.msk [vmem:[#allocation6 + $0x1] sm:$0x1] %vm4291_vm15, %v4620_v50  ;;  %v4683_v11 = vadd.f32 %v4682_v29, %v4681_v49 }
 0x5c3   :  { %v4743_v54 = vrot.slane %v4742_v26, 1  ;;  %v4400_v51 = vadd.f32 %v4399_v19, %v4398_v33 }
 0x5c4   :  { %4684 = vst.msk [vmem:[#allocation6 + $0x1] sm:$0x1] %vm4348_vm1, %v4683_v11 }
 0x5c5   :  { %v4744_v20 = vadd.f32 %v4743_v54, %v4742_v26  ;;  %v4401_v16 = vrot.slane %v4400_v51, 1 }
 0x5c7   :  { %v4402_v24 = vadd.f32 %v4401_v16, %v4400_v51  ;;  %v4746_v6 = vadd.f32 %v4745_v55, %v4744_v20 }
 0x5c9   :  { %v4404_v62 = vadd.f32 %v4403_v21, %v4402_v24  ;;  %4747 = vst.msk [vmem:[#allocation6 + $0x1] sm:$0x1] %vm4405_vm2, %v4746_v6 }
 0x5cb   :  { %4406 = vst.msk [vmem:[#allocation6] sm:$0x1] %vm4405_vm2, %v4404_v62 }
 0x5cc   :  { %5902 = shalt.err (!%p5899_p4)
}
 0x5cd   :  { %s5903_s10 = scalar_lea.hbm %s9611_s11, 32 }
 0x5ce   :  { %p5904_p5 = scmp.ne.s32.totalorder %s9611_s11, %s5903_s10  ;;  %p5907_p6 = scmp.lt.u32.totalorder %s5903_s10, %s9611_s11 }
 0x5d0   :  { %p5909_p7 = pnand %p5907_p6, %p5904_p5 }
 0x5d2   :  { %5912 = shalt.err (!%p5909_p7)
}
 0x5d3   :  { %4757 = dma.vmem_to_hbm [thread:$0]  %s4755_s8, 32, %s9611_s11, [#allocation7]  }
 0x5d4   :  { %5913 = dma.done.wait [#allocation7], 32  }
 0x5d5   :  { %5914 = vsyncadd [#allocation7], 4294967264 }
 0x5d6   :  { %4761 = vsyncpa [#allocation7], 1 }

</bundles_post_ra>
